<compile_context>
chip_gen: v6e
topology: v6e:2x2x1
jax: 0.10.0
libtpu: 0.0.40
codegen_flags: <defaults>
</compile_context>

<pallas_src>
import math

import jax
import jax.numpy as jnp
import numpy as np
from jax import lax
from jax.experimental import pallas as pl
from jax.experimental.pallas import tpu as pltpu


def _round_up(x, m):
    return ((x + m - 1) // m) * m


def _largest_divisor_leq(n, cap):
    for d in range(min(n, cap), 0, -1):
        if n % d == 0:
            return d
    return 1


def _vmem_limit_bytes():
    """~7/8 of physical VMEM (128 MiB v5e/v6e -> 112 MiB, 64 MiB v7x -> 56 MiB)."""
    try:
        cap = int(pltpu.get_tpu_info().vmem_capacity_bytes)
        return max(32 * 1024 * 1024, (cap * 7) // 8)
    except Exception:
        return 48 * 1024 * 1024


# ---------------------------------------------------------------------------
# Fused kernel: input projection + CTRNN recurrence + readout.
# ---------------------------------------------------------------------------
def _make_fused_kernel(alpha, time_block):
    def kernel(x_ref, w_in_ref, b_rec_ref, w_hh_ref, w_fc_ref, b_fc_ref,
               out_ref, rnn_out_ref, u_scratch, h_scratch):
        # NOTE: the h_scratch carry + this reset are only correct because the
        # time axis is the LAST (fastest-varying) grid axis and is marked
        # "arbitrary".  Do not reorder the grid axes or change its semantics.
        t_blk_idx = pl.program_id(1)

        @pl.when(t_blk_idx == 0)
        def _():
            h_scratch[...] = jnp.zeros_like(h_scratch)

        tb, bb, i_pad = x_ref.shape
        h_pad = w_in_ref.shape[1]
        o_pad = w_fc_ref.shape[1]

        # --- 1) fused input projection for the whole block (one big matmul) --
        x_blk = x_ref[...].reshape(tb * bb, i_pad)                 # bf16
        u_scratch[...] = (
            jnp.dot(x_blk, w_in_ref[...], preferred_element_type=jnp.float32)
            + b_rec_ref[...]
        ).reshape(tb, bb, h_pad)

        # --- 2) sequential recurrence: exactly one MXU matmul per timestep ---
        w_hh = w_hh_ref[...]                                       # resident

        def step(t, h):
            pre = u_scratch[t] + jnp.dot(h.astype(w_hh.dtype), w_hh,
                                         preferred_element_type=jnp.float32)
            h_new = jnp.maximum(pre, 0.0)
            h = h + alpha * (h_new - h)            # == h*(1-a) + h_new*a
            rnn_out_ref[t] = h.astype(rnn_out_ref.dtype)
            return h

        h_scratch[...] = lax.fori_loop(0, time_block, step, h_scratch[...],
                                       unroll=True)

        # --- 3) fused readout epilogue (M = tb*bb rows fills the MXU) --------
        r = rnn_out_ref[...].reshape(tb * bb, h_pad).astype(w_fc_ref.dtype)
        out_ref[...] = (
            jnp.dot(r, w_fc_ref[...], preferred_element_type=jnp.float32)
            + b_fc_ref[...]
        ).reshape(tb, bb, o_pad).astype(out_ref.dtype)

    return kernel


def _build_fused_call(alpha, seq_len, b_pad, bb, t_blk,
                      i_pad, h_pad, o_pad, weight_mode, vmem_limit):
    # weight_mode: pl.Buffered(1) for grid-invariant weight blocks, or None.
    wkw = {} if weight_mode is None else {"pipeline_mode": weight_mode}
    return pl.pallas_call(
        _make_fused_kernel(alpha, t_blk),
        out_shape=(
            jax.ShapeDtypeStruct((seq_len, b_pad, o_pad), jnp.float32),
            jax.ShapeDtypeStruct((seq_len, b_pad, h_pad), jnp.float32),
        ),
        grid_spec=pltpu.PrefetchScalarGridSpec(
            num_scalar_prefetch=0,
            grid=(b_pad // bb, seq_len // t_blk),
            in_specs=[
                pl.BlockSpec((t_blk, bb, i_pad), lambda bi, si: (si, bi, 0)),
                pl.BlockSpec((i_pad, h_pad), lambda bi, si: (0, 0), **wkw),
                pl.BlockSpec((1, h_pad), lambda bi, si: (0, 0), **wkw),
                pl.BlockSpec((h_pad, h_pad), lambda bi, si: (0, 0), **wkw),
                pl.BlockSpec((h_pad, o_pad), lambda bi, si: (0, 0), **wkw),
                pl.BlockSpec((1, o_pad), lambda bi, si: (0, 0), **wkw),
            ],
            out_specs=[
                pl.BlockSpec((t_blk, bb, o_pad), lambda bi, si: (si, bi, 0)),
                pl.BlockSpec((t_blk, bb, h_pad), lambda bi, si: (si, bi, 0)),
            ],
            scratch_shapes=[
                pltpu.VMEM((t_blk, bb, h_pad), jnp.float32),   # u (projection)
                pltpu.VMEM((bb, h_pad), jnp.float32),          # h carry
            ],
        ),
        compiler_params=pltpu.CompilerParams(
            # Batch blocks are independent (megacore-shardable on v7x);
            # the time axis carries the hidden state -> sequential.
            dimension_semantics=("parallel", "arbitrary"),
            vmem_limit_bytes=vmem_limit,
        ),
    )


def rnn_net_forward(x, params, alpha, *, time_block=16, batch_block=None,
                    compute_dtype=jnp.bfloat16):
    """RNNNet forward.  x: (seq_len, batch, input_size) float32.

    Returns (out, rnn_output) in float32, matching the PyTorch module with
    rnn_std == 0 (no recurrent noise).
    """
    seq_len, batch, input_size = x.shape
    w_in, b_in = params["w_in"], params["b_in"]        # (I,H), (1,H)
    w_hh, b_hh = params["w_hh"], params["b_hh"]        # (H,H), (1,H)
    w_fc, b_fc = params["w_fc"], params["b_fc"]        # (H,O), (1,O)
    hidden_size = w_in.shape[1]
    output_size = w_fc.shape[1]

    # Lane dims -> multiples of 128; batch -> bf16-safe sublane multiple.
    sub = 16 if compute_dtype == jnp.bfloat16 else 8
    b_pad = _round_up(batch, sub)
    i_pad = _round_up(input_size, 128)
    h_pad = _round_up(hidden_size, 128)
    o_pad = _round_up(output_size, 128)

    t_blk = _largest_divisor_leq(seq_len, time_block)
    # Default: single batch block (best MXU fill on v5e/v6e, 1 TC).  On v7x
    # pass batch_block = b_pad // 2 (a multiple of `sub`) to use both cores.
    bb = batch_block if batch_block is not None else b_pad
    if b_pad % bb != 0 or bb % sub != 0:
        bb = b_pad

    cd = compute_dtype
    x_p = jnp.pad(x, ((0, 0), (0, b_pad - batch),
                      (0, i_pad - input_size))).astype(cd)
    w_in_p = jnp.pad(w_in, ((0, i_pad - input_size),
                            (0, h_pad - hidden_size))).astype(cd)
    w_hh_p = jnp.pad(w_hh, ((0, h_pad - hidden_size),
                            (0, h_pad - hidden_size))).astype(cd)
    w_fc_p = jnp.pad(w_fc, ((0, h_pad - hidden_size),
                            (0, o_pad - output_size))).astype(cd)
    b_rec = jnp.pad((b_in + b_hh).astype(jnp.float32),            # folded biases
                    ((0, 0), (0, h_pad - hidden_size)))
    b_fc_p = jnp.pad(b_fc.astype(jnp.float32),
                     ((0, 0), (0, o_pad - output_size)))

    vmem_limit = _vmem_limit_bytes()
    args = (x_p, w_in_p, b_rec, w_hh_p, w_fc_p, b_fc_p)

    try:
        # Single-buffer the grid-invariant weight/bias blocks (saves VMEM,
        # matters most on v7x's 64 MiB VMEM).
        call = _build_fused_call(alpha, seq_len, b_pad, bb, t_blk,
                                 i_pad, h_pad, o_pad,
                                 pl.Buffered(1), vmem_limit)
        out_p, rnn_out_p = call(*args)
    except Exception:
        # Fall back to default double buffering if Buffered(1) is rejected.
        call = _build_fused_call(alpha, seq_len, b_pad, bb, t_blk,
                                 i_pad, h_pad, o_pad, None, vmem_limit)
        out_p, rnn_out_p = call(*args)

    out = out_p[:, :batch, :output_size]
    rnn_output = rnn_out_p[:, :batch, :hidden_size]
    return out, rnn_output


def init_params(key, input_size, hidden_size, output_size):
    """Deterministic init mirroring nn.Linear's U(-1/sqrt(fan_in), ...)."""
    ks = jax.random.split(key, 6)

    def linear(kw, kb, fan_in, fan_out):
        bound = 1.0 / math.sqrt(fan_in)
        w = jax.random.uniform(kw, (fan_in, fan_out), jnp.float32, -bound, bound)
        b = jax.random.uniform(kb, (1, fan_out), jnp.float32, -bound, bound)
        return w, b

    w_in, b_in = linear(ks[0], ks[1], input_size, hidden_size)
    w_hh, b_hh = linear(ks[2], ks[3], hidden_size, hidden_size)
    w_fc, b_fc = linear(ks[4], ks[5], hidden_size, output_size)
    return dict(w_in=w_in, b_in=b_in, w_hh=w_hh, b_hh=b_hh,
                w_fc=w_fc, b_fc=b_fc)


def reference_forward(x, params, alpha):
    """Pure-JAX float32 reference matching the PyTorch forward (rnn_std == 0)."""
    seq_len, batch, _ = x.shape
    hidden_size = params["w_in"].shape[1]
    h = jnp.zeros((batch, hidden_size), jnp.float32)
    rnn_outs = []
    for t in range(seq_len):
        pre = (x[t] @ params["w_in"] + params["b_in"]
               + h @ params["w_hh"] + params["b_hh"])
        h_new = jnp.maximum(pre, 0.0)
        h = h * (1.0 - alpha) + h_new * alpha
        rnn_outs.append(h)
    rnn_output = jnp.stack(rnn_outs, axis=0)
    out = rnn_output @ params["w_fc"] + params["b_fc"]
    return out, rnn_output


if __name__ == "__main__":
    # x: (seq_len, batch, input_size), matching the module's forward.
    seq_len, batch, input_size = 16, 4, 16
    hidden_size, output_size = 32, 4
    rnn_std = 0.0                      # deterministic (no recurrent noise)
    dt, tau = 10.0, 100.0
    alpha = dt / tau                   # 0.1

    key = jax.random.PRNGKey(0)
    k_x, k_p = jax.random.split(key)
    x = jax.random.normal(k_x, (seq_len, batch, input_size), jnp.float32)
    params = init_params(k_p, input_size, hidden_size, output_size)

    out, rnn_output = rnn_net_forward(x, params, alpha, time_block=16)
    out = jax.block_until_ready(out)
    rnn_output = jax.block_until_ready(rnn_output)

    # Compare against the float32 reference.  Weights/activations go through
    # the MXU in bfloat16 (accumulation and h-carry in f32), so tolerances are
    # set accordingly.
    ref_out, ref_rnn = reference_forward(x, params, alpha)
    np.testing.assert_allclose(np.asarray(rnn_output), np.asarray(ref_rnn),
                               rtol=2e-2, atol=2e-2)
    np.testing.assert_allclose(np.asarray(out), np.asarray(ref_out),
                               rtol=2e-2, atol=2e-2)

    assert out.shape == (seq_len, batch, output_size)
    assert rnn_output.shape == (seq_len, batch, hidden_size)
    print("KERNEL_OK")
</pallas_src>

<mosaic_0001>
module attributes {stable_mosaic.version = 11 : i64} {
  func.func @kernel(%arg0: i32, %arg1: i32, %arg2: memref<16x16x128xbf16, #tpu.memory_space<vmem>>, %arg3: memref<128x128xbf16, #tpu.memory_space<vmem>>, %arg4: memref<1x128xf32, #tpu.memory_space<vmem>>, %arg5: memref<128x128xbf16, #tpu.memory_space<vmem>>, %arg6: memref<128x128xbf16, #tpu.memory_space<vmem>>, %arg7: memref<1x128xf32, #tpu.memory_space<vmem>>, %arg8: memref<16x16x128xf32, #tpu.memory_space<vmem>>, %arg9: memref<16x16x128xf32, #tpu.memory_space<vmem>>, %arg10: memref<16x16x128xf32, #tpu.memory_space<vmem>>, %arg11: memref<16x128xf32, #tpu.memory_space<vmem>>) attributes {dimension_semantics = [#tpu.dimension_semantics<parallel>, #tpu.dimension_semantics<arbitrary>], iteration_bounds = array<i64: 1, 1>, scalar_prefetch = 0 : i64, scratch_operands = 2 : i64, tpu.core_type = #tpu.core_type<tc>, window_params = [{transform_indices = @transform_0, window_bounds = array<i64: 16, 16, 128>}, {pipeline_mode = #tpu.pipeline_mode<synchronous>, transform_indices = @transform_1, window_bounds = array<i64: 128, 128>}, {pipeline_mode = #tpu.pipeline_mode<synchronous>, transform_indices = @transform_2, window_bounds = array<i64: 1, 128>}, {pipeline_mode = #tpu.pipeline_mode<synchronous>, transform_indices = @transform_3, window_bounds = array<i64: 128, 128>}, {pipeline_mode = #tpu.pipeline_mode<synchronous>, transform_indices = @transform_4, window_bounds = array<i64: 128, 128>}, {pipeline_mode = #tpu.pipeline_mode<synchronous>, transform_indices = @transform_5, window_bounds = array<i64: 1, 128>}, {transform_indices = @transform_6, window_bounds = array<i64: 16, 16, 128>}, {transform_indices = @transform_7, window_bounds = array<i64: 16, 16, 128>}]} {
    %c0_i32 = arith.constant 0 : i32
    %0 = arith.cmpi eq, %arg1, %c0_i32 : i32
    %1 = arith.extui %0 : i1 to i32
    %c0_i32_0 = arith.constant 0 : i32
    %2 = arith.cmpi ne, %1, %c0_i32_0 : i32
    scf.if %2 {
      %cst_140 = arith.constant 0.000000e+00 : f32
      %281 = vector.broadcast %cst_140 : f32 to vector<16x128xf32>
      %c0_141 = arith.constant 0 : index
      %c0_142 = arith.constant 0 : index
      %282 = vector.load %arg11[%c0_141, %c0_142] : memref<16x128xf32, #tpu.memory_space<vmem>>, vector<16x128xf32>
      tpu.vector_store %arg11[%c0_141, %c0_142], %281 {strides = array<i32>} : memref<16x128xf32, #tpu.memory_space<vmem>>, vector<16x128xf32>,
    } else {
    }
    %c0 = arith.constant 0 : index
    %c0_1 = arith.constant 0 : index
    %c0_2 = arith.constant 0 : index
    %3 = vector.load %arg2[%c0, %c0_1, %c0_2] : memref<16x16x128xbf16, #tpu.memory_space<vmem>>, vector<16x16x128xbf16>
    %4 = vector.shape_cast %3 : vector<16x16x128xbf16> to vector<256x128xbf16>
    %c0_3 = arith.constant 0 : index
    %c0_4 = arith.constant 0 : index
    %5 = vector.load %arg3[%c0_3, %c0_4] : memref<128x128xbf16, #tpu.memory_space<vmem>>, vector<128x128xbf16>
    %cst = arith.constant dense<0.000000e+00> : vector<256x128xf32>
    %6 = tpu.matmul %4, %5, %cst {dimension_numbers = #tpu.dot_dimension_numbers<[1], [0], [0], [1], [0, 0, 1, 1], [], []>} : vector<256x128xbf16>, vector<128x128xbf16>, vector<256x128xf32> -> vector<256x128xf32>
    %c0_5 = arith.constant 0 : index
    %c0_6 = arith.constant 0 : index
    %7 = vector.load %arg4[%c0_5, %c0_6] : memref<1x128xf32, #tpu.memory_space<vmem>>, vector<1x128xf32>
    %8 = vector.broadcast %7 : vector<1x128xf32> to vector<256x128xf32>
    %9 = arith.addf %6, %8 : vector<256x128xf32>
    %10 = vector.shape_cast %9 : vector<256x128xf32> to vector<16x16x128xf32>
    %c0_7 = arith.constant 0 : index
    %c0_8 = arith.constant 0 : index
    %c0_9 = arith.constant 0 : index
    %11 = vector.load %arg10[%c0_7, %c0_8, %c0_9] : memref<16x16x128xf32, #tpu.memory_space<vmem>>, vector<16x16x128xf32>
    tpu.vector_store %arg10[%c0_7, %c0_8, %c0_9], %10 {strides = array<i32>} : memref<16x16x128xf32, #tpu.memory_space<vmem>>, vector<16x16x128xf32>,
    %c0_10 = arith.constant 0 : index
    %c0_11 = arith.constant 0 : index
    %12 = vector.load %arg5[%c0_10, %c0_11] : memref<128x128xbf16, #tpu.memory_space<vmem>>, vector<128x128xbf16>
    %c0_12 = arith.constant 0 : index
    %c0_13 = arith.constant 0 : index
    %13 = vector.load %arg11[%c0_12, %c0_13] : memref<16x128xf32, #tpu.memory_space<vmem>>, vector<16x128xf32>
    %c0_i32_14 = arith.constant 0 : i32
    %14 = arith.index_cast %c0_i32_14 : i32 to index
    %c0_15 = arith.constant 0 : index
    %c0_16 = arith.constant 0 : index
    %15 = vector.load %arg10[%14, %c0_15, %c0_16] : memref<16x16x128xf32, #tpu.memory_space<vmem>>, vector<1x16x128xf32>
    %16 = vector.shape_cast %15 : vector<1x16x128xf32> to vector<16x128xf32>
    %17 = arith.truncf %13 : vector<16x128xf32> to vector<16x128xbf16>
    %cst_17 = arith.constant dense<0.000000e+00> : vector<16x128xf32>
    %18 = tpu.matmul %17, %12, %cst_17 {dimension_numbers = #tpu.dot_dimension_numbers<[1], [0], [0], [1], [0, 0, 1, 1], [], []>} : vector<16x128xbf16>, vector<128x128xbf16>, vector<16x128xf32> -> vector<16x128xf32>
    %19 = arith.addf %16, %18 : vector<16x128xf32>
    %cst_18 = arith.constant 0.000000e+00 : f32
    %20 = vector.broadcast %cst_18 : f32 to vector<16x128xf32>
    %21 = arith.maximumf %19, %20 : vector<16x128xf32>
    %22 = arith.subf %21, %13 : vector<16x128xf32>
    %cst_19 = arith.constant 1.000000e-01 : f32
    %23 = vector.broadcast %cst_19 : f32 to vector<16x128xf32>
    %24 = arith.mulf %23, %22 : vector<16x128xf32>
    %25 = arith.addf %13, %24 : vector<16x128xf32>
    %26 = arith.index_cast %c0_i32_14 : i32 to index
    %c0_20 = arith.constant 0 : index
    %c0_21 = arith.constant 0 : index
    %27 = vector.load %arg9[%26, %c0_20, %c0_21] : memref<16x16x128xf32, #tpu.memory_space<vmem>>, vector<1x16x128xf32>
    %28 = vector.shape_cast %27 : vector<1x16x128xf32> to vector<16x128xf32>
    %29 = vector.shape_cast %25 : vector<16x128xf32> to vector<1x16x128xf32>
    tpu.vector_store %arg9[%26, %c0_20, %c0_21], %29 {strides = array<i32>} : memref<16x16x128xf32, #tpu.memory_space<vmem>>, vector<1x16x128xf32>,
    %c1_i32 = arith.constant 1 : i32
    %30 = arith.index_cast %c1_i32 : i32 to index
    %c0_22 = arith.constant 0 : index
    %c0_23 = arith.constant 0 : index
    %31 = vector.load %arg10[%30, %c0_22, %c0_23] : memref<16x16x128xf32, #tpu.memory_space<vmem>>, vector<1x16x128xf32>
    %32 = vector.shape_cast %31 : vector<1x16x128xf32> to vector<16x128xf32>
    %33 = arith.truncf %25 : vector<16x128xf32> to vector<16x128xbf16>
    %cst_24 = arith.constant dense<0.000000e+00> : vector<16x128xf32>
    %34 = tpu.matmul %33, %12, %cst_24 {dimension_numbers = #tpu.dot_dimension_numbers<[1], [0], [0], [1], [0, 0, 1, 1], [], []>} : vector<16x128xbf16>, vector<128x128xbf16>, vector<16x128xf32> -> vector<16x128xf32>
    %35 = arith.addf %32, %34 : vector<16x128xf32>
    %cst_25 = arith.constant 0.000000e+00 : f32
    %36 = vector.broadcast %cst_25 : f32 to vector<16x128xf32>
    %37 = arith.maximumf %35, %36 : vector<16x128xf32>
    %38 = arith.subf %37, %25 : vector<16x128xf32>
    %cst_26 = arith.constant 1.000000e-01 : f32
    %39 = vector.broadcast %cst_26 : f32 to vector<16x128xf32>
    %40 = arith.mulf %39, %38 : vector<16x128xf32>
    %41 = arith.addf %25, %40 : vector<16x128xf32>
    %42 = arith.index_cast %c1_i32 : i32 to index
    %c0_27 = arith.constant 0 : index
    %c0_28 = arith.constant 0 : index
    %43 = vector.load %arg9[%42, %c0_27, %c0_28] : memref<16x16x128xf32, #tpu.memory_space<vmem>>, vector<1x16x128xf32>
    %44 = vector.shape_cast %43 : vector<1x16x128xf32> to vector<16x128xf32>
    %45 = vector.shape_cast %41 : vector<16x128xf32> to vector<1x16x128xf32>
    tpu.vector_store %arg9[%42, %c0_27, %c0_28], %45 {strides = array<i32>} : memref<16x16x128xf32, #tpu.memory_space<vmem>>, vector<1x16x128xf32>,
    %c2_i32 = arith.constant 2 : i32
    %46 = arith.index_cast %c2_i32 : i32 to index
    %c0_29 = arith.constant 0 : index
    %c0_30 = arith.constant 0 : index
    %47 = vector.load %arg10[%46, %c0_29, %c0_30] : memref<16x16x128xf32, #tpu.memory_space<vmem>>, vector<1x16x128xf32>
    %48 = vector.shape_cast %47 : vector<1x16x128xf32> to vector<16x128xf32>
    %49 = arith.truncf %41 : vector<16x128xf32> to vector<16x128xbf16>
    %cst_31 = arith.constant dense<0.000000e+00> : vector<16x128xf32>
    %50 = tpu.matmul %49, %12, %cst_31 {dimension_numbers = #tpu.dot_dimension_numbers<[1], [0], [0], [1], [0, 0, 1, 1], [], []>} : vector<16x128xbf16>, vector<128x128xbf16>, vector<16x128xf32> -> vector<16x128xf32>
    %51 = arith.addf %48, %50 : vector<16x128xf32>
    %cst_32 = arith.constant 0.000000e+00 : f32
    %52 = vector.broadcast %cst_32 : f32 to vector<16x128xf32>
    %53 = arith.maximumf %51, %52 : vector<16x128xf32>
    %54 = arith.subf %53, %41 : vector<16x128xf32>
    %cst_33 = arith.constant 1.000000e-01 : f32
    %55 = vector.broadcast %cst_33 : f32 to vector<16x128xf32>
    %56 = arith.mulf %55, %54 : vector<16x128xf32>
    %57 = arith.addf %41, %56 : vector<16x128xf32>
    %58 = arith.index_cast %c2_i32 : i32 to index
    %c0_34 = arith.constant 0 : index
    %c0_35 = arith.constant 0 : index
    %59 = vector.load %arg9[%58, %c0_34, %c0_35] : memref<16x16x128xf32, #tpu.memory_space<vmem>>, vector<1x16x128xf32>
    %60 = vector.shape_cast %59 : vector<1x16x128xf32> to vector<16x128xf32>
    %61 = vector.shape_cast %57 : vector<16x128xf32> to vector<1x16x128xf32>
    tpu.vector_store %arg9[%58, %c0_34, %c0_35], %61 {strides = array<i32>} : memref<16x16x128xf32, #tpu.memory_space<vmem>>, vector<1x16x128xf32>,
    %c3_i32 = arith.constant 3 : i32
    %62 = arith.index_cast %c3_i32 : i32 to index
    %c0_36 = arith.constant 0 : index
    %c0_37 = arith.constant 0 : index
    %63 = vector.load %arg10[%62, %c0_36, %c0_37] : memref<16x16x128xf32, #tpu.memory_space<vmem>>, vector<1x16x128xf32>
    %64 = vector.shape_cast %63 : vector<1x16x128xf32> to vector<16x128xf32>
    %65 = arith.truncf %57 : vector<16x128xf32> to vector<16x128xbf16>
    %cst_38 = arith.constant dense<0.000000e+00> : vector<16x128xf32>
    %66 = tpu.matmul %65, %12, %cst_38 {dimension_numbers = #tpu.dot_dimension_numbers<[1], [0], [0], [1], [0, 0, 1, 1], [], []>} : vector<16x128xbf16>, vector<128x128xbf16>, vector<16x128xf32> -> vector<16x128xf32>
    %67 = arith.addf %64, %66 : vector<16x128xf32>
    %cst_39 = arith.constant 0.000000e+00 : f32
    %68 = vector.broadcast %cst_39 : f32 to vector<16x128xf32>
    %69 = arith.maximumf %67, %68 : vector<16x128xf32>
    %70 = arith.subf %69, %57 : vector<16x128xf32>
    %cst_40 = arith.constant 1.000000e-01 : f32
    %71 = vector.broadcast %cst_40 : f32 to vector<16x128xf32>
    %72 = arith.mulf %71, %70 : vector<16x128xf32>
    %73 = arith.addf %57, %72 : vector<16x128xf32>
    %74 = arith.index_cast %c3_i32 : i32 to index
    %c0_41 = arith.constant 0 : index
    %c0_42 = arith.constant 0 : index
    %75 = vector.load %arg9[%74, %c0_41, %c0_42] : memref<16x16x128xf32, #tpu.memory_space<vmem>>, vector<1x16x128xf32>
    %76 = vector.shape_cast %75 : vector<1x16x128xf32> to vector<16x128xf32>
    %77 = vector.shape_cast %73 : vector<16x128xf32> to vector<1x16x128xf32>
    tpu.vector_store %arg9[%74, %c0_41, %c0_42], %77 {strides = array<i32>} : memref<16x16x128xf32, #tpu.memory_space<vmem>>, vector<1x16x128xf32>,
    %c4_i32 = arith.constant 4 : i32
    %78 = arith.index_cast %c4_i32 : i32 to index
    %c0_43 = arith.constant 0 : index
    %c0_44 = arith.constant 0 : index
    %79 = vector.load %arg10[%78, %c0_43, %c0_44] : memref<16x16x128xf32, #tpu.memory_space<vmem>>, vector<1x16x128xf32>
    %80 = vector.shape_cast %79 : vector<1x16x128xf32> to vector<16x128xf32>
    %81 = arith.truncf %73 : vector<16x128xf32> to vector<16x128xbf16>
    %cst_45 = arith.constant dense<0.000000e+00> : vector<16x128xf32>
    %82 = tpu.matmul %81, %12, %cst_45 {dimension_numbers = #tpu.dot_dimension_numbers<[1], [0], [0], [1], [0, 0, 1, 1], [], []>} : vector<16x128xbf16>, vector<128x128xbf16>, vector<16x128xf32> -> vector<16x128xf32>
    %83 = arith.addf %80, %82 : vector<16x128xf32>
    %cst_46 = arith.constant 0.000000e+00 : f32
    %84 = vector.broadcast %cst_46 : f32 to vector<16x128xf32>
    %85 = arith.maximumf %83, %84 : vector<16x128xf32>
    %86 = arith.subf %85, %73 : vector<16x128xf32>
    %cst_47 = arith.constant 1.000000e-01 : f32
    %87 = vector.broadcast %cst_47 : f32 to vector<16x128xf32>
    %88 = arith.mulf %87, %86 : vector<16x128xf32>
    %89 = arith.addf %73, %88 : vector<16x128xf32>
    %90 = arith.index_cast %c4_i32 : i32 to index
    %c0_48 = arith.constant 0 : index
    %c0_49 = arith.constant 0 : index
    %91 = vector.load %arg9[%90, %c0_48, %c0_49] : memref<16x16x128xf32, #tpu.memory_space<vmem>>, vector<1x16x128xf32>
    %92 = vector.shape_cast %91 : vector<1x16x128xf32> to vector<16x128xf32>
    %93 = vector.shape_cast %89 : vector<16x128xf32> to vector<1x16x128xf32>
    tpu.vector_store %arg9[%90, %c0_48, %c0_49], %93 {strides = array<i32>} : memref<16x16x128xf32, #tpu.memory_space<vmem>>, vector<1x16x128xf32>,
    %c5_i32 = arith.constant 5 : i32
    %94 = arith.index_cast %c5_i32 : i32 to index
    %c0_50 = arith.constant 0 : index
    %c0_51 = arith.constant 0 : index
    %95 = vector.load %arg10[%94, %c0_50, %c0_51] : memref<16x16x128xf32, #tpu.memory_space<vmem>>, vector<1x16x128xf32>
    %96 = vector.shape_cast %95 : vector<1x16x128xf32> to vector<16x128xf32>
    %97 = arith.truncf %89 : vector<16x128xf32> to vector<16x128xbf16>
    %cst_52 = arith.constant dense<0.000000e+00> : vector<16x128xf32>
    %98 = tpu.matmul %97, %12, %cst_52 {dimension_numbers = #tpu.dot_dimension_numbers<[1], [0], [0], [1], [0, 0, 1, 1], [], []>} : vector<16x128xbf16>, vector<128x128xbf16>, vector<16x128xf32> -> vector<16x128xf32>
    %99 = arith.addf %96, %98 : vector<16x128xf32>
    %cst_53 = arith.constant 0.000000e+00 : f32
    %100 = vector.broadcast %cst_53 : f32 to vector<16x128xf32>
    %101 = arith.maximumf %99, %100 : vector<16x128xf32>
    %102 = arith.subf %101, %89 : vector<16x128xf32>
    %cst_54 = arith.constant 1.000000e-01 : f32
    %103 = vector.broadcast %cst_54 : f32 to vector<16x128xf32>
    %104 = arith.mulf %103, %102 : vector<16x128xf32>
    %105 = arith.addf %89, %104 : vector<16x128xf32>
    %106 = arith.index_cast %c5_i32 : i32 to index
    %c0_55 = arith.constant 0 : index
    %c0_56 = arith.constant 0 : index
    %107 = vector.load %arg9[%106, %c0_55, %c0_56] : memref<16x16x128xf32, #tpu.memory_space<vmem>>, vector<1x16x128xf32>
    %108 = vector.shape_cast %107 : vector<1x16x128xf32> to vector<16x128xf32>
    %109 = vector.shape_cast %105 : vector<16x128xf32> to vector<1x16x128xf32>
    tpu.vector_store %arg9[%106, %c0_55, %c0_56], %109 {strides = array<i32>} : memref<16x16x128xf32, #tpu.memory_space<vmem>>, vector<1x16x128xf32>,
    %c6_i32 = arith.constant 6 : i32
    %110 = arith.index_cast %c6_i32 : i32 to index
    %c0_57 = arith.constant 0 : index
    %c0_58 = arith.constant 0 : index
    %111 = vector.load %arg10[%110, %c0_57, %c0_58] : memref<16x16x128xf32, #tpu.memory_space<vmem>>, vector<1x16x128xf32>
    %112 = vector.shape_cast %111 : vector<1x16x128xf32> to vector<16x128xf32>
    %113 = arith.truncf %105 : vector<16x128xf32> to vector<16x128xbf16>
    %cst_59 = arith.constant dense<0.000000e+00> : vector<16x128xf32>
    %114 = tpu.matmul %113, %12, %cst_59 {dimension_numbers = #tpu.dot_dimension_numbers<[1], [0], [0], [1], [0, 0, 1, 1], [], []>} : vector<16x128xbf16>, vector<128x128xbf16>, vector<16x128xf32> -> vector<16x128xf32>
    %115 = arith.addf %112, %114 : vector<16x128xf32>
    %cst_60 = arith.constant 0.000000e+00 : f32
    %116 = vector.broadcast %cst_60 : f32 to vector<16x128xf32>
    %117 = arith.maximumf %115, %116 : vector<16x128xf32>
    %118 = arith.subf %117, %105 : vector<16x128xf32>
    %cst_61 = arith.constant 1.000000e-01 : f32
    %119 = vector.broadcast %cst_61 : f32 to vector<16x128xf32>
    %120 = arith.mulf %119, %118 : vector<16x128xf32>
    %121 = arith.addf %105, %120 : vector<16x128xf32>
    %122 = arith.index_cast %c6_i32 : i32 to index
    %c0_62 = arith.constant 0 : index
    %c0_63 = arith.constant 0 : index
    %123 = vector.load %arg9[%122, %c0_62, %c0_63] : memref<16x16x128xf32, #tpu.memory_space<vmem>>, vector<1x16x128xf32>
    %124 = vector.shape_cast %123 : vector<1x16x128xf32> to vector<16x128xf32>
    %125 = vector.shape_cast %121 : vector<16x128xf32> to vector<1x16x128xf32>
    tpu.vector_store %arg9[%122, %c0_62, %c0_63], %125 {strides = array<i32>} : memref<16x16x128xf32, #tpu.memory_space<vmem>>, vector<1x16x128xf32>,
    %c7_i32 = arith.constant 7 : i32
    %126 = arith.index_cast %c7_i32 : i32 to index
    %c0_64 = arith.constant 0 : index
    %c0_65 = arith.constant 0 : index
    %127 = vector.load %arg10[%126, %c0_64, %c0_65] : memref<16x16x128xf32, #tpu.memory_space<vmem>>, vector<1x16x128xf32>
    %128 = vector.shape_cast %127 : vector<1x16x128xf32> to vector<16x128xf32>
    %129 = arith.truncf %121 : vector<16x128xf32> to vector<16x128xbf16>
    %cst_66 = arith.constant dense<0.000000e+00> : vector<16x128xf32>
    %130 = tpu.matmul %129, %12, %cst_66 {dimension_numbers = #tpu.dot_dimension_numbers<[1], [0], [0], [1], [0, 0, 1, 1], [], []>} : vector<16x128xbf16>, vector<128x128xbf16>, vector<16x128xf32> -> vector<16x128xf32>
    %131 = arith.addf %128, %130 : vector<16x128xf32>
    %cst_67 = arith.constant 0.000000e+00 : f32
    %132 = vector.broadcast %cst_67 : f32 to vector<16x128xf32>
    %133 = arith.maximumf %131, %132 : vector<16x128xf32>
    %134 = arith.subf %133, %121 : vector<16x128xf32>
    %cst_68 = arith.constant 1.000000e-01 : f32
    %135 = vector.broadcast %cst_68 : f32 to vector<16x128xf32>
    %136 = arith.mulf %135, %134 : vector<16x128xf32>
    %137 = arith.addf %121, %136 : vector<16x128xf32>
    %138 = arith.index_cast %c7_i32 : i32 to index
    %c0_69 = arith.constant 0 : index
    %c0_70 = arith.constant 0 : index
    %139 = vector.load %arg9[%138, %c0_69, %c0_70] : memref<16x16x128xf32, #tpu.memory_space<vmem>>, vector<1x16x128xf32>
    %140 = vector.shape_cast %139 : vector<1x16x128xf32> to vector<16x128xf32>
    %141 = vector.shape_cast %137 : vector<16x128xf32> to vector<1x16x128xf32>
    tpu.vector_store %arg9[%138, %c0_69, %c0_70], %141 {strides = array<i32>} : memref<16x16x128xf32, #tpu.memory_space<vmem>>, vector<1x16x128xf32>,
    %c8_i32 = arith.constant 8 : i32
    %142 = arith.index_cast %c8_i32 : i32 to index
    %c0_71 = arith.constant 0 : index
    %c0_72 = arith.constant 0 : index
    %143 = vector.load %arg10[%142, %c0_71, %c0_72] : memref<16x16x128xf32, #tpu.memory_space<vmem>>, vector<1x16x128xf32>
    %144 = vector.shape_cast %143 : vector<1x16x128xf32> to vector<16x128xf32>
    %145 = arith.truncf %137 : vector<16x128xf32> to vector<16x128xbf16>
    %cst_73 = arith.constant dense<0.000000e+00> : vector<16x128xf32>
    %146 = tpu.matmul %145, %12, %cst_73 {dimension_numbers = #tpu.dot_dimension_numbers<[1], [0], [0], [1], [0, 0, 1, 1], [], []>} : vector<16x128xbf16>, vector<128x128xbf16>, vector<16x128xf32> -> vector<16x128xf32>
    %147 = arith.addf %144, %146 : vector<16x128xf32>
    %cst_74 = arith.constant 0.000000e+00 : f32
    %148 = vector.broadcast %cst_74 : f32 to vector<16x128xf32>
    %149 = arith.maximumf %147, %148 : vector<16x128xf32>
    %150 = arith.subf %149, %137 : vector<16x128xf32>
    %cst_75 = arith.constant 1.000000e-01 : f32
    %151 = vector.broadcast %cst_75 : f32 to vector<16x128xf32>
    %152 = arith.mulf %151, %150 : vector<16x128xf32>
    %153 = arith.addf %137, %152 : vector<16x128xf32>
    %154 = arith.index_cast %c8_i32 : i32 to index
    %c0_76 = arith.constant 0 : index
    %c0_77 = arith.constant 0 : index
    %155 = vector.load %arg9[%154, %c0_76, %c0_77] : memref<16x16x128xf32, #tpu.memory_space<vmem>>, vector<1x16x128xf32>
    %156 = vector.shape_cast %155 : vector<1x16x128xf32> to vector<16x128xf32>
    %157 = vector.shape_cast %153 : vector<16x128xf32> to vector<1x16x128xf32>
    tpu.vector_store %arg9[%154, %c0_76, %c0_77], %157 {strides = array<i32>} : memref<16x16x128xf32, #tpu.memory_space<vmem>>, vector<1x16x128xf32>,
    %c9_i32 = arith.constant 9 : i32
    %158 = arith.index_cast %c9_i32 : i32 to index
    %c0_78 = arith.constant 0 : index
    %c0_79 = arith.constant 0 : index
    %159 = vector.load %arg10[%158, %c0_78, %c0_79] : memref<16x16x128xf32, #tpu.memory_space<vmem>>, vector<1x16x128xf32>
    %160 = vector.shape_cast %159 : vector<1x16x128xf32> to vector<16x128xf32>
    %161 = arith.truncf %153 : vector<16x128xf32> to vector<16x128xbf16>
    %cst_80 = arith.constant dense<0.000000e+00> : vector<16x128xf32>
    %162 = tpu.matmul %161, %12, %cst_80 {dimension_numbers = #tpu.dot_dimension_numbers<[1], [0], [0], [1], [0, 0, 1, 1], [], []>} : vector<16x128xbf16>, vector<128x128xbf16>, vector<16x128xf32> -> vector<16x128xf32>
    %163 = arith.addf %160, %162 : vector<16x128xf32>
    %cst_81 = arith.constant 0.000000e+00 : f32
    %164 = vector.broadcast %cst_81 : f32 to vector<16x128xf32>
    %165 = arith.maximumf %163, %164 : vector<16x128xf32>
    %166 = arith.subf %165, %153 : vector<16x128xf32>
    %cst_82 = arith.constant 1.000000e-01 : f32
    %167 = vector.broadcast %cst_82 : f32 to vector<16x128xf32>
    %168 = arith.mulf %167, %166 : vector<16x128xf32>
    %169 = arith.addf %153, %168 : vector<16x128xf32>
    %170 = arith.index_cast %c9_i32 : i32 to index
    %c0_83 = arith.constant 0 : index
    %c0_84 = arith.constant 0 : index
    %171 = vector.load %arg9[%170, %c0_83, %c0_84] : memref<16x16x128xf32, #tpu.memory_space<vmem>>, vector<1x16x128xf32>
    %172 = vector.shape_cast %171 : vector<1x16x128xf32> to vector<16x128xf32>
    %173 = vector.shape_cast %169 : vector<16x128xf32> to vector<1x16x128xf32>
    tpu.vector_store %arg9[%170, %c0_83, %c0_84], %173 {strides = array<i32>} : memref<16x16x128xf32, #tpu.memory_space<vmem>>, vector<1x16x128xf32>,
    %c10_i32 = arith.constant 10 : i32
    %174 = arith.index_cast %c10_i32 : i32 to index
    %c0_85 = arith.constant 0 : index
    %c0_86 = arith.constant 0 : index
    %175 = vector.load %arg10[%174, %c0_85, %c0_86] : memref<16x16x128xf32, #tpu.memory_space<vmem>>, vector<1x16x128xf32>
    %176 = vector.shape_cast %175 : vector<1x16x128xf32> to vector<16x128xf32>
    %177 = arith.truncf %169 : vector<16x128xf32> to vector<16x128xbf16>
    %cst_87 = arith.constant dense<0.000000e+00> : vector<16x128xf32>
    %178 = tpu.matmul %177, %12, %cst_87 {dimension_numbers = #tpu.dot_dimension_numbers<[1], [0], [0], [1], [0, 0, 1, 1], [], []>} : vector<16x128xbf16>, vector<128x128xbf16>, vector<16x128xf32> -> vector<16x128xf32>
    %179 = arith.addf %176, %178 : vector<16x128xf32>
    %cst_88 = arith.constant 0.000000e+00 : f32
    %180 = vector.broadcast %cst_88 : f32 to vector<16x128xf32>
    %181 = arith.maximumf %179, %180 : vector<16x128xf32>
    %182 = arith.subf %181, %169 : vector<16x128xf32>
    %cst_89 = arith.constant 1.000000e-01 : f32
    %183 = vector.broadcast %cst_89 : f32 to vector<16x128xf32>
    %184 = arith.mulf %183, %182 : vector<16x128xf32>
    %185 = arith.addf %169, %184 : vector<16x128xf32>
    %186 = arith.index_cast %c10_i32 : i32 to index
    %c0_90 = arith.constant 0 : index
    %c0_91 = arith.constant 0 : index
    %187 = vector.load %arg9[%186, %c0_90, %c0_91] : memref<16x16x128xf32, #tpu.memory_space<vmem>>, vector<1x16x128xf32>
    %188 = vector.shape_cast %187 : vector<1x16x128xf32> to vector<16x128xf32>
    %189 = vector.shape_cast %185 : vector<16x128xf32> to vector<1x16x128xf32>
    tpu.vector_store %arg9[%186, %c0_90, %c0_91], %189 {strides = array<i32>} : memref<16x16x128xf32, #tpu.memory_space<vmem>>, vector<1x16x128xf32>,
    %c11_i32 = arith.constant 11 : i32
    %190 = arith.index_cast %c11_i32 : i32 to index
    %c0_92 = arith.constant 0 : index
    %c0_93 = arith.constant 0 : index
    %191 = vector.load %arg10[%190, %c0_92, %c0_93] : memref<16x16x128xf32, #tpu.memory_space<vmem>>, vector<1x16x128xf32>
    %192 = vector.shape_cast %191 : vector<1x16x128xf32> to vector<16x128xf32>
    %193 = arith.truncf %185 : vector<16x128xf32> to vector<16x128xbf16>
    %cst_94 = arith.constant dense<0.000000e+00> : vector<16x128xf32>
    %194 = tpu.matmul %193, %12, %cst_94 {dimension_numbers = #tpu.dot_dimension_numbers<[1], [0], [0], [1], [0, 0, 1, 1], [], []>} : vector<16x128xbf16>, vector<128x128xbf16>, vector<16x128xf32> -> vector<16x128xf32>
    %195 = arith.addf %192, %194 : vector<16x128xf32>
    %cst_95 = arith.constant 0.000000e+00 : f32
    %196 = vector.broadcast %cst_95 : f32 to vector<16x128xf32>
    %197 = arith.maximumf %195, %196 : vector<16x128xf32>
    %198 = arith.subf %197, %185 : vector<16x128xf32>
    %cst_96 = arith.constant 1.000000e-01 : f32
    %199 = vector.broadcast %cst_96 : f32 to vector<16x128xf32>
    %200 = arith.mulf %199, %198 : vector<16x128xf32>
    %201 = arith.addf %185, %200 : vector<16x128xf32>
    %202 = arith.index_cast %c11_i32 : i32 to index
    %c0_97 = arith.constant 0 : index
    %c0_98 = arith.constant 0 : index
    %203 = vector.load %arg9[%202, %c0_97, %c0_98] : memref<16x16x128xf32, #tpu.memory_space<vmem>>, vector<1x16x128xf32>
    %204 = vector.shape_cast %203 : vector<1x16x128xf32> to vector<16x128xf32>
    %205 = vector.shape_cast %201 : vector<16x128xf32> to vector<1x16x128xf32>
    tpu.vector_store %arg9[%202, %c0_97, %c0_98], %205 {strides = array<i32>} : memref<16x16x128xf32, #tpu.memory_space<vmem>>, vector<1x16x128xf32>,
    %c12_i32 = arith.constant 12 : i32
    %206 = arith.index_cast %c12_i32 : i32 to index
    %c0_99 = arith.constant 0 : index
    %c0_100 = arith.constant 0 : index
    %207 = vector.load %arg10[%206, %c0_99, %c0_100] : memref<16x16x128xf32, #tpu.memory_space<vmem>>, vector<1x16x128xf32>
    %208 = vector.shape_cast %207 : vector<1x16x128xf32> to vector<16x128xf32>
    %209 = arith.truncf %201 : vector<16x128xf32> to vector<16x128xbf16>
    %cst_101 = arith.constant dense<0.000000e+00> : vector<16x128xf32>
    %210 = tpu.matmul %209, %12, %cst_101 {dimension_numbers = #tpu.dot_dimension_numbers<[1], [0], [0], [1], [0, 0, 1, 1], [], []>} : vector<16x128xbf16>, vector<128x128xbf16>, vector<16x128xf32> -> vector<16x128xf32>
    %211 = arith.addf %208, %210 : vector<16x128xf32>
    %cst_102 = arith.constant 0.000000e+00 : f32
    %212 = vector.broadcast %cst_102 : f32 to vector<16x128xf32>
    %213 = arith.maximumf %211, %212 : vector<16x128xf32>
    %214 = arith.subf %213, %201 : vector<16x128xf32>
    %cst_103 = arith.constant 1.000000e-01 : f32
    %215 = vector.broadcast %cst_103 : f32 to vector<16x128xf32>
    %216 = arith.mulf %215, %214 : vector<16x128xf32>
    %217 = arith.addf %201, %216 : vector<16x128xf32>
    %218 = arith.index_cast %c12_i32 : i32 to index
    %c0_104 = arith.constant 0 : index
    %c0_105 = arith.constant 0 : index
    %219 = vector.load %arg9[%218, %c0_104, %c0_105] : memref<16x16x128xf32, #tpu.memory_space<vmem>>, vector<1x16x128xf32>
    %220 = vector.shape_cast %219 : vector<1x16x128xf32> to vector<16x128xf32>
    %221 = vector.shape_cast %217 : vector<16x128xf32> to vector<1x16x128xf32>
    tpu.vector_store %arg9[%218, %c0_104, %c0_105], %221 {strides = array<i32>} : memref<16x16x128xf32, #tpu.memory_space<vmem>>, vector<1x16x128xf32>,
    %c13_i32 = arith.constant 13 : i32
    %222 = arith.index_cast %c13_i32 : i32 to index
    %c0_106 = arith.constant 0 : index
    %c0_107 = arith.constant 0 : index
    %223 = vector.load %arg10[%222, %c0_106, %c0_107] : memref<16x16x128xf32, #tpu.memory_space<vmem>>, vector<1x16x128xf32>
    %224 = vector.shape_cast %223 : vector<1x16x128xf32> to vector<16x128xf32>
    %225 = arith.truncf %217 : vector<16x128xf32> to vector<16x128xbf16>
    %cst_108 = arith.constant dense<0.000000e+00> : vector<16x128xf32>
    %226 = tpu.matmul %225, %12, %cst_108 {dimension_numbers = #tpu.dot_dimension_numbers<[1], [0], [0], [1], [0, 0, 1, 1], [], []>} : vector<16x128xbf16>, vector<128x128xbf16>, vector<16x128xf32> -> vector<16x128xf32>
    %227 = arith.addf %224, %226 : vector<16x128xf32>
    %cst_109 = arith.constant 0.000000e+00 : f32
    %228 = vector.broadcast %cst_109 : f32 to vector<16x128xf32>
    %229 = arith.maximumf %227, %228 : vector<16x128xf32>
    %230 = arith.subf %229, %217 : vector<16x128xf32>
    %cst_110 = arith.constant 1.000000e-01 : f32
    %231 = vector.broadcast %cst_110 : f32 to vector<16x128xf32>
    %232 = arith.mulf %231, %230 : vector<16x128xf32>
    %233 = arith.addf %217, %232 : vector<16x128xf32>
    %234 = arith.index_cast %c13_i32 : i32 to index
    %c0_111 = arith.constant 0 : index
    %c0_112 = arith.constant 0 : index
    %235 = vector.load %arg9[%234, %c0_111, %c0_112] : memref<16x16x128xf32, #tpu.memory_space<vmem>>, vector<1x16x128xf32>
    %236 = vector.shape_cast %235 : vector<1x16x128xf32> to vector<16x128xf32>
    %237 = vector.shape_cast %233 : vector<16x128xf32> to vector<1x16x128xf32>
    tpu.vector_store %arg9[%234, %c0_111, %c0_112], %237 {strides = array<i32>} : memref<16x16x128xf32, #tpu.memory_space<vmem>>, vector<1x16x128xf32>,
    %c14_i32 = arith.constant 14 : i32
    %238 = arith.index_cast %c14_i32 : i32 to index
    %c0_113 = arith.constant 0 : index
    %c0_114 = arith.constant 0 : index
    %239 = vector.load %arg10[%238, %c0_113, %c0_114] : memref<16x16x128xf32, #tpu.memory_space<vmem>>, vector<1x16x128xf32>
    %240 = vector.shape_cast %239 : vector<1x16x128xf32> to vector<16x128xf32>
    %241 = arith.truncf %233 : vector<16x128xf32> to vector<16x128xbf16>
    %cst_115 = arith.constant dense<0.000000e+00> : vector<16x128xf32>
    %242 = tpu.matmul %241, %12, %cst_115 {dimension_numbers = #tpu.dot_dimension_numbers<[1], [0], [0], [1], [0, 0, 1, 1], [], []>} : vector<16x128xbf16>, vector<128x128xbf16>, vector<16x128xf32> -> vector<16x128xf32>
    %243 = arith.addf %240, %242 : vector<16x128xf32>
    %cst_116 = arith.constant 0.000000e+00 : f32
    %244 = vector.broadcast %cst_116 : f32 to vector<16x128xf32>
    %245 = arith.maximumf %243, %244 : vector<16x128xf32>
    %246 = arith.subf %245, %233 : vector<16x128xf32>
    %cst_117 = arith.constant 1.000000e-01 : f32
    %247 = vector.broadcast %cst_117 : f32 to vector<16x128xf32>
    %248 = arith.mulf %247, %246 : vector<16x128xf32>
    %249 = arith.addf %233, %248 : vector<16x128xf32>
    %250 = arith.index_cast %c14_i32 : i32 to index
    %c0_118 = arith.constant 0 : index
    %c0_119 = arith.constant 0 : index
    %251 = vector.load %arg9[%250, %c0_118, %c0_119] : memref<16x16x128xf32, #tpu.memory_space<vmem>>, vector<1x16x128xf32>
    %252 = vector.shape_cast %251 : vector<1x16x128xf32> to vector<16x128xf32>
    %253 = vector.shape_cast %249 : vector<16x128xf32> to vector<1x16x128xf32>
    tpu.vector_store %arg9[%250, %c0_118, %c0_119], %253 {strides = array<i32>} : memref<16x16x128xf32, #tpu.memory_space<vmem>>, vector<1x16x128xf32>,
    %c15_i32 = arith.constant 15 : i32
    %254 = arith.index_cast %c15_i32 : i32 to index
    %c0_120 = arith.constant 0 : index
    %c0_121 = arith.constant 0 : index
    %255 = vector.load %arg10[%254, %c0_120, %c0_121] : memref<16x16x128xf32, #tpu.memory_space<vmem>>, vector<1x16x128xf32>
    %256 = vector.shape_cast %255 : vector<1x16x128xf32> to vector<16x128xf32>
    %257 = arith.truncf %249 : vector<16x128xf32> to vector<16x128xbf16>
    %cst_122 = arith.constant dense<0.000000e+00> : vector<16x128xf32>
    %258 = tpu.matmul %257, %12, %cst_122 {dimension_numbers = #tpu.dot_dimension_numbers<[1], [0], [0], [1], [0, 0, 1, 1], [], []>} : vector<16x128xbf16>, vector<128x128xbf16>, vector<16x128xf32> -> vector<16x128xf32>
    %259 = arith.addf %256, %258 : vector<16x128xf32>
    %cst_123 = arith.constant 0.000000e+00 : f32
    %260 = vector.broadcast %cst_123 : f32 to vector<16x128xf32>
    %261 = arith.maximumf %259, %260 : vector<16x128xf32>
    %262 = arith.subf %261, %249 : vector<16x128xf32>
    %cst_124 = arith.constant 1.000000e-01 : f32
    %263 = vector.broadcast %cst_124 : f32 to vector<16x128xf32>
    %264 = arith.mulf %263, %262 : vector<16x128xf32>
    %265 = arith.addf %249, %264 : vector<16x128xf32>
    %266 = arith.index_cast %c15_i32 : i32 to index
    %c0_125 = arith.constant 0 : index
    %c0_126 = arith.constant 0 : index
    %267 = vector.load %arg9[%266, %c0_125, %c0_126] : memref<16x16x128xf32, #tpu.memory_space<vmem>>, vector<1x16x128xf32>
    %268 = vector.shape_cast %267 : vector<1x16x128xf32> to vector<16x128xf32>
    %269 = vector.shape_cast %265 : vector<16x128xf32> to vector<1x16x128xf32>
    tpu.vector_store %arg9[%266, %c0_125, %c0_126], %269 {strides = array<i32>} : memref<16x16x128xf32, #tpu.memory_space<vmem>>, vector<1x16x128xf32>,
    %c16_i32 = arith.constant 16 : i32
    %c0_127 = arith.constant 0 : index
    %c0_128 = arith.constant 0 : index
    %270 = vector.load %arg11[%c0_127, %c0_128] : memref<16x128xf32, #tpu.memory_space<vmem>>, vector<16x128xf32>
    tpu.vector_store %arg11[%c0_127, %c0_128], %265 {strides = array<i32>} : memref<16x128xf32, #tpu.memory_space<vmem>>, vector<16x128xf32>,
    %c0_129 = arith.constant 0 : index
    %c0_130 = arith.constant 0 : index
    %c0_131 = arith.constant 0 : index
    %271 = vector.load %arg9[%c0_129, %c0_130, %c0_131] : memref<16x16x128xf32, #tpu.memory_space<vmem>>, vector<16x16x128xf32>
    %272 = vector.shape_cast %271 : vector<16x16x128xf32> to vector<256x128xf32>
    %273 = arith.truncf %272 : vector<256x128xf32> to vector<256x128xbf16>
    %c0_132 = arith.constant 0 : index
    %c0_133 = arith.constant 0 : index
    %274 = vector.load %arg6[%c0_132, %c0_133] : memref<128x128xbf16, #tpu.memory_space<vmem>>, vector<128x128xbf16>
    %cst_134 = arith.constant dense<0.000000e+00> : vector<256x128xf32>
    %275 = tpu.matmul %273, %274, %cst_134 {dimension_numbers = #tpu.dot_dimension_numbers<[1], [0], [0], [1], [0, 0, 1, 1], [], []>} : vector<256x128xbf16>, vector<128x128xbf16>, vector<256x128xf32> -> vector<256x128xf32>
    %c0_135 = arith.constant 0 : index
    %c0_136 = arith.constant 0 : index
    %276 = vector.load %arg7[%c0_135, %c0_136] : memref<1x128xf32, #tpu.memory_space<vmem>>, vector<1x128xf32>
    %277 = vector.broadcast %276 : vector<1x128xf32> to vector<256x128xf32>
    %278 = arith.addf %275, %277 : vector<256x128xf32>
    %279 = vector.shape_cast %278 : vector<256x128xf32> to vector<16x16x128xf32>
    %c0_137 = arith.constant 0 : index
    %c0_138 = arith.constant 0 : index
    %c0_139 = arith.constant 0 : index
    %280 = vector.load %arg8[%c0_137, %c0_138, %c0_139] : memref<16x16x128xf32, #tpu.memory_space<vmem>>, vector<16x16x128xf32>
    tpu.vector_store %arg8[%c0_137, %c0_138, %c0_139], %279 {strides = array<i32>} : memref<16x16x128xf32, #tpu.memory_space<vmem>>, vector<16x16x128xf32>,
    return
  }
  func.func @transform_0(%arg0: i32, %arg1: i32) -> (i32, i32, i32) {
    %c0_i32 = arith.constant 0 : i32
    %c0_i32_0 = arith.constant 0 : i32
    return %arg1, %arg0, %c0_i32 : i32, i32, i32
  }
  func.func @transform_1(%arg0: i32, %arg1: i32) -> (i32, i32) {
    %c0_i32 = arith.constant 0 : i32
    %c0_i32_0 = arith.constant 0 : i32
    %c0_i32_1 = arith.constant 0 : i32
    return %c0_i32, %c0_i32_0 : i32, i32
  }
  func.func @transform_2(%arg0: i32, %arg1: i32) -> (i32, i32) {
    %c0_i32 = arith.constant 0 : i32
    %c0_i32_0 = arith.constant 0 : i32
    %c0_i32_1 = arith.constant 0 : i32
    return %c0_i32, %c0_i32_0 : i32, i32
  }
  func.func @transform_3(%arg0: i32, %arg1: i32) -> (i32, i32) {
    %c0_i32 = arith.constant 0 : i32
    %c0_i32_0 = arith.constant 0 : i32
    %c0_i32_1 = arith.constant 0 : i32
    return %c0_i32, %c0_i32_0 : i32, i32
  }
  func.func @transform_4(%arg0: i32, %arg1: i32) -> (i32, i32) {
    %c0_i32 = arith.constant 0 : i32
    %c0_i32_0 = arith.constant 0 : i32
    %c0_i32_1 = arith.constant 0 : i32
    return %c0_i32, %c0_i32_0 : i32, i32
  }
  func.func @transform_5(%arg0: i32, %arg1: i32) -> (i32, i32) {
    %c0_i32 = arith.constant 0 : i32
    %c0_i32_0 = arith.constant 0 : i32
    %c0_i32_1 = arith.constant 0 : i32
    return %c0_i32, %c0_i32_0 : i32, i32
  }
  func.func @transform_6(%arg0: i32, %arg1: i32) -> (i32, i32, i32) {
    %c0_i32 = arith.constant 0 : i32
    %c0_i32_0 = arith.constant 0 : i32
    return %arg1, %arg0, %c0_i32 : i32, i32, i32
  }
  func.func @transform_7(%arg0: i32, %arg1: i32) -> (i32, i32, i32) {
    %c0_i32 = arith.constant 0 : i32
    %c0_i32_0 = arith.constant 0 : i32
    return %arg1, %arg0, %c0_i32 : i32, i32, i32
  }
}

module attributes {stable_mosaic.version = 11 : i64} {
  func.func @kernel(%arg0: i32, %arg1: i32, %arg2: memref<16x16x128xbf16, #tpu.memory_space<vmem>>, %arg3: memref<128x128xbf16, #tpu.memory_space<vmem>>, %arg4: memref<1x128xf32, #tpu.memory_space<vmem>>, %arg5: memref<128x128xbf16, #tpu.memory_space<vmem>>, %arg6: memref<128x128xbf16, #tpu.memory_space<vmem>>, %arg7: memref<1x128xf32, #tpu.memory_space<vmem>>, %arg8: memref<16x16x128xf32, #tpu.memory_space<vmem>>, %arg9: memref<16x16x128xf32, #tpu.memory_space<vmem>>, %arg10: memref<16x16x128xf32, #tpu.memory_space<vmem>>, %arg11: memref<16x128xf32, #tpu.memory_space<vmem>>) attributes {dimension_semantics = [#tpu.dimension_semantics<parallel>, #tpu.dimension_semantics<arbitrary>], iteration_bounds = array<i64: 1, 1>, scalar_prefetch = 0 : i64, scratch_operands = 2 : i64, tpu.core_type = #tpu.core_type<tc>, window_params = [{transform_indices = @transform_0, window_bounds = array<i64: 16, 16, 128>}, {pipeline_mode = #tpu.pipeline_mode<synchronous>, transform_indices = @transform_1, window_bounds = array<i64: 128, 128>}, {pipeline_mode = #tpu.pipeline_mode<synchronous>, transform_indices = @transform_2, window_bounds = array<i64: 1, 128>}, {pipeline_mode = #tpu.pipeline_mode<synchronous>, transform_indices = @transform_3, window_bounds = array<i64: 128, 128>}, {pipeline_mode = #tpu.pipeline_mode<synchronous>, transform_indices = @transform_4, window_bounds = array<i64: 128, 128>}, {pipeline_mode = #tpu.pipeline_mode<synchronous>, transform_indices = @transform_5, window_bounds = array<i64: 1, 128>}, {transform_indices = @transform_6, window_bounds = array<i64: 16, 16, 128>}, {transform_indices = @transform_7, window_bounds = array<i64: 16, 16, 128>}]} {
    %c0_i32 = arith.constant 0 : i32
    %0 = arith.cmpi eq, %arg1, %c0_i32 : i32
    %1 = arith.extui %0 : i1 to i32
    %c0_i32_0 = arith.constant 0 : i32
    %2 = arith.cmpi ne, %1, %c0_i32_0 : i32
    scf.if %2 {
      %cst_140 = arith.constant 0.000000e+00 : f32
      %281 = vector.broadcast %cst_140 : f32 to vector<16x128xf32>
      %c0_141 = arith.constant 0 : index
      %c0_142 = arith.constant 0 : index
      %282 = vector.load %arg11[%c0_141, %c0_142] : memref<16x128xf32, #tpu.memory_space<vmem>>, vector<16x128xf32>
      tpu.vector_store %arg11[%c0_141, %c0_142], %281 {strides = array<i32>} : memref<16x128xf32, #tpu.memory_space<vmem>>, vector<16x128xf32>,
    } else {
    }
    %c0 = arith.constant 0 : index
    %c0_1 = arith.constant 0 : index
    %c0_2 = arith.constant 0 : index
    %3 = vector.load %arg2[%c0, %c0_1, %c0_2] : memref<16x16x128xbf16, #tpu.memory_space<vmem>>, vector<16x16x128xbf16>
    %4 = vector.shape_cast %3 : vector<16x16x128xbf16> to vector<256x128xbf16>
    %c0_3 = arith.constant 0 : index
    %c0_4 = arith.constant 0 : index
    %5 = vector.load %arg3[%c0_3, %c0_4] : memref<128x128xbf16, #tpu.memory_space<vmem>>, vector<128x128xbf16>
    %cst = arith.constant dense<0.000000e+00> : vector<256x128xf32>
    %6 = tpu.matmul %4, %5, %cst {dimension_numbers = #tpu.dot_dimension_numbers<[1], [0], [0], [1], [0, 0, 1, 1], [], []>} : vector<256x128xbf16>, vector<128x128xbf16>, vector<256x128xf32> -> vector<256x128xf32>
    %c0_5 = arith.constant 0 : index
    %c0_6 = arith.constant 0 : index
    %7 = vector.load %arg4[%c0_5, %c0_6] : memref<1x128xf32, #tpu.memory_space<vmem>>, vector<1x128xf32>
    %8 = vector.broadcast %7 : vector<1x128xf32> to vector<256x128xf32>
    %9 = arith.addf %6, %8 : vector<256x128xf32>
    %10 = vector.shape_cast %9 : vector<256x128xf32> to vector<16x16x128xf32>
    %c0_7 = arith.constant 0 : index
    %c0_8 = arith.constant 0 : index
    %c0_9 = arith.constant 0 : index
    %11 = vector.load %arg10[%c0_7, %c0_8, %c0_9] : memref<16x16x128xf32, #tpu.memory_space<vmem>>, vector<16x16x128xf32>
    tpu.vector_store %arg10[%c0_7, %c0_8, %c0_9], %10 {strides = array<i32>} : memref<16x16x128xf32, #tpu.memory_space<vmem>>, vector<16x16x128xf32>,
    %c0_10 = arith.constant 0 : index
    %c0_11 = arith.constant 0 : index
    %12 = vector.load %arg5[%c0_10, %c0_11] : memref<128x128xbf16, #tpu.memory_space<vmem>>, vector<128x128xbf16>
    %c0_12 = arith.constant 0 : index
    %c0_13 = arith.constant 0 : index
    %13 = vector.load %arg11[%c0_12, %c0_13] : memref<16x128xf32, #tpu.memory_space<vmem>>, vector<16x128xf32>
    %c0_i32_14 = arith.constant 0 : i32
    %14 = arith.index_cast %c0_i32_14 : i32 to index
    %c0_15 = arith.constant 0 : index
    %c0_16 = arith.constant 0 : index
    %15 = vector.load %arg10[%14, %c0_15, %c0_16] : memref<16x16x128xf32, #tpu.memory_space<vmem>>, vector<1x16x128xf32>
    %16 = vector.shape_cast %15 : vector<1x16x128xf32> to vector<16x128xf32>
    %17 = arith.truncf %13 : vector<16x128xf32> to vector<16x128xbf16>
    %cst_17 = arith.constant dense<0.000000e+00> : vector<16x128xf32>
    %18 = tpu.matmul %17, %12, %cst_17 {dimension_numbers = #tpu.dot_dimension_numbers<[1], [0], [0], [1], [0, 0, 1, 1], [], []>} : vector<16x128xbf16>, vector<128x128xbf16>, vector<16x128xf32> -> vector<16x128xf32>
    %19 = arith.addf %16, %18 : vector<16x128xf32>
    %cst_18 = arith.constant 0.000000e+00 : f32
    %20 = vector.broadcast %cst_18 : f32 to vector<16x128xf32>
    %21 = arith.maximumf %19, %20 : vector<16x128xf32>
    %22 = arith.subf %21, %13 : vector<16x128xf32>
    %cst_19 = arith.constant 1.000000e-01 : f32
    %23 = vector.broadcast %cst_19 : f32 to vector<16x128xf32>
    %24 = arith.mulf %23, %22 : vector<16x128xf32>
    %25 = arith.addf %13, %24 : vector<16x128xf32>
    %26 = arith.index_cast %c0_i32_14 : i32 to index
    %c0_20 = arith.constant 0 : index
    %c0_21 = arith.constant 0 : index
    %27 = vector.load %arg9[%26, %c0_20, %c0_21] : memref<16x16x128xf32, #tpu.memory_space<vmem>>, vector<1x16x128xf32>
    %28 = vector.shape_cast %27 : vector<1x16x128xf32> to vector<16x128xf32>
    %29 = vector.shape_cast %25 : vector<16x128xf32> to vector<1x16x128xf32>
    tpu.vector_store %arg9[%26, %c0_20, %c0_21], %29 {strides = array<i32>} : memref<16x16x128xf32, #tpu.memory_space<vmem>>, vector<1x16x128xf32>,
    %c1_i32 = arith.constant 1 : i32
    %30 = arith.index_cast %c1_i32 : i32 to index
    %c0_22 = arith.constant 0 : index
    %c0_23 = arith.constant 0 : index
    %31 = vector.load %arg10[%30, %c0_22, %c0_23] : memref<16x16x128xf32, #tpu.memory_space<vmem>>, vector<1x16x128xf32>
    %32 = vector.shape_cast %31 : vector<1x16x128xf32> to vector<16x128xf32>
    %33 = arith.truncf %25 : vector<16x128xf32> to vector<16x128xbf16>
    %cst_24 = arith.constant dense<0.000000e+00> : vector<16x128xf32>
    %34 = tpu.matmul %33, %12, %cst_24 {dimension_numbers = #tpu.dot_dimension_numbers<[1], [0], [0], [1], [0, 0, 1, 1], [], []>} : vector<16x128xbf16>, vector<128x128xbf16>, vector<16x128xf32> -> vector<16x128xf32>
    %35 = arith.addf %32, %34 : vector<16x128xf32>
    %cst_25 = arith.constant 0.000000e+00 : f32
    %36 = vector.broadcast %cst_25 : f32 to vector<16x128xf32>
    %37 = arith.maximumf %35, %36 : vector<16x128xf32>
    %38 = arith.subf %37, %25 : vector<16x128xf32>
    %cst_26 = arith.constant 1.000000e-01 : f32
    %39 = vector.broadcast %cst_26 : f32 to vector<16x128xf32>
    %40 = arith.mulf %39, %38 : vector<16x128xf32>
    %41 = arith.addf %25, %40 : vector<16x128xf32>
    %42 = arith.index_cast %c1_i32 : i32 to index
    %c0_27 = arith.constant 0 : index
    %c0_28 = arith.constant 0 : index
    %43 = vector.load %arg9[%42, %c0_27, %c0_28] : memref<16x16x128xf32, #tpu.memory_space<vmem>>, vector<1x16x128xf32>
    %44 = vector.shape_cast %43 : vector<1x16x128xf32> to vector<16x128xf32>
    %45 = vector.shape_cast %41 : vector<16x128xf32> to vector<1x16x128xf32>
    tpu.vector_store %arg9[%42, %c0_27, %c0_28], %45 {strides = array<i32>} : memref<16x16x128xf32, #tpu.memory_space<vmem>>, vector<1x16x128xf32>,
    %c2_i32 = arith.constant 2 : i32
    %46 = arith.index_cast %c2_i32 : i32 to index
    %c0_29 = arith.constant 0 : index
    %c0_30 = arith.constant 0 : index
    %47 = vector.load %arg10[%46, %c0_29, %c0_30] : memref<16x16x128xf32, #tpu.memory_space<vmem>>, vector<1x16x128xf32>
    %48 = vector.shape_cast %47 : vector<1x16x128xf32> to vector<16x128xf32>
    %49 = arith.truncf %41 : vector<16x128xf32> to vector<16x128xbf16>
    %cst_31 = arith.constant dense<0.000000e+00> : vector<16x128xf32>
    %50 = tpu.matmul %49, %12, %cst_31 {dimension_numbers = #tpu.dot_dimension_numbers<[1], [0], [0], [1], [0, 0, 1, 1], [], []>} : vector<16x128xbf16>, vector<128x128xbf16>, vector<16x128xf32> -> vector<16x128xf32>
    %51 = arith.addf %48, %50 : vector<16x128xf32>
    %cst_32 = arith.constant 0.000000e+00 : f32
    %52 = vector.broadcast %cst_32 : f32 to vector<16x128xf32>
    %53 = arith.maximumf %51, %52 : vector<16x128xf32>
    %54 = arith.subf %53, %41 : vector<16x128xf32>
    %cst_33 = arith.constant 1.000000e-01 : f32
    %55 = vector.broadcast %cst_33 : f32 to vector<16x128xf32>
    %56 = arith.mulf %55, %54 : vector<16x128xf32>
    %57 = arith.addf %41, %56 : vector<16x128xf32>
    %58 = arith.index_cast %c2_i32 : i32 to index
    %c0_34 = arith.constant 0 : index
    %c0_35 = arith.constant 0 : index
    %59 = vector.load %arg9[%58, %c0_34, %c0_35] : memref<16x16x128xf32, #tpu.memory_space<vmem>>, vector<1x16x128xf32>
    %60 = vector.shape_cast %59 : vector<1x16x128xf32> to vector<16x128xf32>
    %61 = vector.shape_cast %57 : vector<16x128xf32> to vector<1x16x128xf32>
    tpu.vector_store %arg9[%58, %c0_34, %c0_35], %61 {strides = array<i32>} : memref<16x16x128xf32, #tpu.memory_space<vmem>>, vector<1x16x128xf32>,
    %c3_i32 = arith.constant 3 : i32
    %62 = arith.index_cast %c3_i32 : i32 to index
    %c0_36 = arith.constant 0 : index
    %c0_37 = arith.constant 0 : index
    %63 = vector.load %arg10[%62, %c0_36, %c0_37] : memref<16x16x128xf32, #tpu.memory_space<vmem>>, vector<1x16x128xf32>
    %64 = vector.shape_cast %63 : vector<1x16x128xf32> to vector<16x128xf32>
    %65 = arith.truncf %57 : vector<16x128xf32> to vector<16x128xbf16>
    %cst_38 = arith.constant dense<0.000000e+00> : vector<16x128xf32>
    %66 = tpu.matmul %65, %12, %cst_38 {dimension_numbers = #tpu.dot_dimension_numbers<[1], [0], [0], [1], [0, 0, 1, 1], [], []>} : vector<16x128xbf16>, vector<128x128xbf16>, vector<16x128xf32> -> vector<16x128xf32>
    %67 = arith.addf %64, %66 : vector<16x128xf32>
    %cst_39 = arith.constant 0.000000e+00 : f32
    %68 = vector.broadcast %cst_39 : f32 to vector<16x128xf32>
    %69 = arith.maximumf %67, %68 : vector<16x128xf32>
    %70 = arith.subf %69, %57 : vector<16x128xf32>
    %cst_40 = arith.constant 1.000000e-01 : f32
    %71 = vector.broadcast %cst_40 : f32 to vector<16x128xf32>
    %72 = arith.mulf %71, %70 : vector<16x128xf32>
    %73 = arith.addf %57, %72 : vector<16x128xf32>
    %74 = arith.index_cast %c3_i32 : i32 to index
    %c0_41 = arith.constant 0 : index
    %c0_42 = arith.constant 0 : index
    %75 = vector.load %arg9[%74, %c0_41, %c0_42] : memref<16x16x128xf32, #tpu.memory_space<vmem>>, vector<1x16x128xf32>
    %76 = vector.shape_cast %75 : vector<1x16x128xf32> to vector<16x128xf32>
    %77 = vector.shape_cast %73 : vector<16x128xf32> to vector<1x16x128xf32>
    tpu.vector_store %arg9[%74, %c0_41, %c0_42], %77 {strides = array<i32>} : memref<16x16x128xf32, #tpu.memory_space<vmem>>, vector<1x16x128xf32>,
    %c4_i32 = arith.constant 4 : i32
    %78 = arith.index_cast %c4_i32 : i32 to index
    %c0_43 = arith.constant 0 : index
    %c0_44 = arith.constant 0 : index
    %79 = vector.load %arg10[%78, %c0_43, %c0_44] : memref<16x16x128xf32, #tpu.memory_space<vmem>>, vector<1x16x128xf32>
    %80 = vector.shape_cast %79 : vector<1x16x128xf32> to vector<16x128xf32>
    %81 = arith.truncf %73 : vector<16x128xf32> to vector<16x128xbf16>
    %cst_45 = arith.constant dense<0.000000e+00> : vector<16x128xf32>
    %82 = tpu.matmul %81, %12, %cst_45 {dimension_numbers = #tpu.dot_dimension_numbers<[1], [0], [0], [1], [0, 0, 1, 1], [], []>} : vector<16x128xbf16>, vector<128x128xbf16>, vector<16x128xf32> -> vector<16x128xf32>
    %83 = arith.addf %80, %82 : vector<16x128xf32>
    %cst_46 = arith.constant 0.000000e+00 : f32
    %84 = vector.broadcast %cst_46 : f32 to vector<16x128xf32>
    %85 = arith.maximumf %83, %84 : vector<16x128xf32>
    %86 = arith.subf %85, %73 : vector<16x128xf32>
    %cst_47 = arith.constant 1.000000e-01 : f32
    %87 = vector.broadcast %cst_47 : f32 to vector<16x128xf32>
    %88 = arith.mulf %87, %86 : vector<16x128xf32>
    %89 = arith.addf %73, %88 : vector<16x128xf32>
    %90 = arith.index_cast %c4_i32 : i32 to index
    %c0_48 = arith.constant 0 : index
    %c0_49 = arith.constant 0 : index
    %91 = vector.load %arg9[%90, %c0_48, %c0_49] : memref<16x16x128xf32, #tpu.memory_space<vmem>>, vector<1x16x128xf32>
    %92 = vector.shape_cast %91 : vector<1x16x128xf32> to vector<16x128xf32>
    %93 = vector.shape_cast %89 : vector<16x128xf32> to vector<1x16x128xf32>
    tpu.vector_store %arg9[%90, %c0_48, %c0_49], %93 {strides = array<i32>} : memref<16x16x128xf32, #tpu.memory_space<vmem>>, vector<1x16x128xf32>,
    %c5_i32 = arith.constant 5 : i32
    %94 = arith.index_cast %c5_i32 : i32 to index
    %c0_50 = arith.constant 0 : index
    %c0_51 = arith.constant 0 : index
    %95 = vector.load %arg10[%94, %c0_50, %c0_51] : memref<16x16x128xf32, #tpu.memory_space<vmem>>, vector<1x16x128xf32>
    %96 = vector.shape_cast %95 : vector<1x16x128xf32> to vector<16x128xf32>
    %97 = arith.truncf %89 : vector<16x128xf32> to vector<16x128xbf16>
    %cst_52 = arith.constant dense<0.000000e+00> : vector<16x128xf32>
    %98 = tpu.matmul %97, %12, %cst_52 {dimension_numbers = #tpu.dot_dimension_numbers<[1], [0], [0], [1], [0, 0, 1, 1], [], []>} : vector<16x128xbf16>, vector<128x128xbf16>, vector<16x128xf32> -> vector<16x128xf32>
    %99 = arith.addf %96, %98 : vector<16x128xf32>
    %cst_53 = arith.constant 0.000000e+00 : f32
    %100 = vector.broadcast %cst_53 : f32 to vector<16x128xf32>
    %101 = arith.maximumf %99, %100 : vector<16x128xf32>
    %102 = arith.subf %101, %89 : vector<16x128xf32>
    %cst_54 = arith.constant 1.000000e-01 : f32
    %103 = vector.broadcast %cst_54 : f32 to vector<16x128xf32>
    %104 = arith.mulf %103, %102 : vector<16x128xf32>
    %105 = arith.addf %89, %104 : vector<16x128xf32>
    %106 = arith.index_cast %c5_i32 : i32 to index
    %c0_55 = arith.constant 0 : index
    %c0_56 = arith.constant 0 : index
    %107 = vector.load %arg9[%106, %c0_55, %c0_56] : memref<16x16x128xf32, #tpu.memory_space<vmem>>, vector<1x16x128xf32>
    %108 = vector.shape_cast %107 : vector<1x16x128xf32> to vector<16x128xf32>
    %109 = vector.shape_cast %105 : vector<16x128xf32> to vector<1x16x128xf32>
    tpu.vector_store %arg9[%106, %c0_55, %c0_56], %109 {strides = array<i32>} : memref<16x16x128xf32, #tpu.memory_space<vmem>>, vector<1x16x128xf32>,
    %c6_i32 = arith.constant 6 : i32
    %110 = arith.index_cast %c6_i32 : i32 to index
    %c0_57 = arith.constant 0 : index
    %c0_58 = arith.constant 0 : index
    %111 = vector.load %arg10[%110, %c0_57, %c0_58] : memref<16x16x128xf32, #tpu.memory_space<vmem>>, vector<1x16x128xf32>
    %112 = vector.shape_cast %111 : vector<1x16x128xf32> to vector<16x128xf32>
    %113 = arith.truncf %105 : vector<16x128xf32> to vector<16x128xbf16>
    %cst_59 = arith.constant dense<0.000000e+00> : vector<16x128xf32>
    %114 = tpu.matmul %113, %12, %cst_59 {dimension_numbers = #tpu.dot_dimension_numbers<[1], [0], [0], [1], [0, 0, 1, 1], [], []>} : vector<16x128xbf16>, vector<128x128xbf16>, vector<16x128xf32> -> vector<16x128xf32>
    %115 = arith.addf %112, %114 : vector<16x128xf32>
    %cst_60 = arith.constant 0.000000e+00 : f32
    %116 = vector.broadcast %cst_60 : f32 to vector<16x128xf32>
    %117 = arith.maximumf %115, %116 : vector<16x128xf32>
    %118 = arith.subf %117, %105 : vector<16x128xf32>
    %cst_61 = arith.constant 1.000000e-01 : f32
    %119 = vector.broadcast %cst_61 : f32 to vector<16x128xf32>
    %120 = arith.mulf %119, %118 : vector<16x128xf32>
    %121 = arith.addf %105, %120 : vector<16x128xf32>
    %122 = arith.index_cast %c6_i32 : i32 to index
    %c0_62 = arith.constant 0 : index
    %c0_63 = arith.constant 0 : index
    %123 = vector.load %arg9[%122, %c0_62, %c0_63] : memref<16x16x128xf32, #tpu.memory_space<vmem>>, vector<1x16x128xf32>
    %124 = vector.shape_cast %123 : vector<1x16x128xf32> to vector<16x128xf32>
    %125 = vector.shape_cast %121 : vector<16x128xf32> to vector<1x16x128xf32>
    tpu.vector_store %arg9[%122, %c0_62, %c0_63], %125 {strides = array<i32>} : memref<16x16x128xf32, #tpu.memory_space<vmem>>, vector<1x16x128xf32>,
    %c7_i32 = arith.constant 7 : i32
    %126 = arith.index_cast %c7_i32 : i32 to index
    %c0_64 = arith.constant 0 : index
    %c0_65 = arith.constant 0 : index
    %127 = vector.load %arg10[%126, %c0_64, %c0_65] : memref<16x16x128xf32, #tpu.memory_space<vmem>>, vector<1x16x128xf32>
    %128 = vector.shape_cast %127 : vector<1x16x128xf32> to vector<16x128xf32>
    %129 = arith.truncf %121 : vector<16x128xf32> to vector<16x128xbf16>
    %cst_66 = arith.constant dense<0.000000e+00> : vector<16x128xf32>
    %130 = tpu.matmul %129, %12, %cst_66 {dimension_numbers = #tpu.dot_dimension_numbers<[1], [0], [0], [1], [0, 0, 1, 1], [], []>} : vector<16x128xbf16>, vector<128x128xbf16>, vector<16x128xf32> -> vector<16x128xf32>
    %131 = arith.addf %128, %130 : vector<16x128xf32>
    %cst_67 = arith.constant 0.000000e+00 : f32
    %132 = vector.broadcast %cst_67 : f32 to vector<16x128xf32>
    %133 = arith.maximumf %131, %132 : vector<16x128xf32>
    %134 = arith.subf %133, %121 : vector<16x128xf32>
    %cst_68 = arith.constant 1.000000e-01 : f32
    %135 = vector.broadcast %cst_68 : f32 to vector<16x128xf32>
    %136 = arith.mulf %135, %134 : vector<16x128xf32>
    %137 = arith.addf %121, %136 : vector<16x128xf32>
    %138 = arith.index_cast %c7_i32 : i32 to index
    %c0_69 = arith.constant 0 : index
    %c0_70 = arith.constant 0 : index
    %139 = vector.load %arg9[%138, %c0_69, %c0_70] : memref<16x16x128xf32, #tpu.memory_space<vmem>>, vector<1x16x128xf32>
    %140 = vector.shape_cast %139 : vector<1x16x128xf32> to vector<16x128xf32>
    %141 = vector.shape_cast %137 : vector<16x128xf32> to vector<1x16x128xf32>
    tpu.vector_store %arg9[%138, %c0_69, %c0_70], %141 {strides = array<i32>} : memref<16x16x128xf32, #tpu.memory_space<vmem>>, vector<1x16x128xf32>,
    %c8_i32 = arith.constant 8 : i32
    %142 = arith.index_cast %c8_i32 : i32 to index
    %c0_71 = arith.constant 0 : index
    %c0_72 = arith.constant 0 : index
    %143 = vector.load %arg10[%142, %c0_71, %c0_72] : memref<16x16x128xf32, #tpu.memory_space<vmem>>, vector<1x16x128xf32>
    %144 = vector.shape_cast %143 : vector<1x16x128xf32> to vector<16x128xf32>
    %145 = arith.truncf %137 : vector<16x128xf32> to vector<16x128xbf16>
    %cst_73 = arith.constant dense<0.000000e+00> : vector<16x128xf32>
    %146 = tpu.matmul %145, %12, %cst_73 {dimension_numbers = #tpu.dot_dimension_numbers<[1], [0], [0], [1], [0, 0, 1, 1], [], []>} : vector<16x128xbf16>, vector<128x128xbf16>, vector<16x128xf32> -> vector<16x128xf32>
    %147 = arith.addf %144, %146 : vector<16x128xf32>
    %cst_74 = arith.constant 0.000000e+00 : f32
    %148 = vector.broadcast %cst_74 : f32 to vector<16x128xf32>
    %149 = arith.maximumf %147, %148 : vector<16x128xf32>
    %150 = arith.subf %149, %137 : vector<16x128xf32>
    %cst_75 = arith.constant 1.000000e-01 : f32
    %151 = vector.broadcast %cst_75 : f32 to vector<16x128xf32>
    %152 = arith.mulf %151, %150 : vector<16x128xf32>
    %153 = arith.addf %137, %152 : vector<16x128xf32>
    %154 = arith.index_cast %c8_i32 : i32 to index
    %c0_76 = arith.constant 0 : index
    %c0_77 = arith.constant 0 : index
    %155 = vector.load %arg9[%154, %c0_76, %c0_77] : memref<16x16x128xf32, #tpu.memory_space<vmem>>, vector<1x16x128xf32>
    %156 = vector.shape_cast %155 : vector<1x16x128xf32> to vector<16x128xf32>
    %157 = vector.shape_cast %153 : vector<16x128xf32> to vector<1x16x128xf32>
    tpu.vector_store %arg9[%154, %c0_76, %c0_77], %157 {strides = array<i32>} : memref<16x16x128xf32, #tpu.memory_space<vmem>>, vector<1x16x128xf32>,
    %c9_i32 = arith.constant 9 : i32
    %158 = arith.index_cast %c9_i32 : i32 to index
    %c0_78 = arith.constant 0 : index
    %c0_79 = arith.constant 0 : index
    %159 = vector.load %arg10[%158, %c0_78, %c0_79] : memref<16x16x128xf32, #tpu.memory_space<vmem>>, vector<1x16x128xf32>
    %160 = vector.shape_cast %159 : vector<1x16x128xf32> to vector<16x128xf32>
    %161 = arith.truncf %153 : vector<16x128xf32> to vector<16x128xbf16>
    %cst_80 = arith.constant dense<0.000000e+00> : vector<16x128xf32>
    %162 = tpu.matmul %161, %12, %cst_80 {dimension_numbers = #tpu.dot_dimension_numbers<[1], [0], [0], [1], [0, 0, 1, 1], [], []>} : vector<16x128xbf16>, vector<128x128xbf16>, vector<16x128xf32> -> vector<16x128xf32>
    %163 = arith.addf %160, %162 : vector<16x128xf32>
    %cst_81 = arith.constant 0.000000e+00 : f32
    %164 = vector.broadcast %cst_81 : f32 to vector<16x128xf32>
    %165 = arith.maximumf %163, %164 : vector<16x128xf32>
    %166 = arith.subf %165, %153 : vector<16x128xf32>
    %cst_82 = arith.constant 1.000000e-01 : f32
    %167 = vector.broadcast %cst_82 : f32 to vector<16x128xf32>
    %168 = arith.mulf %167, %166 : vector<16x128xf32>
    %169 = arith.addf %153, %168 : vector<16x128xf32>
    %170 = arith.index_cast %c9_i32 : i32 to index
    %c0_83 = arith.constant 0 : index
    %c0_84 = arith.constant 0 : index
    %171 = vector.load %arg9[%170, %c0_83, %c0_84] : memref<16x16x128xf32, #tpu.memory_space<vmem>>, vector<1x16x128xf32>
    %172 = vector.shape_cast %171 : vector<1x16x128xf32> to vector<16x128xf32>
    %173 = vector.shape_cast %169 : vector<16x128xf32> to vector<1x16x128xf32>
    tpu.vector_store %arg9[%170, %c0_83, %c0_84], %173 {strides = array<i32>} : memref<16x16x128xf32, #tpu.memory_space<vmem>>, vector<1x16x128xf32>,
    %c10_i32 = arith.constant 10 : i32
    %174 = arith.index_cast %c10_i32 : i32 to index
    %c0_85 = arith.constant 0 : index
    %c0_86 = arith.constant 0 : index
    %175 = vector.load %arg10[%174, %c0_85, %c0_86] : memref<16x16x128xf32, #tpu.memory_space<vmem>>, vector<1x16x128xf32>
    %176 = vector.shape_cast %175 : vector<1x16x128xf32> to vector<16x128xf32>
    %177 = arith.truncf %169 : vector<16x128xf32> to vector<16x128xbf16>
    %cst_87 = arith.constant dense<0.000000e+00> : vector<16x128xf32>
    %178 = tpu.matmul %177, %12, %cst_87 {dimension_numbers = #tpu.dot_dimension_numbers<[1], [0], [0], [1], [0, 0, 1, 1], [], []>} : vector<16x128xbf16>, vector<128x128xbf16>, vector<16x128xf32> -> vector<16x128xf32>
    %179 = arith.addf %176, %178 : vector<16x128xf32>
    %cst_88 = arith.constant 0.000000e+00 : f32
    %180 = vector.broadcast %cst_88 : f32 to vector<16x128xf32>
    %181 = arith.maximumf %179, %180 : vector<16x128xf32>
    %182 = arith.subf %181, %169 : vector<16x128xf32>
    %cst_89 = arith.constant 1.000000e-01 : f32
    %183 = vector.broadcast %cst_89 : f32 to vector<16x128xf32>
    %184 = arith.mulf %183, %182 : vector<16x128xf32>
    %185 = arith.addf %169, %184 : vector<16x128xf32>
    %186 = arith.index_cast %c10_i32 : i32 to index
    %c0_90 = arith.constant 0 : index
    %c0_91 = arith.constant 0 : index
    %187 = vector.load %arg9[%186, %c0_90, %c0_91] : memref<16x16x128xf32, #tpu.memory_space<vmem>>, vector<1x16x128xf32>
    %188 = vector.shape_cast %187 : vector<1x16x128xf32> to vector<16x128xf32>
    %189 = vector.shape_cast %185 : vector<16x128xf32> to vector<1x16x128xf32>
    tpu.vector_store %arg9[%186, %c0_90, %c0_91], %189 {strides = array<i32>} : memref<16x16x128xf32, #tpu.memory_space<vmem>>, vector<1x16x128xf32>,
    %c11_i32 = arith.constant 11 : i32
    %190 = arith.index_cast %c11_i32 : i32 to index
    %c0_92 = arith.constant 0 : index
    %c0_93 = arith.constant 0 : index
    %191 = vector.load %arg10[%190, %c0_92, %c0_93] : memref<16x16x128xf32, #tpu.memory_space<vmem>>, vector<1x16x128xf32>
    %192 = vector.shape_cast %191 : vector<1x16x128xf32> to vector<16x128xf32>
    %193 = arith.truncf %185 : vector<16x128xf32> to vector<16x128xbf16>
    %cst_94 = arith.constant dense<0.000000e+00> : vector<16x128xf32>
    %194 = tpu.matmul %193, %12, %cst_94 {dimension_numbers = #tpu.dot_dimension_numbers<[1], [0], [0], [1], [0, 0, 1, 1], [], []>} : vector<16x128xbf16>, vector<128x128xbf16>, vector<16x128xf32> -> vector<16x128xf32>
    %195 = arith.addf %192, %194 : vector<16x128xf32>
    %cst_95 = arith.constant 0.000000e+00 : f32
    %196 = vector.broadcast %cst_95 : f32 to vector<16x128xf32>
    %197 = arith.maximumf %195, %196 : vector<16x128xf32>
    %198 = arith.subf %197, %185 : vector<16x128xf32>
    %cst_96 = arith.constant 1.000000e-01 : f32
    %199 = vector.broadcast %cst_96 : f32 to vector<16x128xf32>
    %200 = arith.mulf %199, %198 : vector<16x128xf32>
    %201 = arith.addf %185, %200 : vector<16x128xf32>
    %202 = arith.index_cast %c11_i32 : i32 to index
    %c0_97 = arith.constant 0 : index
    %c0_98 = arith.constant 0 : index
    %203 = vector.load %arg9[%202, %c0_97, %c0_98] : memref<16x16x128xf32, #tpu.memory_space<vmem>>, vector<1x16x128xf32>
    %204 = vector.shape_cast %203 : vector<1x16x128xf32> to vector<16x128xf32>
    %205 = vector.shape_cast %201 : vector<16x128xf32> to vector<1x16x128xf32>
    tpu.vector_store %arg9[%202, %c0_97, %c0_98], %205 {strides = array<i32>} : memref<16x16x128xf32, #tpu.memory_space<vmem>>, vector<1x16x128xf32>,
    %c12_i32 = arith.constant 12 : i32
    %206 = arith.index_cast %c12_i32 : i32 to index
    %c0_99 = arith.constant 0 : index
    %c0_100 = arith.constant 0 : index
    %207 = vector.load %arg10[%206, %c0_99, %c0_100] : memref<16x16x128xf32, #tpu.memory_space<vmem>>, vector<1x16x128xf32>
    %208 = vector.shape_cast %207 : vector<1x16x128xf32> to vector<16x128xf32>
    %209 = arith.truncf %201 : vector<16x128xf32> to vector<16x128xbf16>
    %cst_101 = arith.constant dense<0.000000e+00> : vector<16x128xf32>
    %210 = tpu.matmul %209, %12, %cst_101 {dimension_numbers = #tpu.dot_dimension_numbers<[1], [0], [0], [1], [0, 0, 1, 1], [], []>} : vector<16x128xbf16>, vector<128x128xbf16>, vector<16x128xf32> -> vector<16x128xf32>
    %211 = arith.addf %208, %210 : vector<16x128xf32>
    %cst_102 = arith.constant 0.000000e+00 : f32
    %212 = vector.broadcast %cst_102 : f32 to vector<16x128xf32>
    %213 = arith.maximumf %211, %212 : vector<16x128xf32>
    %214 = arith.subf %213, %201 : vector<16x128xf32>
    %cst_103 = arith.constant 1.000000e-01 : f32
    %215 = vector.broadcast %cst_103 : f32 to vector<16x128xf32>
    %216 = arith.mulf %215, %214 : vector<16x128xf32>
    %217 = arith.addf %201, %216 : vector<16x128xf32>
    %218 = arith.index_cast %c12_i32 : i32 to index
    %c0_104 = arith.constant 0 : index
    %c0_105 = arith.constant 0 : index
    %219 = vector.load %arg9[%218, %c0_104, %c0_105] : memref<16x16x128xf32, #tpu.memory_space<vmem>>, vector<1x16x128xf32>
    %220 = vector.shape_cast %219 : vector<1x16x128xf32> to vector<16x128xf32>
    %221 = vector.shape_cast %217 : vector<16x128xf32> to vector<1x16x128xf32>
    tpu.vector_store %arg9[%218, %c0_104, %c0_105], %221 {strides = array<i32>} : memref<16x16x128xf32, #tpu.memory_space<vmem>>, vector<1x16x128xf32>,
    %c13_i32 = arith.constant 13 : i32
    %222 = arith.index_cast %c13_i32 : i32 to index
    %c0_106 = arith.constant 0 : index
    %c0_107 = arith.constant 0 : index
    %223 = vector.load %arg10[%222, %c0_106, %c0_107] : memref<16x16x128xf32, #tpu.memory_space<vmem>>, vector<1x16x128xf32>
    %224 = vector.shape_cast %223 : vector<1x16x128xf32> to vector<16x128xf32>
    %225 = arith.truncf %217 : vector<16x128xf32> to vector<16x128xbf16>
    %cst_108 = arith.constant dense<0.000000e+00> : vector<16x128xf32>
    %226 = tpu.matmul %225, %12, %cst_108 {dimension_numbers = #tpu.dot_dimension_numbers<[1], [0], [0], [1], [0, 0, 1, 1], [], []>} : vector<16x128xbf16>, vector<128x128xbf16>, vector<16x128xf32> -> vector<16x128xf32>
    %227 = arith.addf %224, %226 : vector<16x128xf32>
    %cst_109 = arith.constant 0.000000e+00 : f32
    %228 = vector.broadcast %cst_109 : f32 to vector<16x128xf32>
    %229 = arith.maximumf %227, %228 : vector<16x128xf32>
    %230 = arith.subf %229, %217 : vector<16x128xf32>
    %cst_110 = arith.constant 1.000000e-01 : f32
    %231 = vector.broadcast %cst_110 : f32 to vector<16x128xf32>
    %232 = arith.mulf %231, %230 : vector<16x128xf32>
    %233 = arith.addf %217, %232 : vector<16x128xf32>
    %234 = arith.index_cast %c13_i32 : i32 to index
    %c0_111 = arith.constant 0 : index
    %c0_112 = arith.constant 0 : index
    %235 = vector.load %arg9[%234, %c0_111, %c0_112] : memref<16x16x128xf32, #tpu.memory_space<vmem>>, vector<1x16x128xf32>
    %236 = vector.shape_cast %235 : vector<1x16x128xf32> to vector<16x128xf32>
    %237 = vector.shape_cast %233 : vector<16x128xf32> to vector<1x16x128xf32>
    tpu.vector_store %arg9[%234, %c0_111, %c0_112], %237 {strides = array<i32>} : memref<16x16x128xf32, #tpu.memory_space<vmem>>, vector<1x16x128xf32>,
    %c14_i32 = arith.constant 14 : i32
    %238 = arith.index_cast %c14_i32 : i32 to index
    %c0_113 = arith.constant 0 : index
    %c0_114 = arith.constant 0 : index
    %239 = vector.load %arg10[%238, %c0_113, %c0_114] : memref<16x16x128xf32, #tpu.memory_space<vmem>>, vector<1x16x128xf32>
    %240 = vector.shape_cast %239 : vector<1x16x128xf32> to vector<16x128xf32>
    %241 = arith.truncf %233 : vector<16x128xf32> to vector<16x128xbf16>
    %cst_115 = arith.constant dense<0.000000e+00> : vector<16x128xf32>
    %242 = tpu.matmul %241, %12, %cst_115 {dimension_numbers = #tpu.dot_dimension_numbers<[1], [0], [0], [1], [0, 0, 1, 1], [], []>} : vector<16x128xbf16>, vector<128x128xbf16>, vector<16x128xf32> -> vector<16x128xf32>
    %243 = arith.addf %240, %242 : vector<16x128xf32>
    %cst_116 = arith.constant 0.000000e+00 : f32
    %244 = vector.broadcast %cst_116 : f32 to vector<16x128xf32>
    %245 = arith.maximumf %243, %244 : vector<16x128xf32>
    %246 = arith.subf %245, %233 : vector<16x128xf32>
    %cst_117 = arith.constant 1.000000e-01 : f32
    %247 = vector.broadcast %cst_117 : f32 to vector<16x128xf32>
    %248 = arith.mulf %247, %246 : vector<16x128xf32>
    %249 = arith.addf %233, %248 : vector<16x128xf32>
    %250 = arith.index_cast %c14_i32 : i32 to index
    %c0_118 = arith.constant 0 : index
    %c0_119 = arith.constant 0 : index
    %251 = vector.load %arg9[%250, %c0_118, %c0_119] : memref<16x16x128xf32, #tpu.memory_space<vmem>>, vector<1x16x128xf32>
    %252 = vector.shape_cast %251 : vector<1x16x128xf32> to vector<16x128xf32>
    %253 = vector.shape_cast %249 : vector<16x128xf32> to vector<1x16x128xf32>
    tpu.vector_store %arg9[%250, %c0_118, %c0_119], %253 {strides = array<i32>} : memref<16x16x128xf32, #tpu.memory_space<vmem>>, vector<1x16x128xf32>,
    %c15_i32 = arith.constant 15 : i32
    %254 = arith.index_cast %c15_i32 : i32 to index
    %c0_120 = arith.constant 0 : index
    %c0_121 = arith.constant 0 : index
    %255 = vector.load %arg10[%254, %c0_120, %c0_121] : memref<16x16x128xf32, #tpu.memory_space<vmem>>, vector<1x16x128xf32>
    %256 = vector.shape_cast %255 : vector<1x16x128xf32> to vector<16x128xf32>
    %257 = arith.truncf %249 : vector<16x128xf32> to vector<16x128xbf16>
    %cst_122 = arith.constant dense<0.000000e+00> : vector<16x128xf32>
    %258 = tpu.matmul %257, %12, %cst_122 {dimension_numbers = #tpu.dot_dimension_numbers<[1], [0], [0], [1], [0, 0, 1, 1], [], []>} : vector<16x128xbf16>, vector<128x128xbf16>, vector<16x128xf32> -> vector<16x128xf32>
    %259 = arith.addf %256, %258 : vector<16x128xf32>
    %cst_123 = arith.constant 0.000000e+00 : f32
    %260 = vector.broadcast %cst_123 : f32 to vector<16x128xf32>
    %261 = arith.maximumf %259, %260 : vector<16x128xf32>
    %262 = arith.subf %261, %249 : vector<16x128xf32>
    %cst_124 = arith.constant 1.000000e-01 : f32
    %263 = vector.broadcast %cst_124 : f32 to vector<16x128xf32>
    %264 = arith.mulf %263, %262 : vector<16x128xf32>
    %265 = arith.addf %249, %264 : vector<16x128xf32>
    %266 = arith.index_cast %c15_i32 : i32 to index
    %c0_125 = arith.constant 0 : index
    %c0_126 = arith.constant 0 : index
    %267 = vector.load %arg9[%266, %c0_125, %c0_126] : memref<16x16x128xf32, #tpu.memory_space<vmem>>, vector<1x16x128xf32>
    %268 = vector.shape_cast %267 : vector<1x16x128xf32> to vector<16x128xf32>
    %269 = vector.shape_cast %265 : vector<16x128xf32> to vector<1x16x128xf32>
    tpu.vector_store %arg9[%266, %c0_125, %c0_126], %269 {strides = array<i32>} : memref<16x16x128xf32, #tpu.memory_space<vmem>>, vector<1x16x128xf32>,
    %c16_i32 = arith.constant 16 : i32
    %c0_127 = arith.constant 0 : index
    %c0_128 = arith.constant 0 : index
    %270 = vector.load %arg11[%c0_127, %c0_128] : memref<16x128xf32, #tpu.memory_space<vmem>>, vector<16x128xf32>
    tpu.vector_store %arg11[%c0_127, %c0_128], %265 {strides = array<i32>} : memref<16x128xf32, #tpu.memory_space<vmem>>, vector<16x128xf32>,
    %c0_129 = arith.constant 0 : index
    %c0_130 = arith.constant 0 : index
    %c0_131 = arith.constant 0 : index
    %271 = vector.load %arg9[%c0_129, %c0_130, %c0_131] : memref<16x16x128xf32, #tpu.memory_space<vmem>>, vector<16x16x128xf32>
    %272 = vector.shape_cast %271 : vector<16x16x128xf32> to vector<256x128xf32>
    %273 = arith.truncf %272 : vector<256x128xf32> to vector<256x128xbf16>
    %c0_132 = arith.constant 0 : index
    %c0_133 = arith.constant 0 : index
    %274 = vector.load %arg6[%c0_132, %c0_133] : memref<128x128xbf16, #tpu.memory_space<vmem>>, vector<128x128xbf16>
    %cst_134 = arith.constant dense<0.000000e+00> : vector<256x128xf32>
    %275 = tpu.matmul %273, %274, %cst_134 {dimension_numbers = #tpu.dot_dimension_numbers<[1], [0], [0], [1], [0, 0, 1, 1], [], []>} : vector<256x128xbf16>, vector<128x128xbf16>, vector<256x128xf32> -> vector<256x128xf32>
    %c0_135 = arith.constant 0 : index
    %c0_136 = arith.constant 0 : index
    %276 = vector.load %arg7[%c0_135, %c0_136] : memref<1x128xf32, #tpu.memory_space<vmem>>, vector<1x128xf32>
    %277 = vector.broadcast %276 : vector<1x128xf32> to vector<256x128xf32>
    %278 = arith.addf %275, %277 : vector<256x128xf32>
    %279 = vector.shape_cast %278 : vector<256x128xf32> to vector<16x16x128xf32>
    %c0_137 = arith.constant 0 : index
    %c0_138 = arith.constant 0 : index
    %c0_139 = arith.constant 0 : index
    %280 = vector.load %arg8[%c0_137, %c0_138, %c0_139] : memref<16x16x128xf32, #tpu.memory_space<vmem>>, vector<16x16x128xf32>
    tpu.vector_store %arg8[%c0_137, %c0_138, %c0_139], %279 {strides = array<i32>} : memref<16x16x128xf32, #tpu.memory_space<vmem>>, vector<16x16x128xf32>,
    return
  }
  func.func @transform_0(%arg0: i32, %arg1: i32) -> (i32, i32, i32) {
    %c0_i32 = arith.constant 0 : i32
    %c0_i32_0 = arith.constant 0 : i32
    return %arg1, %arg0, %c0_i32 : i32, i32, i32
  }
  func.func @transform_1(%arg0: i32, %arg1: i32) -> (i32, i32) {
    %c0_i32 = arith.constant 0 : i32
    %c0_i32_0 = arith.constant 0 : i32
    %c0_i32_1 = arith.constant 0 : i32
    return %c0_i32, %c0_i32_0 : i32, i32
  }
  func.func @transform_2(%arg0: i32, %arg1: i32) -> (i32, i32) {
    %c0_i32 = arith.constant 0 : i32
    %c0_i32_0 = arith.constant 0 : i32
    %c0_i32_1 = arith.constant 0 : i32
    return %c0_i32, %c0_i32_0 : i32, i32
  }
  func.func @transform_3(%arg0: i32, %arg1: i32) -> (i32, i32) {
    %c0_i32 = arith.constant 0 : i32
    %c0_i32_0 = arith.constant 0 : i32
    %c0_i32_1 = arith.constant 0 : i32
    return %c0_i32, %c0_i32_0 : i32, i32
  }
  func.func @transform_4(%arg0: i32, %arg1: i32) -> (i32, i32) {
    %c0_i32 = arith.constant 0 : i32
    %c0_i32_0 = arith.constant 0 : i32
    %c0_i32_1 = arith.constant 0 : i32
    return %c0_i32, %c0_i32_0 : i32, i32
  }
  func.func @transform_5(%arg0: i32, %arg1: i32) -> (i32, i32) {
    %c0_i32 = arith.constant 0 : i32
    %c0_i32_0 = arith.constant 0 : i32
    %c0_i32_1 = arith.constant 0 : i32
    return %c0_i32, %c0_i32_0 : i32, i32
  }
  func.func @transform_6(%arg0: i32, %arg1: i32) -> (i32, i32, i32) {
    %c0_i32 = arith.constant 0 : i32
    %c0_i32_0 = arith.constant 0 : i32
    return %arg1, %arg0, %c0_i32 : i32, i32, i32
  }
  func.func @transform_7(%arg0: i32, %arg1: i32) -> (i32, i32, i32) {
    %c0_i32 = arith.constant 0 : i32
    %c0_i32_0 = arith.constant 0 : i32
    return %arg1, %arg0, %c0_i32 : i32, i32, i32
  }
}

</mosaic_0001>

<bundles_post_ra>
// kernel: tpu_custom_call.1
= control target key start
LH: loop header
LB: loop body
LE: loop exit
PB: predicated region body
PF: predicated region fallthrough
CT: control target
= control target key end

     0   :  { %13 = vsyncpa [#allocation5], 0  ;;  %s3269_s0 = inlined_call_operand.hbm [shape: bf16[16,16,128], index: 0, kind: input, shape index: {}]   ;;  %s3270_s1 = inlined_call_operand.hbm [shape: bf16[128,128], index: 1, kind: input, shape index: {}]   ;;  %s3271_s2 = inlined_call_operand.vmem [shape: f32[1,128], index: 2, kind: input, shape index: {}]   ;;  %s3272_s3 = inlined_call_operand.hbm [shape: bf16[128,128], index: 3, kind: input, shape index: {}]   ;;  %s3273_s4 = inlined_call_operand.hbm [shape: bf16[128,128], index: 4, kind: input, shape index: {}]   ;;  %s3274_s5 = inlined_call_operand.vmem [shape: f32[1,128], index: 5, kind: input, shape index: {}]   ;;  %s3275_s6 = inlined_call_operand.hbm [shape: f32[16,16,128], index: 6, kind: output, shape index: {0}]   ;;  %s3276_s7 = inlined_call_operand.hbm [shape: f32[16,16,128], index: 7, kind: output, shape index: {1}]  }
   0x1   :  { %14 = vsyncpa [#allocation8], 0 }
   0x2   :  { %15 = vsyncpa [#allocation11], 0 }
   0x3   :  { %16 = vsyncpa [#allocation6], 0 }
   0x4   :  { %17 = vsyncpa [#allocation14], 0  ;;  %s2680_s24 = smov [#allocation7]   ;;  %s2681_s26 = smov [#allocation4]  }
   0x5   :  { %s35_s25 = sshll.u32 %s2680_s24, 4  ;;  %s23_s27 = sshll.u32 %s2681_s26, 4  ;;  %s36_s25 = int_to_ptr.vmem [resolvable:$true] %s35_s25  ;;  %s24_s27 = int_to_ptr.vmem [resolvable:$true] %s23_s27 }
   0x6   :  { %s2558_s28 = scalar_lea.vmem %s36_s25, 1024  ;;  %p2563_p1 = scmp.lt.s32.totalorder %s36_s25, %s36_s25 }
   0x7   :  { %p2559_p0 = scmp.ne.s32.totalorder %s36_s25, %s2558_s28  ;;  %p2564_p2 = scmp.lt.s32.totalorder %s2558_s28, %s2558_s28 }
   0x9   :  { %p2565_p3 = por %p2564_p2, %p2563_p1 }
   0xb   :  { %p2566_p4 = pnand %p2565_p3, %p2559_p0 }
   0xd   :  { %2569 = shalt.err (!%p2566_p4)
}
   0xe   :  { %s2682_s29 = smov 64   ;;  %s2683_s30 = smov 4  }
   0xf   :  { %41 = dma.hbm_to_vmem [thread:$0]  %s3270_s1, 1024, %s36_s25, [#allocation8], %s2682_s29, %s2682_s29, %s2683_s30  }
  0x10   :  { %s2578_s10 = scalar_lea.vmem %s24_s27, 2048  ;;  %p2583_p6 = scmp.lt.s32.totalorder %s24_s27, %s24_s27 }
  0x11   :  { %p2579_p5 = scmp.ne.s32.totalorder %s24_s27, %s2578_s10  ;;  %p2584_p7 = scmp.lt.s32.totalorder %s2578_s10, %s2578_s10 }
  0x13   :  { %p2585_p8 = por %p2584_p7, %p2583_p6 }
  0x15   :  { %p2586_p9 = pnand %p2585_p8, %p2579_p5 }
  0x17   :  { %2589 = shalt.err (!%p2586_p9)
}
  0x18   :  { %29 = dma.hbm_to_vmem [thread:$0]  %s3269_s0, 2048, %s24_s27, [#allocation5], %s2682_s29, %s2682_s29, %s2683_s30  }
  0x19   :  { %s2684_s13 = smov [#allocation9]   ;;  %s2685_s15 = smov [#allocation10]  }
  0x1a   :  { %s49_s14 = sshll.u32 %s2684_s13, 4  ;;  %s61_s16 = sshll.u32 %s2685_s15, 4  ;;  %s50_s14 = int_to_ptr.vmem [resolvable:$true] %s49_s14  ;;  %s62_s16 = int_to_ptr.vmem [resolvable:$true] %s61_s16 }
  0x1b   :  { %s2598_s1 = scalar_lea.vmem %s50_s14, 1024  ;;  %p2603_p11 = scmp.lt.s32.totalorder %s50_s14, %s50_s14 }
  0x1c   :  { %p2599_p10 = scmp.ne.s32.totalorder %s50_s14, %s2598_s1  ;;  %p2604_p12 = scmp.lt.s32.totalorder %s2598_s1, %s2598_s1 }
  0x1e   :  { %p2605_p13 = por %p2604_p12, %p2603_p11 }
  0x20   :  { %p2606_p0 = pnand %p2605_p13, %p2599_p10 }
  0x22   :  { %2609 = shalt.err (!%p2606_p0)
}
  0x23   :  { %55 = dma.hbm_to_vmem [thread:$0]  %s3272_s3, 1024, %s50_s14, [#allocation8], %s2682_s29, %s2682_s29, %s2683_s30  }
  0x24   :  { %s2618_s0 = scalar_lea.vmem %s62_s16, 1024  ;;  %p2623_p2 = scmp.lt.s32.totalorder %s62_s16, %s62_s16 }
  0x25   :  { %p2619_p1 = scmp.ne.s32.totalorder %s62_s16, %s2618_s0  ;;  %p2624_p3 = scmp.lt.s32.totalorder %s2618_s0, %s2618_s0 }
  0x27   :  { %p2625_p4 = por %p2624_p3, %p2623_p2 }
  0x29   :  { %p2626_p5 = pnand %p2625_p4, %p2619_p1 }
  0x2b   :  { %2629 = shalt.err (!%p2626_p5)
}
  0x2c   :  { %67 = dma.hbm_to_vmem [thread:$0]  %s3273_s4, 1024, %s62_s16, [#allocation11], %s2682_s29, %s2682_s29, %s2683_s30  }
  0x2d   :  { %2670 = dma.done.wait [#allocation5], 2048  }
  0x2e   :  { %2671 = vsyncadd [#allocation5], 4294965248 }
  0x2f   :  { %2672 = dma.done.wait [#allocation8], 2048  }
  0x30   :  { %2673 = vsyncadd [#allocation8], 4294965248 }
  0x31   :  { %2674 = dma.done.wait [#allocation11], 1024  }
  0x32   :  { %2675 = vsyncadd [#allocation11], 4294966272  ;;  %v2501_v0 = vld [vmem:[#allocation7 + $0x38] sm:$0xff]   ;;  %v2502_v1 = vld [vmem:[#allocation7 + $0x30] sm:$0xff]   ;;  %v2686_v14 = vmov 0.0   ;;  %vm2687_vm0 = vmmov 0  }
  0x33   :  { %2472 = vmatprep.subr.bf16.mxu1 %v2501_v0  ;;  %2056 = vmatprep.subr.bf16.mxu0 %v2501_v0  ;;  %v2503_v2 = vld [vmem:[#allocation7 + $0x28] sm:$0xff]   ;;  %v2504_v3 = vld [vmem:[#allocation7 + $0x20] sm:$0xff]   ;;  %v2505_v5 = vld [vmem:[#allocation7 + $0x18] sm:$0xff]   ;;  %v2688_v27 = vmov 0.0|0.0  }
  0x34   :  { %2480 = vmatpush3.bf16.msra.mxu1 %v2501_v0  ;;  %2057 = vmatpush3.bf16.msra.mxu0 %v2501_v0  ;;  %v2509_v4 = vld [vmem:[#allocation4 + $0x40] sm:$0xff]   ;;  %v2506_v6 = vld [vmem:[#allocation7 + $0x10] sm:$0xff]   ;;  %v2507_v7 = vld [vmem:[#allocation7 + $0x8] sm:$0xff]  }
  0x35   :  { %2473 = vmatprep.subr.bf16.mxu1 %v2502_v1  ;;  %2058 = vmatprep.subr.bf16.mxu0 %v2502_v1  ;;  %v2521_v8 = vld [vmem:[#allocation4] sm:$0xff]   ;;  %v2510_v10 = vld [vmem:[#allocation4 + $0x48] sm:$0xff]   ;;  %v2757_v12 = vld [vmem:[#allocation9 + $0x38] sm:$0xff]  }
  0x36   :  { %2088 = vmatprep.mubr.bf16.mxu1 %v2509_v4  ;;  %2072 = vmatprep.mubr.bf16.mxu0 %v2521_v8  ;;  %v2508_v9 = vld [vmem:[#allocation7] sm:$0xff]   ;;  %v2522_v11 = vld [vmem:[#allocation4 + $0x8] sm:$0xff]   ;;  %v2513_v13 = vld [vmem:[#allocation4 + $0x50] sm:$0xff]  }
  0x37   :  { %v2762_v15 = vld [vmem:[#allocation9 + $0x30] sm:$0xff]   ;;  %v2514_v16 = vld [vmem:[#allocation4 + $0x58] sm:$0xff]   ;;  %v2768_v17 = vld [vmem:[#allocation9 + $0x28] sm:$0xff]  }
  0x38   :  { %2481 = vmatpush3.bf16.msra.mxu1 %v2502_v1  ;;  %2059 = vmatpush3.bf16.msra.mxu0 %v2502_v1  ;;  %v2517_v18 = vld [vmem:[#allocation4 + $0x60] sm:$0xff]   ;;  %v2518_v20 = vld [vmem:[#allocation4 + $0x68] sm:$0xff]   ;;  %v2780_v21 = vld [vmem:[#allocation9 + $0x18] sm:$0xff]  }
  0x39   :  { %2474 = vmatprep.subr.bf16.mxu1 %v2503_v2  ;;  %2060 = vmatprep.subr.bf16.mxu0 %v2503_v2  ;;  %v2774_v19 = vld [vmem:[#allocation9 + $0x20] sm:$0xff]   ;;  %v2523_v22 = vld [vmem:[#allocation4 + $0x70] sm:$0xff]   ;;  %v2524_v24 = vld [vmem:[#allocation4 + $0x78] sm:$0xff]  }
  0x3a   :  { %v2786_v23 = vld [vmem:[#allocation9 + $0x10] sm:$0xff]   ;;  %v2792_v25 = vld [vmem:[#allocation9 + $0x8] sm:$0xff]   ;;  %v2798_v26 = vld [vmem:[#allocation9] sm:$0xff]  }
  0x3b   :  { %v2527_v28 = vld [vmem:[#allocation4 + $0x10] sm:$0xff]   ;;  %v2528_v29 = vld [vmem:[#allocation4 + $0x18] sm:$0xff]   ;;  %v2529_v30 = vld [vmem:[#allocation4 + $0x20] sm:$0xff]  }
  0x3c   :  { %2482 = vmatpush3.bf16.msra.mxu1 %v2503_v2  ;;  %2061 = vmatpush3.bf16.msra.mxu0 %v2503_v2  ;;  %v2530_v31 = vld [vmem:[#allocation4 + $0x28] sm:$0xff]   ;;  %v2860_v50 = vld [vmem:[%s3271_s2] ss:$0 sm:$0xff]  ;;  %v2531_v2 = vld [vmem:[#allocation4 + $0x30] sm:$0xff]  }
  0x3d   :  { %2475 = vmatprep.subr.bf16.mxu1 %v2504_v3  ;;  %2062 = vmatprep.subr.bf16.mxu0 %v2504_v3 }
  0x40   :  { %2483 = vmatpush3.bf16.msra.mxu1 %v2504_v3  ;;  %2063 = vmatpush3.bf16.msra.mxu0 %v2504_v3  ;;  %v2532_v3 = vld [vmem:[#allocation4 + $0x38] sm:$0xff]  }
  0x41   :  { %2476 = vmatprep.subr.bf16.mxu1 %v2505_v5  ;;  %2064 = vmatprep.subr.bf16.mxu0 %v2505_v5 }
  0x44   :  { %2484 = vmatpush3.bf16.msra.mxu1 %v2505_v5  ;;  %2065 = vmatpush3.bf16.msra.mxu0 %v2505_v5 }
  0x45   :  { %2477 = vmatprep.subr.bf16.mxu1 %v2506_v6  ;;  %2066 = vmatprep.subr.bf16.mxu0 %v2506_v6 }
  0x48   :  { %2485 = vmatpush3.bf16.msra.mxu1 %v2506_v6  ;;  %2067 = vmatpush3.bf16.msra.mxu0 %v2506_v6 }
  0x49   :  { %2478 = vmatprep.subr.bf16.mxu1 %v2507_v7  ;;  %2068 = vmatprep.subr.bf16.mxu0 %v2507_v7 }
  0x4c   :  { %2486 = vmatpush3.bf16.msra.mxu1 %v2507_v7  ;;  %2069 = vmatpush3.bf16.msra.mxu0 %v2507_v7 }
  0x4d   :  { %2479 = vmatprep.subr.bf16.mxu1 %v2508_v9  ;;  %2070 = vmatprep.subr.bf16.mxu0 %v2508_v9 }
  0x50   :  { %2487 = vmatpush3.bf16.msra.mxu1 %v2508_v9  ;;  %2071 = vmatpush3.bf16.msra.mxu0 %v2508_v9 }
  0x51   :  { %2104 = vmatprep.subr.bf16.mxu1 %v2686_v14  ;;  %2144 = vmatprep.subr.bf16.mxu0 %v2686_v14 }
  0x53   :  { %2089 = vmatmul.mubr.bf16.vlgmr.msra.gmra.mxu1 %v2510_v10  ;;  %2073 = vmatmul.mubr.bf16.vlgmr.msra.gmra.mxu0 %v2522_v11 }
  0x54   :  { %2105 = vmatpush3.bf16.msra.mxu1 %v2757_v12  ;;  %2092 = vmatprep.mubr.bf16.mxu1 %v2513_v13 }
  0x55   :  { %2106 = vmatprep.subr.bf16.mxu1 %v2686_v14  ;;  %2145 = vmatpush3.bf16.msra.mxu0 %v2757_v12 }
  0x56   :  { %2146 = vmatprep.subr.bf16.mxu0 %v2686_v14  ;;  %2076 = vmatprep.mubr.bf16.mxu0 %v2527_v28 }
  0x58   :  { %2107 = vmatpush3.bf16.msra.mxu1 %v2762_v15 }
  0x59   :  { %2108 = vmatprep.subr.bf16.mxu1 %v2686_v14  ;;  %2147 = vmatpush3.bf16.msra.mxu0 %v2762_v15 }
  0x5a   :  { %2148 = vmatprep.subr.bf16.mxu0 %v2686_v14 }
  0x5b   :  { %2093 = vmatmul.mubr.bf16.gmra.mxu1 %v2514_v16  ;;  %2077 = vmatmul.mubr.bf16.gmra.mxu0 %v2528_v29 }
  0x5c   :  { %2109 = vmatpush3.bf16.msra.mxu1 %v2768_v17  ;;  %2096 = vmatprep.mubr.bf16.mxu1 %v2517_v18 }
  0x5d   :  { %2110 = vmatprep.subr.bf16.mxu1 %v2686_v14  ;;  %2149 = vmatpush3.bf16.msra.mxu0 %v2768_v17 }
  0x5e   :  { %2150 = vmatprep.subr.bf16.mxu0 %v2686_v14  ;;  %2080 = vmatprep.mubr.bf16.mxu0 %v2529_v30 }
  0x60   :  { %2111 = vmatpush3.bf16.msra.mxu1 %v2774_v19 }
  0x61   :  { %2112 = vmatprep.subr.bf16.mxu1 %v2686_v14  ;;  %2151 = vmatpush3.bf16.msra.mxu0 %v2774_v19 }
  0x62   :  { %2152 = vmatprep.subr.bf16.mxu0 %v2686_v14 }
  0x63   :  { %2097 = vmatmul.mubr.bf16.gmra.mxu1 %v2518_v20  ;;  %2081 = vmatmul.mubr.bf16.gmra.mxu0 %v2530_v31 }
  0x64   :  { %2113 = vmatpush3.bf16.msra.mxu1 %v2780_v21  ;;  %2100 = vmatprep.mubr.bf16.mxu1 %v2523_v22 }
  0x65   :  { %2114 = vmatprep.subr.bf16.mxu1 %v2686_v14  ;;  %2153 = vmatpush3.bf16.msra.mxu0 %v2780_v21 }
  0x66   :  { %2154 = vmatprep.subr.bf16.mxu0 %v2686_v14  ;;  %2084 = vmatprep.mubr.bf16.mxu0 %v2531_v2 }
  0x68   :  { %2115 = vmatpush3.bf16.msra.mxu1 %v2786_v23 }
  0x69   :  { %2116 = vmatprep.subr.bf16.mxu1 %v2686_v14  ;;  %2155 = vmatpush3.bf16.msra.mxu0 %v2786_v23 }
  0x6a   :  { %2156 = vmatprep.subr.bf16.mxu0 %v2686_v14 }
  0x6b   :  { %2101 = vmatmul.mubr.bf16.gmra.mxu1 %v2524_v24  ;;  %2085 = vmatmul.mubr.bf16.gmra.mxu0 %v2532_v3 }
  0x6c   :  { %2117 = vmatpush3.bf16.msra.mxu1 %v2792_v25  ;;  %2120 = vmatprep.mubr.msk.bf16.mxu1 %vm2687_vm0, %v2686_v14 }
  0x6d   :  { %2118 = vmatprep.subr.bf16.mxu1 %v2686_v14  ;;  %2157 = vmatpush3.bf16.msra.mxu0 %v2792_v25 }
  0x6e   :  { %2158 = vmatprep.subr.bf16.mxu0 %v2686_v14  ;;  %2160 = vmatprep.mubr.msk.bf16.mxu0 %vm2687_vm0, %v2686_v14 }
  0x70   :  { %2119 = vmatpush3.bf16.msra.mxu1 %v2798_v26 }
  0x71   :  { %2124 = vmatprep.subr.bf16.mxu1 %v2686_v14  ;;  %2159 = vmatpush3.bf16.msra.mxu0 %v2798_v26 }
  0x72   :  { %2184 = vmatprep.subr.bf16.mxu0 %v2686_v14 }
  0x73   :  { %2121 = vmatmul.mubr.bf16.vlgmr.msra.gmra.mxu1 %v2688_v27 }
  0x74   :  { %2125 = vmatpush3.bf16.msra.mxu1 %v2757_v12  ;;  %2140 = vmatprep.mubr.msk.bf16.mxu1 %vm2687_vm0, %v2686_v14 }
  0x75   :  { %2126 = vmatprep.subr.bf16.mxu1 %v2686_v14 }
  0x78   :  { %2127 = vmatpush3.bf16.msra.mxu1 %v2762_v15 }
  0x79   :  { %2128 = vmatprep.subr.bf16.mxu1 %v2686_v14 }
  0x7c   :  { %2129 = vmatpush3.bf16.msra.mxu1 %v2768_v17 }
  0x7d   :  { %2130 = vmatprep.subr.bf16.mxu1 %v2686_v14 }
  0x80   :  { %2131 = vmatpush3.bf16.msra.mxu1 %v2774_v19 }
  0x81   :  { %2132 = vmatprep.subr.bf16.mxu1 %v2686_v14 }
  0x84   :  { %2133 = vmatpush3.bf16.msra.mxu1 %v2780_v21 }
  0x85   :  { %2134 = vmatprep.subr.bf16.mxu1 %v2686_v14 }
  0x88   :  { %2135 = vmatpush3.bf16.msra.mxu1 %v2786_v23 }
  0x89   :  { %2136 = vmatprep.subr.bf16.mxu1 %v2686_v14 }
  0x8c   :  { %2137 = vmatpush3.bf16.msra.mxu1 %v2792_v25 }
  0x8d   :  { %2138 = vmatprep.subr.bf16.mxu1 %v2686_v14 }
  0x90   :  { %2139 = vmatpush3.bf16.msra.mxu1 %v2798_v26 }
  0x91   :  { %2164 = vmatprep.subr.bf16.mxu1 %v2686_v14 }
 0x113   :  { %v2827_v32 = vpop.f32.mrf.mxu1  ;;  %v2074_v43 = vpop.f32.mrf.mxu0 }
 0x114   :  { %v331_v4 = vadd.f32 %v2074_v43, %v2860_v50 }
 0x115   :  { %v2829_v33 = vpop.f32.mrf.mxu1  ;;  %v322_v46 = vpop.f32.mrf.mxu0 }
 0x116   :  { %v323_v52 = vadd.f32 %v2860_v50, %v322_v46 }
 0x117   :  { %v2831_v34 = vpop.f32.mrf.mxu1  ;;  %v2075_v48 = vpop.f32.mrf.mxu0 }
 0x118   :  { %v334_v8 = vadd.f32 %v2075_v48, %v2860_v50 }
 0x119   :  { %v2833_v35 = vpop.f32.mrf.mxu1  ;;  %v325_v53 = vpop.f32.mrf.mxu0 }
 0x11a   :  { %v326_v57 = vadd.f32 %v2860_v50, %v325_v53 }
 0x11b   :  { %v2835_v36 = vpop.f32.mrf.mxu1  ;;  %v2078_v30 = vpop.f32.mrf.mxu0 }
 0x11d   :  { %v2837_v37 = vpop.f32.mrf.mxu1  ;;  %v338_v31 = vpop.f32.mrf.mxu0 }
 0x11f   :  { %v2839_v38 = vpop.f32.mrf.mxu1  ;;  %v2079_v43 = vpop.f32.mrf.mxu0 }
 0x121   :  { %v2841_v39 = vpop.f32.mrf.mxu1  ;;  %v341_v46 = vpop.f32.mrf.mxu0 }
 0x123   :  { %v2843_v40 = vpop.f32.mrf.mxu1  ;;  %v2910_v48 = vpop.f32.mrf.mxu0 }
 0x125   :  { %v2845_v41 = vpop.f32.mrf.mxu1 }
 0x127   :  { %v2847_v42 = vpop.f32.mrf.mxu1 }
 0x129   :  { %v2849_v44 = vpop.f32.mrf.mxu1 }
 0x12b   :  { %v2851_v45 = vpop.f32.mrf.mxu1 }
 0x12d   :  { %v2853_v47 = vpop.f32.mrf.mxu1 }
 0x12f   :  { %v2855_v49 = vpop.f32.mrf.mxu1 }
 0x131   :  { %v2862_v51 = vpop.f32.mrf.mxu1 }
 0x133   :  { %v584_v54 = vpop.f32.mrf.mxu1 }
 0x134   :  { %v591_v55 = vadd.f32 %v584_v54, %v323_v52  ;;  %v2912_v52 = vpop.f32.mrf.mxu0 }
 0x135   :  { %v2122_v56 = vpop.f32.mrf.mxu1 }
 0x136   :  { %v593_v58 = vmax.f32 %v591_v55, 0.0  ;;  %v2914_v53 = vpop.f32.mrf.mxu0 }
 0x137   :  { %v587_v59 = vpop.f32.mrf.mxu1 }
 0x138   :  { %v597_v60 = vmul.f32 0.1, %v593_v58  ;;  %v592_v61 = vadd.f32 %v587_v59, %v326_v57  ;;  %v2916_v54 = vpop.f32.mrf.mxu0  ;;  %v339_v59 = vadd.f32 %v2860_v50, %v338_v31 }
 0x139   :  { %v2123_v62 = vpop.f32.mrf.mxu1 }
 0x13a   :  { %601 = vst [vmem:[#allocation13] sm:$0xff] %v597_v60  ;;  %v594_v63 = vmax.f32 %v592_v61, 0.0  ;;  %v2918_v55 = vpop.f32.mrf.mxu0 }
 0x13c   :  { %v598_v0 = vmul.f32 0.1, %v594_v63  ;;  %v2920_v56 = vpop.f32.mrf.mxu0  ;;  %v342_v63 = vadd.f32 %v2860_v50, %v341_v46 }
 0x13e   :  { %602 = vst [vmem:[#allocation13 + $0x8] sm:$0xff] %v598_v0  ;;  %v606_v1 = vpack.c.bf16 %v598_v0, %v597_v60  ;;  %v2922_v57 = vpop.f32.mrf.mxu0 }
 0x140   :  { %2141 = vmatmul.mubr.bf16.vlgmr.msra.gmra.mxu1 %v606_v1  ;;  %v2924_v58 = vpop.f32.mrf.mxu0 }
 0x141   :  { %2165 = vmatpush3.bf16.msra.mxu1 %v2757_v12  ;;  %2180 = vmatprep.mubr.msk.bf16.mxu1 %vm2687_vm0, %v2686_v14 }
 0x142   :  { %2166 = vmatprep.subr.bf16.mxu1 %v2686_v14 }
 0x145   :  { %2167 = vmatpush3.bf16.msra.mxu1 %v2762_v15 }
 0x146   :  { %2168 = vmatprep.subr.bf16.mxu1 %v2686_v14 }
 0x149   :  { %2169 = vmatpush3.bf16.msra.mxu1 %v2768_v17 }
 0x14a   :  { %2170 = vmatprep.subr.bf16.mxu1 %v2686_v14 }
 0x14d   :  { %2171 = vmatpush3.bf16.msra.mxu1 %v2774_v19 }
 0x14e   :  { %2172 = vmatprep.subr.bf16.mxu1 %v2686_v14 }
 0x151   :  { %2173 = vmatpush3.bf16.msra.mxu1 %v2780_v21 }
 0x152   :  { %2174 = vmatprep.subr.bf16.mxu1 %v2686_v14 }
 0x155   :  { %2175 = vmatpush3.bf16.msra.mxu1 %v2786_v23 }
 0x156   :  { %2176 = vmatprep.subr.bf16.mxu1 %v2686_v14 }
 0x159   :  { %2177 = vmatpush3.bf16.msra.mxu1 %v2792_v25 }
 0x15a   :  { %2178 = vmatprep.subr.bf16.mxu1 %v2686_v14 }
 0x15d   :  { %2179 = vmatpush3.bf16.msra.mxu1 %v2798_v26 }
 0x15e   :  { %2204 = vmatprep.subr.bf16.mxu1 %v2686_v14 }
 0x200   :  { %v641_v5 = vpop.f32.mrf.mxu1 }
 0x201   :  { %v648_v6 = vadd.f32 %v641_v5, %v331_v4 }
 0x202   :  { %v2142_v7 = vpop.f32.mrf.mxu1 }
 0x203   :  { %v650_v9 = vmax.f32 %v648_v6, 0.0 }
 0x204   :  { %v644_v10 = vpop.f32.mrf.mxu1 }
 0x205   :  { %v652_v11 = vsub.f32 %v650_v9, %v597_v60  ;;  %v649_v13 = vadd.f32 %v644_v10, %v334_v8 }
 0x206   :  { %v2143_v16 = vpop.f32.mrf.mxu1 }
 0x207   :  { %v654_v18 = vmul.f32 0.1, %v652_v11  ;;  %v651_v20 = vmax.f32 %v649_v13, 0.0  ;;  %v347_v13 = vadd.f32 %v2078_v30, %v2860_v50  ;;  %v355_v30 = vadd.f32 %v2860_v50, %v2912_v52 }
 0x209   :  { %v656_v22 = vadd.f32 %v654_v18, %v597_v60  ;;  %v653_v24 = vsub.f32 %v651_v20, %v598_v0 }
 0x20b   :  { %659 = vst [vmem:[#allocation13 + $0x10] sm:$0xff] %v656_v22  ;;  %v655_v27 = vmul.f32 0.1, %v653_v24 }
 0x20d   :  { %v2888_v28 = vadd.f32 %v655_v27, %v598_v0 }
 0x20f   :  { %660 = vst [vmem:[#allocation13 + $0x18] sm:$0xff] %v2888_v28  ;;  %v664_v29 = vpack.c.bf16 %v2888_v28, %v656_v22 }
 0x211   :  { %2161 = vmatmul.mubr.bf16.vlgmr.msra.gmra.mxu0 %v664_v29 }
 0x212   :  { %2185 = vmatpush3.bf16.msra.mxu0 %v2757_v12  ;;  %2200 = vmatprep.mubr.msk.bf16.mxu0 %vm2687_vm0, %v2686_v14 }
 0x213   :  { %2186 = vmatprep.subr.bf16.mxu0 %v2686_v14 }
 0x216   :  { %2187 = vmatpush3.bf16.msra.mxu0 %v2762_v15 }
 0x217   :  { %2188 = vmatprep.subr.bf16.mxu0 %v2686_v14 }
 0x21a   :  { %2189 = vmatpush3.bf16.msra.mxu0 %v2768_v17 }
 0x21b   :  { %2190 = vmatprep.subr.bf16.mxu0 %v2686_v14 }
 0x21e   :  { %2191 = vmatpush3.bf16.msra.mxu0 %v2774_v19 }
 0x21f   :  { %2192 = vmatprep.subr.bf16.mxu0 %v2686_v14 }
 0x222   :  { %2193 = vmatpush3.bf16.msra.mxu0 %v2780_v21 }
 0x223   :  { %2194 = vmatprep.subr.bf16.mxu0 %v2686_v14 }
 0x226   :  { %2195 = vmatpush3.bf16.msra.mxu0 %v2786_v23 }
 0x227   :  { %2196 = vmatprep.subr.bf16.mxu0 %v2686_v14 }
 0x22a   :  { %2197 = vmatpush3.bf16.msra.mxu0 %v2792_v25 }
 0x22b   :  { %2198 = vmatprep.subr.bf16.mxu0 %v2686_v14 }
 0x22e   :  { %2199 = vmatpush3.bf16.msra.mxu0 %v2798_v26 }
 0x22f   :  { %2224 = vmatprep.subr.bf16.mxu0 %v2686_v14 }
 0x2d1   :  { %v699_v60 = vpop.f32.mrf.mxu0 }
 0x2d2   :  { %v706_v61 = vadd.f32 %v699_v60, %v339_v59 }
 0x2d3   :  { %v2162_v62 = vpop.f32.mrf.mxu0 }
 0x2d4   :  { %v708_v0 = vmax.f32 %v706_v61, 0.0 }
 0x2d5   :  { %v702_v1 = vpop.f32.mrf.mxu0 }
 0x2d6   :  { %v710_v2 = vsub.f32 %v708_v0, %v656_v22  ;;  %v707_v3 = vadd.f32 %v702_v1, %v342_v63 }
 0x2d7   :  { %v2163_v4 = vpop.f32.mrf.mxu0 }
 0x2d8   :  { %v712_v5 = vmul.f32 0.1, %v710_v2  ;;  %v709_v6 = vmax.f32 %v707_v3, 0.0  ;;  %v358_v4 = vadd.f32 %v2860_v50, %v2916_v54  ;;  %v363_v54 = vadd.f32 %v2910_v48, %v2860_v50 }
 0x2da   :  { %v714_v7 = vadd.f32 %v712_v5, %v656_v22  ;;  %v711_v8 = vsub.f32 %v709_v6, %v2888_v28  ;;  %v350_v22 = vadd.f32 %v2079_v43, %v2860_v50 }
 0x2dc   :  { %717 = vst [vmem:[#allocation13 + $0x20] sm:$0xff] %v714_v7  ;;  %v713_v9 = vmul.f32 0.1, %v711_v8 }
 0x2de   :  { %v715_v10 = vadd.f32 %v713_v9, %v2888_v28 }
 0x2e0   :  { %718 = vst [vmem:[#allocation13 + $0x28] sm:$0xff] %v715_v10  ;;  %v2930_v11 = vpack.c.bf16 %v715_v10, %v714_v7 }
 0x2e2   :  { %2181 = vmatmul.mubr.bf16.vlgmr.msra.gmra.mxu1 %v2930_v11 }
 0x2e3   :  { %2205 = vmatpush3.bf16.msra.mxu1 %v2757_v12  ;;  %2220 = vmatprep.mubr.msk.bf16.mxu1 %vm2687_vm0, %v2686_v14 }
 0x2e4   :  { %2206 = vmatprep.subr.bf16.mxu1 %v2686_v14 }
 0x2e7   :  { %2207 = vmatpush3.bf16.msra.mxu1 %v2762_v15 }
 0x2e8   :  { %2208 = vmatprep.subr.bf16.mxu1 %v2686_v14 }
 0x2eb   :  { %2209 = vmatpush3.bf16.msra.mxu1 %v2768_v17 }
 0x2ec   :  { %2210 = vmatprep.subr.bf16.mxu1 %v2686_v14 }
 0x2ef   :  { %2211 = vmatpush3.bf16.msra.mxu1 %v2774_v19 }
 0x2f0   :  { %2212 = vmatprep.subr.bf16.mxu1 %v2686_v14 }
 0x2f3   :  { %2213 = vmatpush3.bf16.msra.mxu1 %v2780_v21 }
 0x2f4   :  { %2214 = vmatprep.subr.bf16.mxu1 %v2686_v14 }
 0x2f7   :  { %2215 = vmatpush3.bf16.msra.mxu1 %v2786_v23 }
 0x2f8   :  { %2216 = vmatprep.subr.bf16.mxu1 %v2686_v14 }
 0x2fb   :  { %2217 = vmatpush3.bf16.msra.mxu1 %v2792_v25 }
 0x2fc   :  { %2218 = vmatprep.subr.bf16.mxu1 %v2686_v14 }
 0x2ff   :  { %2219 = vmatpush3.bf16.msra.mxu1 %v2798_v26 }
 0x300   :  { %2244 = vmatprep.subr.bf16.mxu1 %v2686_v14 }
 0x3a2   :  { %v757_v16 = vpop.f32.mrf.mxu1 }
 0x3a3   :  { %v764_v18 = vadd.f32 %v757_v16, %v347_v13 }
 0x3a4   :  { %v2182_v20 = vpop.f32.mrf.mxu1 }
 0x3a5   :  { %v766_v24 = vmax.f32 %v764_v18, 0.0 }
 0x3a6   :  { %v760_v27 = vpop.f32.mrf.mxu1 }
 0x3a7   :  { %v768_v29 = vsub.f32 %v766_v24, %v714_v7  ;;  %v765_v31 = vadd.f32 %v760_v27, %v350_v22 }
 0x3a8   :  { %v2183_v46 = vpop.f32.mrf.mxu1 }
 0x3a9   :  { %v770_v59 = vmul.f32 0.1, %v768_v29  ;;  %v767_v60 = vmax.f32 %v765_v31, 0.0  ;;  %v366_v31 = vadd.f32 %v2914_v53, %v2860_v50  ;;  %v371_v53 = vadd.f32 %v2860_v50, %v2920_v56 }
 0x3ab   :  { %v772_v61 = vadd.f32 %v770_v59, %v714_v7  ;;  %v769_v62 = vsub.f32 %v767_v60, %v715_v10 }
 0x3ad   :  { %775 = vst [vmem:[#allocation13 + $0x30] sm:$0xff] %v772_v61  ;;  %v771_v63 = vmul.f32 0.1, %v769_v62 }
 0x3af   :  { %v773_v0 = vadd.f32 %v771_v63, %v715_v10 }
 0x3b1   :  { %776 = vst [vmem:[#allocation13 + $0x38] sm:$0xff] %v773_v0  ;;  %v2953_v1 = vpack.c.bf16 %v773_v0, %v772_v61 }
 0x3b3   :  { %2201 = vmatmul.mubr.bf16.vlgmr.msra.gmra.mxu0 %v2953_v1 }
 0x3b4   :  { %2225 = vmatpush3.bf16.msra.mxu0 %v2757_v12  ;;  %2240 = vmatprep.mubr.msk.bf16.mxu0 %vm2687_vm0, %v2686_v14 }
 0x3b5   :  { %2226 = vmatprep.subr.bf16.mxu0 %v2686_v14 }
 0x3b8   :  { %2227 = vmatpush3.bf16.msra.mxu0 %v2762_v15 }
 0x3b9   :  { %2228 = vmatprep.subr.bf16.mxu0 %v2686_v14 }
 0x3bc   :  { %2229 = vmatpush3.bf16.msra.mxu0 %v2768_v17 }
 0x3bd   :  { %2230 = vmatprep.subr.bf16.mxu0 %v2686_v14 }
 0x3c0   :  { %2231 = vmatpush3.bf16.msra.mxu0 %v2774_v19 }
 0x3c1   :  { %2232 = vmatprep.subr.bf16.mxu0 %v2686_v14 }
 0x3c4   :  { %2233 = vmatpush3.bf16.msra.mxu0 %v2780_v21 }
 0x3c5   :  { %2234 = vmatprep.subr.bf16.mxu0 %v2686_v14 }
 0x3c8   :  { %2235 = vmatpush3.bf16.msra.mxu0 %v2786_v23 }
 0x3c9   :  { %2236 = vmatprep.subr.bf16.mxu0 %v2686_v14 }
 0x3cc   :  { %2237 = vmatpush3.bf16.msra.mxu0 %v2792_v25 }
 0x3cd   :  { %2238 = vmatprep.subr.bf16.mxu0 %v2686_v14 }
 0x3d0   :  { %2239 = vmatpush3.bf16.msra.mxu0 %v2798_v26 }
 0x3d1   :  { %2264 = vmatprep.subr.bf16.mxu0 %v2686_v14 }
 0x473   :  { %v815_v43 = vpop.f32.mrf.mxu0 }
 0x474   :  { %v822_v2 = vadd.f32 %v815_v43, %v355_v30 }
 0x475   :  { %v2202_v3 = vpop.f32.mrf.mxu0 }
 0x476   :  { %v824_v5 = vmax.f32 %v822_v2, 0.0 }
 0x477   :  { %v818_v6 = vpop.f32.mrf.mxu0 }
 0x478   :  { %v826_v7 = vsub.f32 %v824_v5, %v772_v61  ;;  %v823_v8 = vadd.f32 %v818_v6, %v358_v4 }
 0x479   :  { %v2203_v9 = vpop.f32.mrf.mxu0 }
 0x47a   :  { %v828_v10 = vmul.f32 0.1, %v826_v7  ;;  %v825_v13 = vmax.f32 %v823_v8, 0.0  ;;  %v374_v7 = vadd.f32 %v2860_v50, %v2924_v58  ;;  %v379_v58 = vadd.f32 %v2918_v55, %v2860_v50 }
 0x47c   :  { %v830_v16 = vadd.f32 %v828_v10, %v772_v61  ;;  %v827_v18 = vsub.f32 %v825_v13, %v773_v0 }
 0x47e   :  { %833 = vst [vmem:[#allocation13 + $0x40] sm:$0xff] %v830_v16  ;;  %v829_v20 = vmul.f32 0.1, %v827_v18 }
 0x480   :  { %v831_v22 = vadd.f32 %v829_v20, %v773_v0 }
 0x482   :  { %834 = vst [vmem:[#allocation13 + $0x48] sm:$0xff] %v831_v22  ;;  %v2978_v52 = vpack.c.bf16 %v831_v22, %v830_v16 }
 0x484   :  { %2221 = vmatmul.mubr.bf16.vlgmr.msra.gmra.mxu1 %v2978_v52 }
 0x485   :  { %2245 = vmatpush3.bf16.msra.mxu1 %v2757_v12  ;;  %2260 = vmatprep.mubr.msk.bf16.mxu1 %vm2687_vm0, %v2686_v14 }
 0x486   :  { %2246 = vmatprep.subr.bf16.mxu1 %v2686_v14 }
 0x489   :  { %2247 = vmatpush3.bf16.msra.mxu1 %v2762_v15 }
 0x48a   :  { %2248 = vmatprep.subr.bf16.mxu1 %v2686_v14 }
 0x48d   :  { %2249 = vmatpush3.bf16.msra.mxu1 %v2768_v17 }
 0x48e   :  { %2250 = vmatprep.subr.bf16.mxu1 %v2686_v14 }
 0x491   :  { %2251 = vmatpush3.bf16.msra.mxu1 %v2774_v19 }
 0x492   :  { %2252 = vmatprep.subr.bf16.mxu1 %v2686_v14 }
 0x495   :  { %2253 = vmatpush3.bf16.msra.mxu1 %v2780_v21 }
 0x496   :  { %2254 = vmatprep.subr.bf16.mxu1 %v2686_v14 }
 0x499   :  { %2255 = vmatpush3.bf16.msra.mxu1 %v2786_v23 }
 0x49a   :  { %2256 = vmatprep.subr.bf16.mxu1 %v2686_v14 }
 0x49d   :  { %2257 = vmatpush3.bf16.msra.mxu1 %v2792_v25 }
 0x49e   :  { %2258 = vmatprep.subr.bf16.mxu1 %v2686_v14 }
 0x4a1   :  { %2259 = vmatpush3.bf16.msra.mxu1 %v2798_v26 }
 0x4a2   :  { %2284 = vmatprep.subr.bf16.mxu1 %v2686_v14 }
 0x544   :  { %v873_v24 = vpop.f32.mrf.mxu1 }
 0x545   :  { %v880_v27 = vadd.f32 %v873_v24, %v363_v54 }
 0x546   :  { %v2222_v29 = vpop.f32.mrf.mxu1 }
 0x547   :  { %v882_v46 = vmax.f32 %v880_v27, 0.0 }
 0x548   :  { %v876_v59 = vpop.f32.mrf.mxu1 }
 0x549   :  { %v884_v60 = vsub.f32 %v882_v46, %v830_v16  ;;  %v881_v61 = vadd.f32 %v876_v59, %v366_v31  ;;  %v382_v59 = vadd.f32 %v2922_v57, %v2860_v50  ;;  %v387_v57 = vadd.f32 %v2860_v50, %v2829_v33 }
 0x54a   :  { %v2223_v62 = vpop.f32.mrf.mxu1 }
 0x54b   :  { %v886_v63 = vmul.f32 0.1, %v884_v60  ;;  %v883_v0 = vmax.f32 %v881_v61, 0.0 }
 0x54d   :  { %v888_v30 = vadd.f32 %v886_v63, %v830_v16  ;;  %v885_v43 = vsub.f32 %v883_v0, %v831_v22 }
 0x54f   :  { %891 = vst [vmem:[#allocation13 + $0x50] sm:$0xff] %v888_v30  ;;  %v887_v2 = vmul.f32 0.1, %v885_v43 }
 0x551   :  { %v889_v3 = vadd.f32 %v887_v2, %v831_v22 }
 0x553   :  { %892 = vst [vmem:[#allocation13 + $0x58] sm:$0xff] %v889_v3  ;;  %v3003_v48 = vpack.c.bf16 %v889_v3, %v888_v30 }
 0x555   :  { %2241 = vmatmul.mubr.bf16.vlgmr.msra.gmra.mxu0 %v3003_v48 }
 0x556   :  { %2265 = vmatpush3.bf16.msra.mxu0 %v2757_v12  ;;  %2280 = vmatprep.mubr.msk.bf16.mxu0 %vm2687_vm0, %v2686_v14 }
 0x557   :  { %2266 = vmatprep.subr.bf16.mxu0 %v2686_v14 }
 0x55a   :  { %2267 = vmatpush3.bf16.msra.mxu0 %v2762_v15 }
 0x55b   :  { %2268 = vmatprep.subr.bf16.mxu0 %v2686_v14 }
 0x55e   :  { %2269 = vmatpush3.bf16.msra.mxu0 %v2768_v17 }
 0x55f   :  { %2270 = vmatprep.subr.bf16.mxu0 %v2686_v14 }
 0x562   :  { %2271 = vmatpush3.bf16.msra.mxu0 %v2774_v19 }
 0x563   :  { %2272 = vmatprep.subr.bf16.mxu0 %v2686_v14 }
 0x566   :  { %2273 = vmatpush3.bf16.msra.mxu0 %v2780_v21 }
 0x567   :  { %2274 = vmatprep.subr.bf16.mxu0 %v2686_v14 }
 0x56a   :  { %2275 = vmatpush3.bf16.msra.mxu0 %v2786_v23 }
 0x56b   :  { %2276 = vmatprep.subr.bf16.mxu0 %v2686_v14 }
 0x56e   :  { %2277 = vmatpush3.bf16.msra.mxu0 %v2792_v25 }
 0x56f   :  { %2278 = vmatprep.subr.bf16.mxu0 %v2686_v14 }
 0x572   :  { %2279 = vmatpush3.bf16.msra.mxu0 %v2798_v26 }
 0x573   :  { %2304 = vmatprep.subr.bf16.mxu0 %v2686_v14 }
 0x615   :  { %v931_v4 = vpop.f32.mrf.mxu0 }
 0x616   :  { %v938_v5 = vadd.f32 %v931_v4, %v371_v53 }
 0x617   :  { %v2242_v6 = vpop.f32.mrf.mxu0 }
 0x618   :  { %v940_v8 = vmax.f32 %v938_v5, 0.0 }
 0x619   :  { %v934_v9 = vpop.f32.mrf.mxu0 }
 0x61a   :  { %v942_v10 = vsub.f32 %v940_v8, %v888_v30  ;;  %v939_v13 = vadd.f32 %v934_v9, %v374_v7  ;;  %v390_v8 = vadd.f32 %v2860_v50, %v2833_v35  ;;  %v395_v35 = vadd.f32 %v2827_v32, %v2860_v50 }
 0x61b   :  { %v2243_v16 = vpop.f32.mrf.mxu0 }
 0x61c   :  { %v944_v18 = vmul.f32 0.1, %v942_v10  ;;  %v941_v20 = vmax.f32 %v939_v13, 0.0 }
 0x61e   :  { %v946_v22 = vadd.f32 %v944_v18, %v888_v30  ;;  %v943_v54 = vsub.f32 %v941_v20, %v889_v3 }
 0x620   :  { %949 = vst [vmem:[#allocation13 + $0x60] sm:$0xff] %v946_v22  ;;  %v945_v24 = vmul.f32 0.1, %v943_v54 }
 0x622   :  { %v947_v27 = vadd.f32 %v945_v24, %v889_v3 }
 0x624   :  { %950 = vst [vmem:[#allocation13 + $0x68] sm:$0xff] %v947_v27  ;;  %v3028_v56 = vpack.c.bf16 %v947_v27, %v946_v22 }
 0x626   :  { %2261 = vmatmul.mubr.bf16.vlgmr.msra.gmra.mxu1 %v3028_v56 }
 0x627   :  { %2285 = vmatpush3.bf16.msra.mxu1 %v2757_v12  ;;  %2300 = vmatprep.mubr.msk.bf16.mxu1 %vm2687_vm0, %v2686_v14 }
 0x628   :  { %2286 = vmatprep.subr.bf16.mxu1 %v2686_v14 }
 0x62b   :  { %2287 = vmatpush3.bf16.msra.mxu1 %v2762_v15 }
 0x62c   :  { %2288 = vmatprep.subr.bf16.mxu1 %v2686_v14 }
 0x62f   :  { %2289 = vmatpush3.bf16.msra.mxu1 %v2768_v17 }
 0x630   :  { %2290 = vmatprep.subr.bf16.mxu1 %v2686_v14 }
 0x633   :  { %2291 = vmatpush3.bf16.msra.mxu1 %v2774_v19 }
 0x634   :  { %2292 = vmatprep.subr.bf16.mxu1 %v2686_v14 }
 0x637   :  { %2293 = vmatpush3.bf16.msra.mxu1 %v2780_v21 }
 0x638   :  { %2294 = vmatprep.subr.bf16.mxu1 %v2686_v14 }
 0x63b   :  { %2295 = vmatpush3.bf16.msra.mxu1 %v2786_v23 }
 0x63c   :  { %2296 = vmatprep.subr.bf16.mxu1 %v2686_v14 }
 0x63f   :  { %2297 = vmatpush3.bf16.msra.mxu1 %v2792_v25 }
 0x640   :  { %2298 = vmatprep.subr.bf16.mxu1 %v2686_v14 }
 0x643   :  { %2299 = vmatpush3.bf16.msra.mxu1 %v2798_v26 }
 0x644   :  { %2324 = vmatprep.subr.bf16.mxu1 %v2686_v14 }
 0x6e6   :  { %v989_v29 = vpop.f32.mrf.mxu1 }
 0x6e7   :  { %v996_v31 = vadd.f32 %v989_v29, %v379_v58 }
 0x6e8   :  { %v2262_v46 = vpop.f32.mrf.mxu1 }
 0x6e9   :  { %v998_v60 = vmax.f32 %v996_v31, 0.0 }
 0x6ea   :  { %v992_v61 = vpop.f32.mrf.mxu1 }
 0x6eb   :  { %v1000_v62 = vsub.f32 %v998_v60, %v946_v22  ;;  %v997_v63 = vadd.f32 %v992_v61, %v382_v59  ;;  %v398_v59 = vadd.f32 %v2831_v34, %v2860_v50 }
 0x6ec   :  { %v2263_v0 = vpop.f32.mrf.mxu1 }
 0x6ed   :  { %v1002_v30 = vmul.f32 0.1, %v1000_v62  ;;  %v999_v43 = vmax.f32 %v997_v63, 0.0 }
 0x6ef   :  { %v1004_v2 = vadd.f32 %v1002_v30, %v946_v22  ;;  %v1001_v3 = vsub.f32 %v999_v43, %v947_v27 }
 0x6f1   :  { %1007 = vst [vmem:[#allocation13 + $0x70] sm:$0xff] %v1004_v2  ;;  %v1003_v53 = vmul.f32 0.1, %v1001_v3 }
 0x6f3   :  { %v1005_v4 = vadd.f32 %v1003_v53, %v947_v27 }
 0x6f5   :  { %1008 = vst [vmem:[#allocation13 + $0x78] sm:$0xff] %v1005_v4  ;;  %v3053_v55 = vpack.c.bf16 %v1005_v4, %v1004_v2 }
 0x6f7   :  { %2281 = vmatmul.mubr.bf16.vlgmr.msra.gmra.mxu0 %v3053_v55 }
 0x6f8   :  { %2305 = vmatpush3.bf16.msra.mxu0 %v2757_v12  ;;  %2320 = vmatprep.mubr.msk.bf16.mxu0 %vm2687_vm0, %v2686_v14 }
 0x6f9   :  { %2306 = vmatprep.subr.bf16.mxu0 %v2686_v14 }
 0x6fc   :  { %2307 = vmatpush3.bf16.msra.mxu0 %v2762_v15 }
 0x6fd   :  { %2308 = vmatprep.subr.bf16.mxu0 %v2686_v14 }
 0x700   :  { %2309 = vmatpush3.bf16.msra.mxu0 %v2768_v17 }
 0x701   :  { %2310 = vmatprep.subr.bf16.mxu0 %v2686_v14 }
 0x704   :  { %2311 = vmatpush3.bf16.msra.mxu0 %v2774_v19 }
 0x705   :  { %2312 = vmatprep.subr.bf16.mxu0 %v2686_v14 }
 0x708   :  { %2313 = vmatpush3.bf16.msra.mxu0 %v2780_v21 }
 0x709   :  { %2314 = vmatprep.subr.bf16.mxu0 %v2686_v14 }
 0x70c   :  { %2315 = vmatpush3.bf16.msra.mxu0 %v2786_v23 }
 0x70d   :  { %2316 = vmatprep.subr.bf16.mxu0 %v2686_v14 }
 0x710   :  { %2317 = vmatpush3.bf16.msra.mxu0 %v2792_v25 }
 0x711   :  { %2318 = vmatprep.subr.bf16.mxu0 %v2686_v14 }
 0x714   :  { %2319 = vmatpush3.bf16.msra.mxu0 %v2798_v26 }
 0x715   :  { %2344 = vmatprep.subr.bf16.mxu0 %v2686_v14 }
 0x7b7   :  { %v1047_v5 = vpop.f32.mrf.mxu0 }
 0x7b8   :  { %v1054_v6 = vadd.f32 %v1047_v5, %v387_v57 }
 0x7b9   :  { %v2282_v7 = vpop.f32.mrf.mxu0 }
 0x7ba   :  { %v1056_v9 = vmax.f32 %v1054_v6, 0.0  ;;  %v406_v6 = vadd.f32 %v2860_v50, %v2841_v39  ;;  %v414_v39 = vadd.f32 %v2839_v38, %v2860_v50  ;;  %v2542_v38 = vld [vmem:[#allocation9 + $0x30] sm:$0xff]  }
 0x7bb   :  { %v1050_v10 = vpop.f32.mrf.mxu0 }
 0x7bc   :  { %v1058_v13 = vsub.f32 %v1056_v9, %v1004_v2  ;;  %v1055_v16 = vadd.f32 %v1050_v10, %v390_v8 }
 0x7bd   :  { %v2283_v18 = vpop.f32.mrf.mxu0 }
 0x7be   :  { %v1060_v20 = vmul.f32 0.1, %v1058_v13  ;;  %v1057_v22 = vmax.f32 %v1055_v16, 0.0 }
 0x7c0   :  { %v1062_v54 = vadd.f32 %v1060_v20, %v1004_v2  ;;  %v1059_v24 = vsub.f32 %v1057_v22, %v1005_v4 }
 0x7c2   :  { %1065 = vst [vmem:[#allocation13 + $0x80] sm:$0xff] %v1062_v54  ;;  %v1061_v27 = vmul.f32 0.1, %v1059_v24 }
 0x7c4   :  { %v1063_v58 = vadd.f32 %v1061_v27, %v1005_v4  ;;  %v3131_v27 = vld [vmem:[#allocation9 + $0x38] sm:$0xff]  }
 0x7c6   :  { %1066 = vst [vmem:[#allocation13 + $0x88] sm:$0xff] %v1063_v58  ;;  %v3078_v33 = vpack.c.bf16 %v1063_v58, %v1062_v54 }
 0x7c8   :  { %2301 = vmatmul.mubr.bf16.vlgmr.msra.gmra.mxu1 %v3078_v33 }
 0x7c9   :  { %2325 = vmatpush3.bf16.msra.mxu1 %v2757_v12  ;;  %2340 = vmatprep.mubr.msk.bf16.mxu1 %vm2687_vm0, %v2686_v14 }
 0x7ca   :  { %2326 = vmatprep.subr.bf16.mxu1 %v2686_v14 }
 0x7cd   :  { %2327 = vmatpush3.bf16.msra.mxu1 %v2762_v15 }
 0x7ce   :  { %2328 = vmatprep.subr.bf16.mxu1 %v2686_v14 }
 0x7d1   :  { %2329 = vmatpush3.bf16.msra.mxu1 %v2768_v17 }
 0x7d2   :  { %2330 = vmatprep.subr.bf16.mxu1 %v2686_v14 }
 0x7d5   :  { %2331 = vmatpush3.bf16.msra.mxu1 %v2774_v19 }
 0x7d6   :  { %2332 = vmatprep.subr.bf16.mxu1 %v2686_v14 }
 0x7d9   :  { %2333 = vmatpush3.bf16.msra.mxu1 %v2780_v21 }
 0x7da   :  { %2334 = vmatprep.subr.bf16.mxu1 %v2686_v14 }
 0x7dd   :  { %2335 = vmatpush3.bf16.msra.mxu1 %v2786_v23 }
 0x7de   :  { %2336 = vmatprep.subr.bf16.mxu1 %v2686_v14 }
 0x7e1   :  { %2337 = vmatpush3.bf16.msra.mxu1 %v2792_v25 }
 0x7e2   :  { %2338 = vmatprep.subr.bf16.mxu1 %v2686_v14 }
 0x7e5   :  { %2339 = vmatpush3.bf16.msra.mxu1 %v2798_v26 }
 0x7e6   :  { %2364 = vmatprep.subr.bf16.mxu1 %v2686_v14 }
 0x888   :  { %v1105_v29 = vpop.f32.mrf.mxu1 }
 0x889   :  { %v1112_v31 = vadd.f32 %v1105_v29, %v395_v35 }
 0x88a   :  { %v2302_v46 = vpop.f32.mrf.mxu1 }
 0x88b   :  { %v1114_v60 = vmax.f32 %v1112_v31, 0.0 }
 0x88c   :  { %v1108_v61 = vpop.f32.mrf.mxu1 }
 0x88d   :  { %v1116_v62 = vsub.f32 %v1114_v60, %v1062_v54  ;;  %v1113_v63 = vadd.f32 %v1108_v61, %v398_v59 }
 0x88e   :  { %v2303_v0 = vpop.f32.mrf.mxu1 }
 0x88f   :  { %v1118_v30 = vmul.f32 0.1, %v1116_v62  ;;  %v1115_v43 = vmax.f32 %v1113_v63, 0.0  ;;  %v2543_v62 = vld [vmem:[#allocation9 + $0x28] sm:$0xff]   ;;  %v2544_v63 = vld [vmem:[#allocation9 + $0x20] sm:$0xff]   ;;  %v2545_v0 = vld [vmem:[#allocation9 + $0x18] sm:$0xff]  }
 0x891   :  { %v1120_v2 = vadd.f32 %v1118_v30, %v1062_v54  ;;  %v1117_v3 = vsub.f32 %v1115_v43, %v1063_v58  ;;  %v2546_v30 = vld [vmem:[#allocation9 + $0x10] sm:$0xff]   ;;  %v2547_v43 = vld [vmem:[#allocation9 + $0x8] sm:$0xff]  }
 0x893   :  { %1123 = vst [vmem:[#allocation13 + $0x90] sm:$0xff] %v1120_v2  ;;  %v1119_v53 = vmul.f32 0.1, %v1117_v3  ;;  %v419_v3 = vadd.f32 %v2860_v50, %v2845_v41 }
 0x895   :  { %v1121_v4 = vadd.f32 %v1119_v53, %v1063_v58 }
 0x897   :  { %1124 = vst [vmem:[#allocation13 + $0x98] sm:$0xff] %v1121_v4  ;;  %v3103_v32 = vpack.c.bf16 %v1121_v4, %v1120_v2 }
 0x899   :  { %2321 = vmatmul.mubr.bf16.vlgmr.msra.gmra.mxu0 %v3103_v32 }
 0x89a   :  { %2345 = vmatpush3.bf16.msra.mxu0 %v2757_v12  ;;  %2360 = vmatprep.mubr.msk.bf16.mxu0 %vm2687_vm0, %v2686_v14  ;;  %v403_v12 = vadd.f32 %v2860_v50, %v2837_v37 }
 0x89b   :  { %2346 = vmatprep.subr.bf16.mxu0 %v2686_v14 }
 0x89e   :  { %2347 = vmatpush3.bf16.msra.mxu0 %v2762_v15 }
 0x89f   :  { %2348 = vmatprep.subr.bf16.mxu0 %v2686_v14 }
 0x8a2   :  { %2349 = vmatpush3.bf16.msra.mxu0 %v2768_v17 }
 0x8a3   :  { %2350 = vmatprep.subr.bf16.mxu0 %v2686_v14 }
 0x8a6   :  { %2351 = vmatpush3.bf16.msra.mxu0 %v2774_v19 }
 0x8a7   :  { %2352 = vmatprep.subr.bf16.mxu0 %v2686_v14 }
 0x8aa   :  { %2353 = vmatpush3.bf16.msra.mxu0 %v2780_v21 }
 0x8ab   :  { %2354 = vmatprep.subr.bf16.mxu0 %v2686_v14 }
 0x8ae   :  { %2355 = vmatpush3.bf16.msra.mxu0 %v2786_v23 }
 0x8af   :  { %2356 = vmatprep.subr.bf16.mxu0 %v2686_v14 }
 0x8b2   :  { %2357 = vmatpush3.bf16.msra.mxu0 %v2792_v25 }
 0x8b3   :  { %2358 = vmatprep.subr.bf16.mxu0 %v2686_v14 }
 0x8b6   :  { %2359 = vmatpush3.bf16.msra.mxu0 %v2798_v26 }
 0x8b7   :  { %2384 = vmatprep.subr.bf16.mxu0 %v2686_v14 }
 0x959   :  { %v1163_v34 = vpop.f32.mrf.mxu0 }
 0x95a   :  { %v1170_v57 = vadd.f32 %v1163_v34, %v403_v12  ;;  %v422_v34 = vadd.f32 %v2860_v50, %v2849_v44  ;;  %v2533_v44 = vld [vmem:[#allocation10 + $0x38] sm:$0xff]  }
 0x95b   :  { %v2322_v5 = vpop.f32.mrf.mxu0 }
 0x95c   :  { %v1172_v7 = vmax.f32 %v1170_v57, 0.0 }
 0x95d   :  { %v1166_v8 = vpop.f32.mrf.mxu0 }
 0x95e   :  { %v1174_v9 = vsub.f32 %v1172_v7, %v1120_v2  ;;  %v1171_v10 = vadd.f32 %v1166_v8, %v406_v6 }
 0x95f   :  { %v2323_v13 = vpop.f32.mrf.mxu0 }
 0x960   :  { %v1176_v16 = vmul.f32 0.1, %v1174_v9  ;;  %v1173_v18 = vmax.f32 %v1171_v10, 0.0 }
 0x962   :  { %v1178_v20 = vadd.f32 %v1176_v16, %v1120_v2  ;;  %v1175_v22 = vsub.f32 %v1173_v18, %v1121_v4  ;;  %v2548_v2 = vld [vmem:[#allocation9] sm:$0xff]  }
 0x964   :  { %1181 = vst [vmem:[#allocation13 + $0xa0] sm:$0xff] %v1178_v20  ;;  %v1177_v54 = vmul.f32 0.1, %v1175_v22  ;;  %v427_v22 = vadd.f32 %v2843_v40, %v2860_v50 }
 0x966   :  { %v1179_v24 = vadd.f32 %v1177_v54, %v1121_v4 }
 0x968   :  { %1182 = vst [vmem:[#allocation13 + $0xa8] sm:$0xff] %v1179_v24  ;;  %v3128_v37 = vpack.c.bf16 %v1179_v24, %v1178_v20 }
 0x96a   :  { %2341 = vmatmul.mubr.bf16.vlgmr.msra.gmra.mxu1 %v3128_v37 }
 0x96b   :  { %2365 = vmatpush3.bf16.msra.mxu1 %v3131_v27  ;;  %2380 = vmatprep.mubr.msk.bf16.mxu1 %vm2687_vm0, %v2686_v14 }
 0x96c   :  { %2366 = vmatprep.subr.bf16.mxu1 %v2686_v14 }
 0x96f   :  { %2367 = vmatpush3.bf16.msra.mxu1 %v2762_v15  ;;  %v411_v15 = vadd.f32 %v2835_v36, %v2860_v50 }
 0x970   :  { %2368 = vmatprep.subr.bf16.mxu1 %v2686_v14 }
 0x973   :  { %2369 = vmatpush3.bf16.msra.mxu1 %v2768_v17 }
 0x974   :  { %2370 = vmatprep.subr.bf16.mxu1 %v2686_v14 }
 0x977   :  { %2371 = vmatpush3.bf16.msra.mxu1 %v2774_v19 }
 0x978   :  { %2372 = vmatprep.subr.bf16.mxu1 %v2686_v14 }
 0x97b   :  { %2373 = vmatpush3.bf16.msra.mxu1 %v2780_v21 }
 0x97c   :  { %2374 = vmatprep.subr.bf16.mxu1 %v2686_v14 }
 0x97f   :  { %2375 = vmatpush3.bf16.msra.mxu1 %v2786_v23 }
 0x980   :  { %2376 = vmatprep.subr.bf16.mxu1 %v2686_v14 }
 0x983   :  { %2377 = vmatpush3.bf16.msra.mxu1 %v2792_v25 }
 0x984   :  { %2378 = vmatprep.subr.bf16.mxu1 %v2686_v14 }
 0x987   :  { %2379 = vmatpush3.bf16.msra.mxu1 %v2798_v26 }
 0x988   :  { %2404 = vmatprep.subr.bf16.mxu1 %v2686_v14 }
 0xa2a   :  { %v1221_v17 = vpop.f32.mrf.mxu1 }
 0xa2b   :  { %v1228_v19 = vadd.f32 %v1221_v17, %v411_v15  ;;  %v430_v15 = vadd.f32 %v2847_v42, %v2860_v50  ;;  %v2535_v42 = vld [vmem:[#allocation10 + $0x28] sm:$0xff]   ;;  %v2536_v50 = vld [vmem:[#allocation10 + $0x20] sm:$0xff]  }
 0xa2c   :  { %v2342_v21 = vpop.f32.mrf.mxu1 }
 0xa2d   :  { %v1230_v23 = vmax.f32 %v1228_v19, 0.0 }
 0xa2e   :  { %v1224_v58 = vpop.f32.mrf.mxu1 }
 0xa2f   :  { %v1232_v35 = vsub.f32 %v1230_v23, %v1178_v20  ;;  %v1229_v29 = vadd.f32 %v1224_v58, %v414_v39 }
 0xa30   :  { %v2343_v25 = vpop.f32.mrf.mxu1 }
 0xa31   :  { %v1234_v31 = vmul.f32 0.1, %v1232_v35  ;;  %v1231_v46 = vmax.f32 %v1229_v29, 0.0 }
 0xa33   :  { %v1236_v59 = vadd.f32 %v1234_v31, %v1178_v20  ;;  %v1233_v26 = vsub.f32 %v1231_v46, %v1179_v24  ;;  %v1476_v46 = vld [vmem:[#allocation13 + $0x8] sm:$0xff] }
 0xa35   :  { %1239 = vst [vmem:[#allocation13 + $0xb0] sm:$0xff] %v1236_v59  ;;  %v1235_v60 = vmul.f32 0.1, %v1233_v26  ;;  %v2534_v26 = vld [vmem:[#allocation10 + $0x30] sm:$0xff]  }
 0xa37   :  { %v1237_v61 = vadd.f32 %v1235_v60, %v1179_v24 }
 0xa39   :  { %1240 = vst [vmem:[#allocation13 + $0xb8] sm:$0xff] %v1237_v61  ;;  %v3155_v36 = vpack.c.bf16 %v1237_v61, %v1236_v59 }
 0xa3b   :  { %2361 = vmatmul.mubr.bf16.vlgmr.msra.gmra.mxu0 %v3155_v36 }
 0xa3c   :  { %2385 = vmatpush3.bf16.msra.mxu0 %v3131_v27  ;;  %2400 = vmatprep.mubr.msk.bf16.mxu0 %vm2687_vm0, %v2686_v14 }
 0xa3d   :  { %2386 = vmatprep.subr.bf16.mxu0 %v2686_v14 }
 0xa40   :  { %2387 = vmatpush3.bf16.msra.mxu0 %v2542_v38 }
 0xa41   :  { %2388 = vmatprep.subr.bf16.mxu0 %v2686_v14 }
 0xa44   :  { %2389 = vmatpush3.bf16.msra.mxu0 %v2543_v62 }
 0xa45   :  { %2390 = vmatprep.subr.bf16.mxu0 %v2686_v14 }
 0xa48   :  { %2391 = vmatpush3.bf16.msra.mxu0 %v2544_v63 }
 0xa49   :  { %2392 = vmatprep.subr.bf16.mxu0 %v2686_v14 }
 0xa4c   :  { %2393 = vmatpush3.bf16.msra.mxu0 %v2545_v0 }
 0xa4d   :  { %2394 = vmatprep.subr.bf16.mxu0 %v2686_v14 }
 0xa50   :  { %2395 = vmatpush3.bf16.msra.mxu0 %v2546_v30 }
 0xa51   :  { %2396 = vmatprep.subr.bf16.mxu0 %v2686_v14 }
 0xa54   :  { %2397 = vmatpush3.bf16.msra.mxu0 %v2547_v43 }
 0xa55   :  { %2398 = vmatprep.subr.bf16.mxu0 %v2686_v14 }
 0xa58   :  { %2399 = vmatpush3.bf16.msra.mxu0 %v2548_v2 }
 0xa59   :  { %2424 = vmatprep.subr.bf16.mxu0 %v2533_v44 }
 0xafb   :  { %v1279_v53 = vpop.f32.mrf.mxu0 }
 0xafc   :  { %v1286_v4 = vadd.f32 %v1279_v53, %v419_v3 }
 0xafd   :  { %v2362_v12 = vpop.f32.mrf.mxu0 }
 0xafe   :  { %v1288_v57 = vmax.f32 %v1286_v4, 0.0  ;;  %v3221_v12 = vld [vmem:[%s3274_s5] ss:$0 sm:$0xff]  ;;  %s2689_s5 = smov [#allocation13]  }
 0xaff   :  { %v1282_v5 = vpop.f32.mrf.mxu0  ;;  %s1804_s24 = sshll.u32 %s2689_s5, 4  ;;  %s1805_s24 = int_to_ptr.vmem [resolvable:$true] %s1804_s24 }
 0xb00   :  { %v1290_v6 = vsub.f32 %v1288_v57, %v1236_v59  ;;  %v1287_v7 = vadd.f32 %v1282_v5, %v422_v34  ;;  %s2630_s25 = scalar_lea.vmem %s1805_s24, 4096  ;;  %p2635_p7 = scmp.lt.s32.totalorder %s1805_s24, %s1805_s24 }
 0xb01   :  { %v2363_v8 = vpop.f32.mrf.mxu0  ;;  %p2631_p6 = scmp.ne.s32.totalorder %s1805_s24, %s2630_s25  ;;  %p2636_p8 = scmp.lt.s32.totalorder %s2630_s25, %s2630_s25 }
 0xb02   :  { %v1292_v9 = vmul.f32 0.1, %v1290_v6  ;;  %v1289_v10 = vmax.f32 %v1287_v7, 0.0 }
 0xb03   :  { %p2637_p9 = por %p2636_p8, %p2635_p7 }
 0xb04   :  { %v1294_v13 = vadd.f32 %v1292_v9, %v1236_v59  ;;  %v1291_v16 = vsub.f32 %v1289_v10, %v1237_v61  ;;  %v1475_v59 = vld [vmem:[#allocation13] sm:$0xff] }
 0xb05   :  { %v1507_v60 = vpack.c.bf16 %v1476_v46, %v1475_v59  ;;  %p2638_p10 = pnand %p2637_p9, %p2631_p6 }
 0xb06   :  { %1297 = vst [vmem:[#allocation13 + $0xc0] sm:$0xff] %v1294_v13  ;;  %v1293_v18 = vmul.f32 0.1, %v1291_v16 }
 0xb08   :  { %v1295_v20 = vadd.f32 %v1293_v18, %v1237_v61  ;;  %v2537_v61 = vld [vmem:[#allocation10 + $0x18] sm:$0xff]  }
 0xb0a   :  { %1298 = vst [vmem:[#allocation13 + $0xc8] sm:$0xff] %v1295_v20  ;;  %v3172_v41 = vpack.c.bf16 %v1295_v20, %v1294_v13 }
 0xb0c   :  { %2381 = vmatmul.mubr.bf16.vlgmr.msra.gmra.mxu1 %v3172_v41 }
 0xb0d   :  { %2405 = vmatpush3.bf16.msra.mxu1 %v3131_v27  ;;  %2420 = vmatprep.mubr.msk.bf16.mxu1 %vm2687_vm0, %v2686_v14 }
 0xb0e   :  { %2406 = vmatprep.subr.bf16.mxu1 %v2686_v14 }
 0xb11   :  { %2407 = vmatpush3.bf16.msra.mxu1 %v2542_v38  ;;  %v2538_v38 = vld [vmem:[#allocation10 + $0x10] sm:$0xff]  }
 0xb12   :  { %2408 = vmatprep.subr.bf16.mxu1 %v2686_v14 }
 0xb15   :  { %2409 = vmatpush3.bf16.msra.mxu1 %v2543_v62  ;;  %v2539_v62 = vld [vmem:[#allocation10 + $0x8] sm:$0xff]  }
 0xb16   :  { %2410 = vmatprep.subr.bf16.mxu1 %v2686_v14 }
 0xb19   :  { %2411 = vmatpush3.bf16.msra.mxu1 %v2544_v63  ;;  %v2540_v63 = vld [vmem:[#allocation10] sm:$0xff]  }
 0xb1a   :  { %2412 = vmatprep.subr.bf16.mxu1 %v2686_v14 }
 0xb1d   :  { %2413 = vmatpush3.bf16.msra.mxu1 %v2545_v0  ;;  %v1477_v0 = vld [vmem:[#allocation13 + $0x10] sm:$0xff] }
 0xb1e   :  { %2414 = vmatprep.subr.bf16.mxu1 %v2686_v14 }
 0xb21   :  { %2415 = vmatpush3.bf16.msra.mxu1 %v2546_v30  ;;  %v1508_v30 = vpack.c.bf16 %v2888_v28, %v1477_v0  ;;  %v3204_v28 = vld [vmem:[%s3271_s2] ss:$0 sm:$0xff] }
 0xb22   :  { %2416 = vmatprep.subr.bf16.mxu1 %v2686_v14 }
 0xb25   :  { %2417 = vmatpush3.bf16.msra.mxu1 %v2547_v43 }
 0xb26   :  { %2418 = vmatprep.subr.bf16.mxu1 %v2686_v14 }
 0xb29   :  { %2419 = vmatpush3.bf16.msra.mxu1 %v2548_v2 }
 0xbcc   :  { %v1337_v54 = vpop.f32.mrf.mxu1 }
 0xbcd   :  { %v1344_v24 = vadd.f32 %v1337_v54, %v427_v22 }
 0xbce   :  { %v2382_v27 = vpop.f32.mrf.mxu1 }
 0xbcf   :  { %v1346_v17 = vmax.f32 %v1344_v24, 0.0 }
 0xbd0   :  { %v1340_v19 = vpop.f32.mrf.mxu1 }
 0xbd1   :  { %v1348_v21 = vsub.f32 %v1346_v17, %v1294_v13  ;;  %v1345_v39 = vadd.f32 %v1340_v19, %v430_v15 }
 0xbd2   :  { %v2383_v23 = vpop.f32.mrf.mxu1 }
 0xbd3   :  { %v1350_v58 = vmul.f32 0.1, %v1348_v21  ;;  %v1347_v35 = vmax.f32 %v1345_v39, 0.0 }
 0xbd5   :  { %v1352_v14 = vadd.f32 %v1350_v58, %v1294_v13  ;;  %v1349_v29 = vsub.f32 %v1347_v35, %v1295_v20 }
 0xbd7   :  { %1355 = vst [vmem:[#allocation13 + $0xd0] sm:$0xff] %v1352_v14  ;;  %v1351_v25 = vmul.f32 0.1, %v1349_v29 }
 0xbd9   :  { %v1353_v31 = vadd.f32 %v1351_v25, %v1295_v20 }
 0xbdb   :  { %1356 = vst [vmem:[#allocation13 + $0xd8] sm:$0xff] %v1353_v31  ;;  %v1360_v40 = vpack.c.bf16 %v1353_v31, %v1352_v14 }
 0xbdd   :  { %2401 = vmatmul.mubr.bf16.vlgmr.msra.gmra.mxu0 %v1360_v40 }
 0xbde   :  { %2425 = vmatpush3.bf16.msra.mxu0 %v2533_v44  ;;  %2440 = vmatprep.mubr.bf16.mxu0 %v1507_v60 }
 0xbdf   :  { %2426 = vmatprep.subr.bf16.mxu0 %v2534_v26 }
 0xbe2   :  { %2427 = vmatpush3.bf16.msra.mxu0 %v2534_v26 }
 0xbe3   :  { %2428 = vmatprep.subr.bf16.mxu0 %v2535_v42 }
 0xbe6   :  { %2429 = vmatpush3.bf16.msra.mxu0 %v2535_v42 }
 0xbe7   :  { %2430 = vmatprep.subr.bf16.mxu0 %v2536_v50 }
 0xbea   :  { %2431 = vmatpush3.bf16.msra.mxu0 %v2536_v50 }
 0xbeb   :  { %2432 = vmatprep.subr.bf16.mxu0 %v2537_v61 }
 0xbee   :  { %2433 = vmatpush3.bf16.msra.mxu0 %v2537_v61 }
 0xbef   :  { %2434 = vmatprep.subr.bf16.mxu0 %v2538_v38 }
 0xbf2   :  { %2435 = vmatpush3.bf16.msra.mxu0 %v2538_v38 }
 0xbf3   :  { %2436 = vmatprep.subr.bf16.mxu0 %v2539_v62 }
 0xbf6   :  { %2437 = vmatpush3.bf16.msra.mxu0 %v2539_v62 }
 0xbf7   :  { %2438 = vmatprep.subr.bf16.mxu0 %v2540_v63 }
 0xbfa   :  { %2439 = vmatpush3.bf16.msra.mxu0 %v2540_v63 }
 0xbfd   :  { %2441 = vmatmul.mubr.bf16.vlgmr.msra.gmra.mxu0 %v1508_v30 }
 0xbfe   :  { %2444 = vmatprep.mubr.bf16.mxu0 %v2930_v11  ;;  %v435_v11 = vadd.f32 %v3204_v28, %v2853_v47 }
 0xc05   :  { %2445 = vmatmul.mubr.bf16.gmra.mxu0 %v2953_v1 }
 0xc06   :  { %2448 = vmatprep.mubr.bf16.mxu0 %v2978_v52 }
 0xc0d   :  { %2449 = vmatmul.mubr.bf16.gmra.mxu0 %v3003_v48 }
 0xc0e   :  { %2452 = vmatprep.mubr.bf16.mxu0 %v3028_v56  ;;  %v438_v56 = vadd.f32 %v3204_v28, %v2862_v51 }
 0xc15   :  { %2453 = vmatmul.mubr.bf16.gmra.mxu0 %v3053_v55 }
 0xc16   :  { %2456 = vmatprep.mubr.bf16.mxu0 %v3078_v33 }
 0xc1d   :  { %2457 = vmatmul.mubr.bf16.gmra.mxu0 %v3103_v32 }
 0xc1e   :  { %2460 = vmatprep.mubr.bf16.mxu0 %v3128_v37 }
 0xc25   :  { %2461 = vmatmul.mubr.bf16.gmra.mxu0 %v3155_v36 }
 0xc26   :  { %2464 = vmatprep.mubr.bf16.mxu0 %v3172_v41 }
 0xc2d   :  { %2465 = vmatmul.mubr.bf16.gmra.mxu0 %v1360_v40 }
 0xc9d   :  { %v1395_v1 = vpop.f32.mrf.mxu0 }
 0xc9e   :  { %v1402_v52 = vadd.f32 %v1395_v1, %v435_v11 }
 0xc9f   :  { %v2402_v48 = vpop.f32.mrf.mxu0 }
 0xca0   :  { %v1404_v55 = vmax.f32 %v1402_v52, 0.0 }
 0xca1   :  { %v1398_v33 = vpop.f32.mrf.mxu0 }
 0xca2   :  { %v1406_v32 = vsub.f32 %v1404_v55, %v1352_v14  ;;  %v1403_v37 = vadd.f32 %v1398_v33, %v438_v56 }
 0xca3   :  { %v2403_v36 = vpop.f32.mrf.mxu0 }
 0xca4   :  { %v1408_v43 = vmul.f32 0.1, %v1406_v32  ;;  %v1405_v2 = vmax.f32 %v1403_v37, 0.0 }
 0xca6   :  { %v3210_v3 = vadd.f32 %v1408_v43, %v1352_v14  ;;  %v1407_v53 = vsub.f32 %v1405_v2, %v1353_v31 }
 0xca8   :  { %1413 = vst [vmem:[#allocation13 + $0xe0] sm:$0xff] %v3210_v3  ;;  %v1409_v4 = vmul.f32 0.1, %v1407_v53 }
 0xcaa   :  { %v3213_v47 = vadd.f32 %v1409_v4, %v1353_v31  ;;  %v443_v4 = vadd.f32 %v3204_v28, %v2851_v45 }
 0xcac   :  { %1414 = vst [vmem:[#allocation13 + $0xe8] sm:$0xff] %v3213_v47  ;;  %v1418_v51 = vpack.c.bf16 %v3213_v47, %v3210_v3 }
 0xcae   :  { %2421 = vmatmul.mubr.bf16.vlgmr.msra.gmra.mxu1 %v1418_v51  ;;  %2468 = vmatprep.mubr.bf16.mxu0 %v1418_v51 }
 0xcbd   :  { %v2442_v34 = vpop.f32.mrf.mxu0 }
 0xcbe   :  { %v1637_v57 = vadd.f32 %v2442_v34, %v3221_v12 }
 0xcbf   :  { %v1628_v5 = vpop.f32.mrf.mxu0 }
 0xcc0   :  { %1757 = vst [vmem:[#allocation12 + $0x10] sm:$0xff] %v1637_v57  ;;  %v1629_v6 = vadd.f32 %v3221_v12, %v1628_v5  ;;  %v446_v5 = vadd.f32 %v3204_v28, %v2855_v49 }
 0xcc1   :  { %v2443_v7 = vpop.f32.mrf.mxu0 }
 0xcc2   :  { %1755 = vst [vmem:[#allocation12] sm:$0xff] %v1629_v6  ;;  %v1640_v8 = vadd.f32 %v2443_v7, %v3221_v12 }
 0xcc3   :  { %v1631_v9 = vpop.f32.mrf.mxu0 }
 0xcc4   :  { %1758 = vst [vmem:[#allocation12 + $0x18] sm:$0xff] %v1640_v8  ;;  %v1632_v10 = vadd.f32 %v3221_v12, %v1631_v9 }
 0xcc5   :  { %v2446_v13 = vpop.f32.mrf.mxu0 }
 0xcc6   :  { %1756 = vst [vmem:[#allocation12 + $0x8] sm:$0xff] %v1632_v10  ;;  %v1653_v16 = vadd.f32 %v2446_v13, %v3221_v12 }
 0xcc7   :  { %v1644_v18 = vpop.f32.mrf.mxu0 }
 0xcc8   :  { %1761 = vst [vmem:[#allocation12 + $0x30] sm:$0xff] %v1653_v16  ;;  %v1645_v20 = vadd.f32 %v3221_v12, %v1644_v18 }
 0xcc9   :  { %v2447_v41 = vpop.f32.mrf.mxu0 }
 0xcca   :  { %1759 = vst [vmem:[#allocation12 + $0x20] sm:$0xff] %v1645_v20  ;;  %v1656_v44 = vadd.f32 %v2447_v41, %v3221_v12 }
 0xccb   :  { %v1647_v22 = vpop.f32.mrf.mxu0 }
 0xccc   :  { %1762 = vst [vmem:[#allocation12 + $0x38] sm:$0xff] %v1656_v44  ;;  %v1648_v54 = vadd.f32 %v3221_v12, %v1647_v22 }
 0xccd   :  { %v2450_v24 = vpop.f32.mrf.mxu0 }
 0xcce   :  { %1760 = vst [vmem:[#allocation12 + $0x28] sm:$0xff] %v1648_v54  ;;  %v1669_v27 = vadd.f32 %v2450_v24, %v3221_v12 }
 0xccf   :  { %v1660_v15 = vpop.f32.mrf.mxu0 }
 0xcd0   :  { %1765 = vst [vmem:[#allocation12 + $0x50] sm:$0xff] %v1669_v27  ;;  %v1661_v17 = vadd.f32 %v3221_v12, %v1660_v15 }
 0xcd1   :  { %v2451_v19 = vpop.f32.mrf.mxu0 }
 0xcd2   :  { %1763 = vst [vmem:[#allocation12 + $0x40] sm:$0xff] %v1661_v17  ;;  %v1672_v21 = vadd.f32 %v2451_v19, %v3221_v12 }
 0xcd3   :  { %v1663_v39 = vpop.f32.mrf.mxu0 }
 0xcd4   :  { %1766 = vst [vmem:[#allocation12 + $0x58] sm:$0xff] %v1672_v21  ;;  %v1664_v23 = vadd.f32 %v3221_v12, %v1663_v39 }
 0xcd5   :  { %v2454_v58 = vpop.f32.mrf.mxu0 }
 0xcd6   :  { %1764 = vst [vmem:[#allocation12 + $0x48] sm:$0xff] %v1664_v23  ;;  %v1685_v35 = vadd.f32 %v2454_v58, %v3221_v12 }
 0xcd7   :  { %v1676_v14 = vpop.f32.mrf.mxu0 }
 0xcd8   :  { %1769 = vst [vmem:[#allocation12 + $0x70] sm:$0xff] %v1685_v35  ;;  %v1677_v29 = vadd.f32 %v3221_v12, %v1676_v14 }
 0xcd9   :  { %v2455_v25 = vpop.f32.mrf.mxu0 }
 0xcda   :  { %1767 = vst [vmem:[#allocation12 + $0x60] sm:$0xff] %v1677_v29  ;;  %v1688_v31 = vadd.f32 %v2455_v25, %v3221_v12 }
 0xcdb   :  { %v1679_v46 = vpop.f32.mrf.mxu0 }
 0xcdc   :  { %1770 = vst [vmem:[#allocation12 + $0x78] sm:$0xff] %v1688_v31  ;;  %v1680_v40 = vadd.f32 %v3221_v12, %v1679_v46 }
 0xcdd   :  { %v2458_v59 = vpop.f32.mrf.mxu0 }
 0xcde   :  { %1768 = vst [vmem:[#allocation12 + $0x68] sm:$0xff] %v1680_v40  ;;  %v1701_v26 = vadd.f32 %v2458_v59, %v3221_v12 }
 0xcdf   :  { %v1692_v60 = vpop.f32.mrf.mxu0 }
 0xce0   :  { %1773 = vst [vmem:[#allocation12 + $0x90] sm:$0xff] %v1701_v26  ;;  %v1693_v42 = vadd.f32 %v3221_v12, %v1692_v60 }
 0xce1   :  { %v2459_v50 = vpop.f32.mrf.mxu0 }
 0xce2   :  { %1771 = vst [vmem:[#allocation12 + $0x80] sm:$0xff] %v1693_v42  ;;  %v1704_v61 = vadd.f32 %v2459_v50, %v3221_v12 }
 0xce3   :  { %v1695_v38 = vpop.f32.mrf.mxu0 }
 0xce4   :  { %1774 = vst [vmem:[#allocation12 + $0x98] sm:$0xff] %v1704_v61  ;;  %v1696_v62 = vadd.f32 %v3221_v12, %v1695_v38 }
 0xce5   :  { %v2462_v63 = vpop.f32.mrf.mxu0 }
 0xce6   :  { %1772 = vst [vmem:[#allocation12 + $0x88] sm:$0xff] %v1696_v62  ;;  %v1717_v0 = vadd.f32 %v2462_v63, %v3221_v12 }
 0xce7   :  { %v1708_v30 = vpop.f32.mrf.mxu0 }
 0xce8   :  { %1777 = vst [vmem:[#allocation12 + $0xb0] sm:$0xff] %v1717_v0  ;;  %v1709_v11 = vadd.f32 %v3221_v12, %v1708_v30 }
 0xce9   :  { %v2463_v1 = vpop.f32.mrf.mxu0 }
 0xcea   :  { %1775 = vst [vmem:[#allocation12 + $0xa0] sm:$0xff] %v1709_v11  ;;  %v1720_v52 = vadd.f32 %v2463_v1, %v3221_v12 }
 0xceb   :  { %v1711_v48 = vpop.f32.mrf.mxu0 }
 0xcec   :  { %1778 = vst [vmem:[#allocation12 + $0xb8] sm:$0xff] %v1720_v52  ;;  %v1712_v56 = vadd.f32 %v3221_v12, %v1711_v48 }
 0xced   :  { %v2466_v55 = vpop.f32.mrf.mxu0 }
 0xcee   :  { %1776 = vst [vmem:[#allocation12 + $0xa8] sm:$0xff] %v1712_v56  ;;  %v1733_v33 = vadd.f32 %v2466_v55, %v3221_v12 }
 0xcef   :  { %v1724_v32 = vpop.f32.mrf.mxu0 }
 0xcf0   :  { %1781 = vst [vmem:[#allocation12 + $0xd0] sm:$0xff] %v1733_v33  ;;  %v1725_v37 = vadd.f32 %v3221_v12, %v1724_v32 }
 0xcf1   :  { %v2467_v36 = vpop.f32.mrf.mxu0 }
 0xcf2   :  { %1779 = vst [vmem:[#allocation12 + $0xc0] sm:$0xff] %v1725_v37  ;;  %v1736_v43 = vadd.f32 %v2467_v36, %v3221_v12 }
 0xcf3   :  { %v1727_v2 = vpop.f32.mrf.mxu0 }
 0xcf4   :  { %1782 = vst [vmem:[#allocation12 + $0xd8] sm:$0xff] %v1736_v43  ;;  %v1728_v53 = vadd.f32 %v3221_v12, %v1727_v2 }
 0xcf6   :  { %1780 = vst [vmem:[#allocation12 + $0xc8] sm:$0xff] %v1728_v53 }
 0xd6e   :  { %v1453_v51 = vpop.f32.mrf.mxu1 }
 0xd6f   :  { %v1460_v34 = vadd.f32 %v1453_v51, %v443_v4 }
 0xd70   :  { %v2422_v57 = vpop.f32.mrf.mxu1 }
 0xd71   :  { %v1462_v6 = vmax.f32 %v1460_v34, 0.0 }
 0xd72   :  { %v1456_v7 = vpop.f32.mrf.mxu1 }
 0xd73   :  { %v1464_v8 = vsub.f32 %v1462_v6, %v3210_v3  ;;  %v1461_v9 = vadd.f32 %v1456_v7, %v446_v5 }
 0xd74   :  { %v2423_v10 = vpop.f32.mrf.mxu1 }
 0xd75   :  { %v1466_v13 = vmul.f32 0.1, %v1464_v8  ;;  %v1463_v16 = vmax.f32 %v1461_v9, 0.0 }
 0xd77   :  { %v1468_v18 = vadd.f32 %v1466_v13, %v3210_v3  ;;  %v1465_v20 = vsub.f32 %v1463_v16, %v3213_v47 }
 0xd79   :  { %1471 = vst [vmem:[#allocation13 + $0xf0] sm:$0xff] %v1468_v18  ;;  %v1467_v45 = vmul.f32 0.1, %v1465_v20 }
 0xd7b   :  { %v1469_v41 = vadd.f32 %v1467_v45, %v3213_v47 }
 0xd7d   :  { %1472 = vst [vmem:[#allocation13 + $0xf8] sm:$0xff] %v1469_v41  ;;  %v1522_v44 = vpack.c.bf16 %v1469_v41, %v1468_v18 }
 0xd7f   :  { %2469 = vmatmul.mubr.bf16.gmra.mxu0 %v1522_v44 }
 0xd80   :  { %2641 = shalt.err (!%p2638_p10)
}
 0xd81   :  { %s2690_s26 = smov 128   ;;  %s2691_s27 = smov 8  }
 0xd82   :  { %1810 = dma.vmem_to_hbm [thread:$0]  %s1805_s24, 4096, %s3276_s7, [#allocation14], %s2690_s26, %s2690_s26, %s2691_s27  }
 0xd83   :  { %s2692_s30 = smov [#allocation12]  }
 0xd84   :  { %s1792_s8 = sshll.u32 %s2692_s30, 4  ;;  %s1793_s8 = int_to_ptr.vmem [resolvable:$true] %s1792_s8 }
 0xd85   :  { %s2650_s7 = scalar_lea.vmem %s1793_s8, 4096  ;;  %p2655_p12 = scmp.lt.s32.totalorder %s1793_s8, %s1793_s8 }
 0xd86   :  { %p2651_p11 = scmp.ne.s32.totalorder %s1793_s8, %s2650_s7  ;;  %p2656_p13 = scmp.lt.s32.totalorder %s2650_s7, %s2650_s7 }
 0xd88   :  { %p2657_p0 = por %p2656_p13, %p2655_p12 }
 0xd8a   :  { %p2658_p1 = pnand %p2657_p0, %p2651_p11 }
 0xe3f   :  { %v2470_v49 = vpop.f32.mrf.mxu0 }
 0xe40   :  { %v1749_v28 = vadd.f32 %v2470_v49, %v3221_v12 }
 0xe41   :  { %v1740_v3 = vpop.f32.mrf.mxu0 }
 0xe42   :  { %1785 = vst [vmem:[#allocation12 + $0xf0] sm:$0xff] %v1749_v28  ;;  %v1741_v47 = vadd.f32 %v3221_v12, %v1740_v3 }
 0xe43   :  { %v2471_v22 = vpop.f32.mrf.mxu0 }
 0xe44   :  { %1783 = vst [vmem:[#allocation12 + $0xe0] sm:$0xff] %v1741_v47  ;;  %v1752_v54 = vadd.f32 %v2471_v22, %v3221_v12 }
 0xe45   :  { %v1743_v24 = vpop.f32.mrf.mxu0 }
 0xe46   :  { %1786 = vst [vmem:[#allocation12 + $0xf8] sm:$0xff] %v1752_v54  ;;  %v1744_v27 = vadd.f32 %v3221_v12, %v1743_v24 }
 0xe48   :  { %1784 = vst [vmem:[#allocation12 + $0xe8] sm:$0xff] %v1744_v27 }
 0xe49   :  { %2661 = shalt.err (!%p2658_p1)
}
 0xe4a   :  { %1798 = dma.vmem_to_hbm [thread:$0]  %s1793_s8, 4096, %s3275_s6, [#allocation6], %s2690_s26, %s2690_s26, %s2691_s27  }
 0xe4b   :  { %2676 = dma.done.wait [#allocation6], 4096  }
 0xe4c   :  { %2677 = vsyncadd [#allocation6], 4294963200 }
 0xe4d   :  { %2678 = dma.done.wait [#allocation14], 4096  }
 0xe4e   :  { %2679 = vsyncadd [#allocation14], 4294963200 }
 0xe4f   :  { %1817 = vsyncpa [#allocation5], 1 }
 0xe50   :  { %1818 = vsyncpa [#allocation8], 1 }
 0xe51   :  { %1819 = vsyncpa [#allocation11], 1 }
 0xe52   :  { %1820 = vsyncpa [#allocation6], 1 }
 0xe53   :  { %1821 = vsyncpa [#allocation14], 1 }

// kernel: tpu_custom_call.1
= control target key start
LH: loop header
LB: loop body
LE: loop exit
PB: predicated region body
PF: predicated region fallthrough
CT: control target
= control target key end

     0   :  { %13 = vsyncpa [#allocation5], 0  ;;  %s3269_s0 = inlined_call_operand.hbm [shape: bf16[16,16,128], index: 0, kind: input, shape index: {}]   ;;  %s3270_s1 = inlined_call_operand.hbm [shape: bf16[128,128], index: 1, kind: input, shape index: {}]   ;;  %s3271_s2 = inlined_call_operand.vmem [shape: f32[1,128], index: 2, kind: input, shape index: {}]   ;;  %s3272_s3 = inlined_call_operand.hbm [shape: bf16[128,128], index: 3, kind: input, shape index: {}]   ;;  %s3273_s4 = inlined_call_operand.hbm [shape: bf16[128,128], index: 4, kind: input, shape index: {}]   ;;  %s3274_s5 = inlined_call_operand.vmem [shape: f32[1,128], index: 5, kind: input, shape index: {}]   ;;  %s3275_s6 = inlined_call_operand.hbm [shape: f32[16,16,128], index: 6, kind: output, shape index: {0}]   ;;  %s3276_s7 = inlined_call_operand.hbm [shape: f32[16,16,128], index: 7, kind: output, shape index: {1}]  }
   0x1   :  { %14 = vsyncpa [#allocation8], 0 }
   0x2   :  { %15 = vsyncpa [#allocation11], 0 }
   0x3   :  { %16 = vsyncpa [#allocation6], 0 }
   0x4   :  { %17 = vsyncpa [#allocation14], 0  ;;  %s2680_s24 = smov [#allocation7]   ;;  %s2681_s26 = smov [#allocation4]  }
   0x5   :  { %s35_s25 = sshll.u32 %s2680_s24, 4  ;;  %s23_s27 = sshll.u32 %s2681_s26, 4  ;;  %s36_s25 = int_to_ptr.vmem [resolvable:$true] %s35_s25  ;;  %s24_s27 = int_to_ptr.vmem [resolvable:$true] %s23_s27 }
   0x6   :  { %s2558_s28 = scalar_lea.vmem %s36_s25, 1024  ;;  %p2563_p1 = scmp.lt.s32.totalorder %s36_s25, %s36_s25 }
   0x7   :  { %p2559_p0 = scmp.ne.s32.totalorder %s36_s25, %s2558_s28  ;;  %p2564_p2 = scmp.lt.s32.totalorder %s2558_s28, %s2558_s28 }
   0x9   :  { %p2565_p3 = por %p2564_p2, %p2563_p1 }
   0xb   :  { %p2566_p4 = pnand %p2565_p3, %p2559_p0 }
   0xd   :  { %2569 = shalt.err (!%p2566_p4)
}
   0xe   :  { %s2682_s29 = smov 64   ;;  %s2683_s30 = smov 4  }
   0xf   :  { %41 = dma.hbm_to_vmem [thread:$0]  %s3270_s1, 1024, %s36_s25, [#allocation8], %s2682_s29, %s2682_s29, %s2683_s30  }
  0x10   :  { %s2578_s10 = scalar_lea.vmem %s24_s27, 2048  ;;  %p2583_p6 = scmp.lt.s32.totalorder %s24_s27, %s24_s27 }
  0x11   :  { %p2579_p5 = scmp.ne.s32.totalorder %s24_s27, %s2578_s10  ;;  %p2584_p7 = scmp.lt.s32.totalorder %s2578_s10, %s2578_s10 }
  0x13   :  { %p2585_p8 = por %p2584_p7, %p2583_p6 }
  0x15   :  { %p2586_p9 = pnand %p2585_p8, %p2579_p5 }
  0x17   :  { %2589 = shalt.err (!%p2586_p9)
}
  0x18   :  { %29 = dma.hbm_to_vmem [thread:$0]  %s3269_s0, 2048, %s24_s27, [#allocation5], %s2682_s29, %s2682_s29, %s2683_s30  }
  0x19   :  { %s2684_s13 = smov [#allocation9]   ;;  %s2685_s15 = smov [#allocation10]  }
  0x1a   :  { %s49_s14 = sshll.u32 %s2684_s13, 4  ;;  %s61_s16 = sshll.u32 %s2685_s15, 4  ;;  %s50_s14 = int_to_ptr.vmem [resolvable:$true] %s49_s14  ;;  %s62_s16 = int_to_ptr.vmem [resolvable:$true] %s61_s16 }
  0x1b   :  { %s2598_s1 = scalar_lea.vmem %s50_s14, 1024  ;;  %p2603_p11 = scmp.lt.s32.totalorder %s50_s14, %s50_s14 }
  0x1c   :  { %p2599_p10 = scmp.ne.s32.totalorder %s50_s14, %s2598_s1  ;;  %p2604_p12 = scmp.lt.s32.totalorder %s2598_s1, %s2598_s1 }
  0x1e   :  { %p2605_p13 = por %p2604_p12, %p2603_p11 }
  0x20   :  { %p2606_p0 = pnand %p2605_p13, %p2599_p10 }
  0x22   :  { %2609 = shalt.err (!%p2606_p0)
}
  0x23   :  { %55 = dma.hbm_to_vmem [thread:$0]  %s3272_s3, 1024, %s50_s14, [#allocation8], %s2682_s29, %s2682_s29, %s2683_s30  }
  0x24   :  { %s2618_s0 = scalar_lea.vmem %s62_s16, 1024  ;;  %p2623_p2 = scmp.lt.s32.totalorder %s62_s16, %s62_s16 }
  0x25   :  { %p2619_p1 = scmp.ne.s32.totalorder %s62_s16, %s2618_s0  ;;  %p2624_p3 = scmp.lt.s32.totalorder %s2618_s0, %s2618_s0 }
  0x27   :  { %p2625_p4 = por %p2624_p3, %p2623_p2 }
  0x29   :  { %p2626_p5 = pnand %p2625_p4, %p2619_p1 }
  0x2b   :  { %2629 = shalt.err (!%p2626_p5)
}
  0x2c   :  { %67 = dma.hbm_to_vmem [thread:$0]  %s3273_s4, 1024, %s62_s16, [#allocation11], %s2682_s29, %s2682_s29, %s2683_s30  }
  0x2d   :  { %2670 = dma.done.wait [#allocation5], 2048  }
  0x2e   :  { %2671 = vsyncadd [#allocation5], 4294965248 }
  0x2f   :  { %2672 = dma.done.wait [#allocation8], 2048  }
  0x30   :  { %2673 = vsyncadd [#allocation8], 4294965248 }
  0x31   :  { %2674 = dma.done.wait [#allocation11], 1024  }
  0x32   :  { %2675 = vsyncadd [#allocation11], 4294966272  ;;  %v2501_v0 = vld [vmem:[#allocation7 + $0x38] sm:$0xff]   ;;  %v2502_v1 = vld [vmem:[#allocation7 + $0x30] sm:$0xff]   ;;  %v2686_v14 = vmov 0.0   ;;  %vm2687_vm0 = vmmov 0  }
  0x33   :  { %2472 = vmatprep.subr.bf16.mxu1 %v2501_v0  ;;  %2056 = vmatprep.subr.bf16.mxu0 %v2501_v0  ;;  %v2503_v2 = vld [vmem:[#allocation7 + $0x28] sm:$0xff]   ;;  %v2504_v3 = vld [vmem:[#allocation7 + $0x20] sm:$0xff]   ;;  %v2505_v5 = vld [vmem:[#allocation7 + $0x18] sm:$0xff]   ;;  %v2688_v27 = vmov 0.0|0.0  }
  0x34   :  { %2480 = vmatpush3.bf16.msra.mxu1 %v2501_v0  ;;  %2057 = vmatpush3.bf16.msra.mxu0 %v2501_v0  ;;  %v2509_v4 = vld [vmem:[#allocation4 + $0x40] sm:$0xff]   ;;  %v2506_v6 = vld [vmem:[#allocation7 + $0x10] sm:$0xff]   ;;  %v2507_v7 = vld [vmem:[#allocation7 + $0x8] sm:$0xff]  }
  0x35   :  { %2473 = vmatprep.subr.bf16.mxu1 %v2502_v1  ;;  %2058 = vmatprep.subr.bf16.mxu0 %v2502_v1  ;;  %v2521_v8 = vld [vmem:[#allocation4] sm:$0xff]   ;;  %v2510_v10 = vld [vmem:[#allocation4 + $0x48] sm:$0xff]   ;;  %v2757_v12 = vld [vmem:[#allocation9 + $0x38] sm:$0xff]  }
  0x36   :  { %2088 = vmatprep.mubr.bf16.mxu1 %v2509_v4  ;;  %2072 = vmatprep.mubr.bf16.mxu0 %v2521_v8  ;;  %v2508_v9 = vld [vmem:[#allocation7] sm:$0xff]   ;;  %v2522_v11 = vld [vmem:[#allocation4 + $0x8] sm:$0xff]   ;;  %v2513_v13 = vld [vmem:[#allocation4 + $0x50] sm:$0xff]  }
  0x37   :  { %v2762_v15 = vld [vmem:[#allocation9 + $0x30] sm:$0xff]   ;;  %v2514_v16 = vld [vmem:[#allocation4 + $0x58] sm:$0xff]   ;;  %v2768_v17 = vld [vmem:[#allocation9 + $0x28] sm:$0xff]  }
  0x38   :  { %2481 = vmatpush3.bf16.msra.mxu1 %v2502_v1  ;;  %2059 = vmatpush3.bf16.msra.mxu0 %v2502_v1  ;;  %v2517_v18 = vld [vmem:[#allocation4 + $0x60] sm:$0xff]   ;;  %v2518_v20 = vld [vmem:[#allocation4 + $0x68] sm:$0xff]   ;;  %v2780_v21 = vld [vmem:[#allocation9 + $0x18] sm:$0xff]  }
  0x39   :  { %2474 = vmatprep.subr.bf16.mxu1 %v2503_v2  ;;  %2060 = vmatprep.subr.bf16.mxu0 %v2503_v2  ;;  %v2774_v19 = vld [vmem:[#allocation9 + $0x20] sm:$0xff]   ;;  %v2523_v22 = vld [vmem:[#allocation4 + $0x70] sm:$0xff]   ;;  %v2524_v24 = vld [vmem:[#allocation4 + $0x78] sm:$0xff]  }
  0x3a   :  { %v2786_v23 = vld [vmem:[#allocation9 + $0x10] sm:$0xff]   ;;  %v2792_v25 = vld [vmem:[#allocation9 + $0x8] sm:$0xff]   ;;  %v2798_v26 = vld [vmem:[#allocation9] sm:$0xff]  }
  0x3b   :  { %v2527_v28 = vld [vmem:[#allocation4 + $0x10] sm:$0xff]   ;;  %v2528_v29 = vld [vmem:[#allocation4 + $0x18] sm:$0xff]   ;;  %v2529_v30 = vld [vmem:[#allocation4 + $0x20] sm:$0xff]  }
  0x3c   :  { %2482 = vmatpush3.bf16.msra.mxu1 %v2503_v2  ;;  %2061 = vmatpush3.bf16.msra.mxu0 %v2503_v2  ;;  %v2530_v31 = vld [vmem:[#allocation4 + $0x28] sm:$0xff]   ;;  %v2860_v50 = vld [vmem:[%s3271_s2] ss:$0 sm:$0xff]  ;;  %v2531_v2 = vld [vmem:[#allocation4 + $0x30] sm:$0xff]  }
  0x3d   :  { %2475 = vmatprep.subr.bf16.mxu1 %v2504_v3  ;;  %2062 = vmatprep.subr.bf16.mxu0 %v2504_v3 }
  0x40   :  { %2483 = vmatpush3.bf16.msra.mxu1 %v2504_v3  ;;  %2063 = vmatpush3.bf16.msra.mxu0 %v2504_v3  ;;  %v2532_v3 = vld [vmem:[#allocation4 + $0x38] sm:$0xff]  }
  0x41   :  { %2476 = vmatprep.subr.bf16.mxu1 %v2505_v5  ;;  %2064 = vmatprep.subr.bf16.mxu0 %v2505_v5 }
  0x44   :  { %2484 = vmatpush3.bf16.msra.mxu1 %v2505_v5  ;;  %2065 = vmatpush3.bf16.msra.mxu0 %v2505_v5 }
  0x45   :  { %2477 = vmatprep.subr.bf16.mxu1 %v2506_v6  ;;  %2066 = vmatprep.subr.bf16.mxu0 %v2506_v6 }
  0x48   :  { %2485 = vmatpush3.bf16.msra.mxu1 %v2506_v6  ;;  %2067 = vmatpush3.bf16.msra.mxu0 %v2506_v6 }
  0x49   :  { %2478 = vmatprep.subr.bf16.mxu1 %v2507_v7  ;;  %2068 = vmatprep.subr.bf16.mxu0 %v2507_v7 }
  0x4c   :  { %2486 = vmatpush3.bf16.msra.mxu1 %v2507_v7  ;;  %2069 = vmatpush3.bf16.msra.mxu0 %v2507_v7 }
  0x4d   :  { %2479 = vmatprep.subr.bf16.mxu1 %v2508_v9  ;;  %2070 = vmatprep.subr.bf16.mxu0 %v2508_v9 }
  0x50   :  { %2487 = vmatpush3.bf16.msra.mxu1 %v2508_v9  ;;  %2071 = vmatpush3.bf16.msra.mxu0 %v2508_v9 }
  0x51   :  { %2104 = vmatprep.subr.bf16.mxu1 %v2686_v14  ;;  %2144 = vmatprep.subr.bf16.mxu0 %v2686_v14 }
  0x53   :  { %2089 = vmatmul.mubr.bf16.vlgmr.msra.gmra.mxu1 %v2510_v10  ;;  %2073 = vmatmul.mubr.bf16.vlgmr.msra.gmra.mxu0 %v2522_v11 }
  0x54   :  { %2105 = vmatpush3.bf16.msra.mxu1 %v2757_v12  ;;  %2092 = vmatprep.mubr.bf16.mxu1 %v2513_v13 }
  0x55   :  { %2106 = vmatprep.subr.bf16.mxu1 %v2686_v14  ;;  %2145 = vmatpush3.bf16.msra.mxu0 %v2757_v12 }
  0x56   :  { %2146 = vmatprep.subr.bf16.mxu0 %v2686_v14  ;;  %2076 = vmatprep.mubr.bf16.mxu0 %v2527_v28 }
  0x58   :  { %2107 = vmatpush3.bf16.msra.mxu1 %v2762_v15 }
  0x59   :  { %2108 = vmatprep.subr.bf16.mxu1 %v2686_v14  ;;  %2147 = vmatpush3.bf16.msra.mxu0 %v2762_v15 }
  0x5a   :  { %2148 = vmatprep.subr.bf16.mxu0 %v2686_v14 }
  0x5b   :  { %2093 = vmatmul.mubr.bf16.gmra.mxu1 %v2514_v16  ;;  %2077 = vmatmul.mubr.bf16.gmra.mxu0 %v2528_v29 }
  0x5c   :  { %2109 = vmatpush3.bf16.msra.mxu1 %v2768_v17  ;;  %2096 = vmatprep.mubr.bf16.mxu1 %v2517_v18 }
  0x5d   :  { %2110 = vmatprep.subr.bf16.mxu1 %v2686_v14  ;;  %2149 = vmatpush3.bf16.msra.mxu0 %v2768_v17 }
  0x5e   :  { %2150 = vmatprep.subr.bf16.mxu0 %v2686_v14  ;;  %2080 = vmatprep.mubr.bf16.mxu0 %v2529_v30 }
  0x60   :  { %2111 = vmatpush3.bf16.msra.mxu1 %v2774_v19 }
  0x61   :  { %2112 = vmatprep.subr.bf16.mxu1 %v2686_v14  ;;  %2151 = vmatpush3.bf16.msra.mxu0 %v2774_v19 }
  0x62   :  { %2152 = vmatprep.subr.bf16.mxu0 %v2686_v14 }
  0x63   :  { %2097 = vmatmul.mubr.bf16.gmra.mxu1 %v2518_v20  ;;  %2081 = vmatmul.mubr.bf16.gmra.mxu0 %v2530_v31 }
  0x64   :  { %2113 = vmatpush3.bf16.msra.mxu1 %v2780_v21  ;;  %2100 = vmatprep.mubr.bf16.mxu1 %v2523_v22 }
  0x65   :  { %2114 = vmatprep.subr.bf16.mxu1 %v2686_v14  ;;  %2153 = vmatpush3.bf16.msra.mxu0 %v2780_v21 }
  0x66   :  { %2154 = vmatprep.subr.bf16.mxu0 %v2686_v14  ;;  %2084 = vmatprep.mubr.bf16.mxu0 %v2531_v2 }
  0x68   :  { %2115 = vmatpush3.bf16.msra.mxu1 %v2786_v23 }
  0x69   :  { %2116 = vmatprep.subr.bf16.mxu1 %v2686_v14  ;;  %2155 = vmatpush3.bf16.msra.mxu0 %v2786_v23 }
  0x6a   :  { %2156 = vmatprep.subr.bf16.mxu0 %v2686_v14 }
  0x6b   :  { %2101 = vmatmul.mubr.bf16.gmra.mxu1 %v2524_v24  ;;  %2085 = vmatmul.mubr.bf16.gmra.mxu0 %v2532_v3 }
  0x6c   :  { %2117 = vmatpush3.bf16.msra.mxu1 %v2792_v25  ;;  %2120 = vmatprep.mubr.msk.bf16.mxu1 %vm2687_vm0, %v2686_v14 }
  0x6d   :  { %2118 = vmatprep.subr.bf16.mxu1 %v2686_v14  ;;  %2157 = vmatpush3.bf16.msra.mxu0 %v2792_v25 }
  0x6e   :  { %2158 = vmatprep.subr.bf16.mxu0 %v2686_v14  ;;  %2160 = vmatprep.mubr.msk.bf16.mxu0 %vm2687_vm0, %v2686_v14 }
  0x70   :  { %2119 = vmatpush3.bf16.msra.mxu1 %v2798_v26 }
  0x71   :  { %2124 = vmatprep.subr.bf16.mxu1 %v2686_v14  ;;  %2159 = vmatpush3.bf16.msra.mxu0 %v2798_v26 }
  0x72   :  { %2184 = vmatprep.subr.bf16.mxu0 %v2686_v14 }
  0x73   :  { %2121 = vmatmul.mubr.bf16.vlgmr.msra.gmra.mxu1 %v2688_v27 }
  0x74   :  { %2125 = vmatpush3.bf16.msra.mxu1 %v2757_v12  ;;  %2140 = vmatprep.mubr.msk.bf16.mxu1 %vm2687_vm0, %v2686_v14 }
  0x75   :  { %2126 = vmatprep.subr.bf16.mxu1 %v2686_v14 }
  0x78   :  { %2127 = vmatpush3.bf16.msra.mxu1 %v2762_v15 }
  0x79   :  { %2128 = vmatprep.subr.bf16.mxu1 %v2686_v14 }
  0x7c   :  { %2129 = vmatpush3.bf16.msra.mxu1 %v2768_v17 }
  0x7d   :  { %2130 = vmatprep.subr.bf16.mxu1 %v2686_v14 }
  0x80   :  { %2131 = vmatpush3.bf16.msra.mxu1 %v2774_v19 }
  0x81   :  { %2132 = vmatprep.subr.bf16.mxu1 %v2686_v14 }
  0x84   :  { %2133 = vmatpush3.bf16.msra.mxu1 %v2780_v21 }
  0x85   :  { %2134 = vmatprep.subr.bf16.mxu1 %v2686_v14 }
  0x88   :  { %2135 = vmatpush3.bf16.msra.mxu1 %v2786_v23 }
  0x89   :  { %2136 = vmatprep.subr.bf16.mxu1 %v2686_v14 }
  0x8c   :  { %2137 = vmatpush3.bf16.msra.mxu1 %v2792_v25 }
  0x8d   :  { %2138 = vmatprep.subr.bf16.mxu1 %v2686_v14 }
  0x90   :  { %2139 = vmatpush3.bf16.msra.mxu1 %v2798_v26 }
  0x91   :  { %2164 = vmatprep.subr.bf16.mxu1 %v2686_v14 }
 0x113   :  { %v2827_v32 = vpop.f32.mrf.mxu1  ;;  %v2074_v43 = vpop.f32.mrf.mxu0 }
 0x114   :  { %v331_v4 = vadd.f32 %v2074_v43, %v2860_v50 }
 0x115   :  { %v2829_v33 = vpop.f32.mrf.mxu1  ;;  %v322_v46 = vpop.f32.mrf.mxu0 }
 0x116   :  { %v323_v52 = vadd.f32 %v2860_v50, %v322_v46 }
 0x117   :  { %v2831_v34 = vpop.f32.mrf.mxu1  ;;  %v2075_v48 = vpop.f32.mrf.mxu0 }
 0x118   :  { %v334_v8 = vadd.f32 %v2075_v48, %v2860_v50 }
 0x119   :  { %v2833_v35 = vpop.f32.mrf.mxu1  ;;  %v325_v53 = vpop.f32.mrf.mxu0 }
 0x11a   :  { %v326_v57 = vadd.f32 %v2860_v50, %v325_v53 }
 0x11b   :  { %v2835_v36 = vpop.f32.mrf.mxu1  ;;  %v2078_v30 = vpop.f32.mrf.mxu0 }
 0x11d   :  { %v2837_v37 = vpop.f32.mrf.mxu1  ;;  %v338_v31 = vpop.f32.mrf.mxu0 }
 0x11f   :  { %v2839_v38 = vpop.f32.mrf.mxu1  ;;  %v2079_v43 = vpop.f32.mrf.mxu0 }
 0x121   :  { %v2841_v39 = vpop.f32.mrf.mxu1  ;;  %v341_v46 = vpop.f32.mrf.mxu0 }
 0x123   :  { %v2843_v40 = vpop.f32.mrf.mxu1  ;;  %v2910_v48 = vpop.f32.mrf.mxu0 }
 0x125   :  { %v2845_v41 = vpop.f32.mrf.mxu1 }
 0x127   :  { %v2847_v42 = vpop.f32.mrf.mxu1 }
 0x129   :  { %v2849_v44 = vpop.f32.mrf.mxu1 }
 0x12b   :  { %v2851_v45 = vpop.f32.mrf.mxu1 }
 0x12d   :  { %v2853_v47 = vpop.f32.mrf.mxu1 }
 0x12f   :  { %v2855_v49 = vpop.f32.mrf.mxu1 }
 0x131   :  { %v2862_v51 = vpop.f32.mrf.mxu1 }
 0x133   :  { %v584_v54 = vpop.f32.mrf.mxu1 }
 0x134   :  { %v591_v55 = vadd.f32 %v584_v54, %v323_v52  ;;  %v2912_v52 = vpop.f32.mrf.mxu0 }
 0x135   :  { %v2122_v56 = vpop.f32.mrf.mxu1 }
 0x136   :  { %v593_v58 = vmax.f32 %v591_v55, 0.0  ;;  %v2914_v53 = vpop.f32.mrf.mxu0 }
 0x137   :  { %v587_v59 = vpop.f32.mrf.mxu1 }
 0x138   :  { %v597_v60 = vmul.f32 0.1, %v593_v58  ;;  %v592_v61 = vadd.f32 %v587_v59, %v326_v57  ;;  %v2916_v54 = vpop.f32.mrf.mxu0  ;;  %v339_v59 = vadd.f32 %v2860_v50, %v338_v31 }
 0x139   :  { %v2123_v62 = vpop.f32.mrf.mxu1 }
 0x13a   :  { %601 = vst [vmem:[#allocation13] sm:$0xff] %v597_v60  ;;  %v594_v63 = vmax.f32 %v592_v61, 0.0  ;;  %v2918_v55 = vpop.f32.mrf.mxu0 }
 0x13c   :  { %v598_v0 = vmul.f32 0.1, %v594_v63  ;;  %v2920_v56 = vpop.f32.mrf.mxu0  ;;  %v342_v63 = vadd.f32 %v2860_v50, %v341_v46 }
 0x13e   :  { %602 = vst [vmem:[#allocation13 + $0x8] sm:$0xff] %v598_v0  ;;  %v606_v1 = vpack.c.bf16 %v598_v0, %v597_v60  ;;  %v2922_v57 = vpop.f32.mrf.mxu0 }
 0x140   :  { %2141 = vmatmul.mubr.bf16.vlgmr.msra.gmra.mxu1 %v606_v1  ;;  %v2924_v58 = vpop.f32.mrf.mxu0 }
 0x141   :  { %2165 = vmatpush3.bf16.msra.mxu1 %v2757_v12  ;;  %2180 = vmatprep.mubr.msk.bf16.mxu1 %vm2687_vm0, %v2686_v14 }
 0x142   :  { %2166 = vmatprep.subr.bf16.mxu1 %v2686_v14 }
 0x145   :  { %2167 = vmatpush3.bf16.msra.mxu1 %v2762_v15 }
 0x146   :  { %2168 = vmatprep.subr.bf16.mxu1 %v2686_v14 }
 0x149   :  { %2169 = vmatpush3.bf16.msra.mxu1 %v2768_v17 }
 0x14a   :  { %2170 = vmatprep.subr.bf16.mxu1 %v2686_v14 }
 0x14d   :  { %2171 = vmatpush3.bf16.msra.mxu1 %v2774_v19 }
 0x14e   :  { %2172 = vmatprep.subr.bf16.mxu1 %v2686_v14 }
 0x151   :  { %2173 = vmatpush3.bf16.msra.mxu1 %v2780_v21 }
 0x152   :  { %2174 = vmatprep.subr.bf16.mxu1 %v2686_v14 }
 0x155   :  { %2175 = vmatpush3.bf16.msra.mxu1 %v2786_v23 }
 0x156   :  { %2176 = vmatprep.subr.bf16.mxu1 %v2686_v14 }
 0x159   :  { %2177 = vmatpush3.bf16.msra.mxu1 %v2792_v25 }
 0x15a   :  { %2178 = vmatprep.subr.bf16.mxu1 %v2686_v14 }
 0x15d   :  { %2179 = vmatpush3.bf16.msra.mxu1 %v2798_v26 }
 0x15e   :  { %2204 = vmatprep.subr.bf16.mxu1 %v2686_v14 }
 0x200   :  { %v641_v5 = vpop.f32.mrf.mxu1 }
 0x201   :  { %v648_v6 = vadd.f32 %v641_v5, %v331_v4 }
 0x202   :  { %v2142_v7 = vpop.f32.mrf.mxu1 }
 0x203   :  { %v650_v9 = vmax.f32 %v648_v6, 0.0 }
 0x204   :  { %v644_v10 = vpop.f32.mrf.mxu1 }
 0x205   :  { %v652_v11 = vsub.f32 %v650_v9, %v597_v60  ;;  %v649_v13 = vadd.f32 %v644_v10, %v334_v8 }
 0x206   :  { %v2143_v16 = vpop.f32.mrf.mxu1 }
 0x207   :  { %v654_v18 = vmul.f32 0.1, %v652_v11  ;;  %v651_v20 = vmax.f32 %v649_v13, 0.0  ;;  %v347_v13 = vadd.f32 %v2078_v30, %v2860_v50  ;;  %v355_v30 = vadd.f32 %v2860_v50, %v2912_v52 }
 0x209   :  { %v656_v22 = vadd.f32 %v654_v18, %v597_v60  ;;  %v653_v24 = vsub.f32 %v651_v20, %v598_v0 }
 0x20b   :  { %659 = vst [vmem:[#allocation13 + $0x10] sm:$0xff] %v656_v22  ;;  %v655_v27 = vmul.f32 0.1, %v653_v24 }
 0x20d   :  { %v2888_v28 = vadd.f32 %v655_v27, %v598_v0 }
 0x20f   :  { %660 = vst [vmem:[#allocation13 + $0x18] sm:$0xff] %v2888_v28  ;;  %v664_v29 = vpack.c.bf16 %v2888_v28, %v656_v22 }
 0x211   :  { %2161 = vmatmul.mubr.bf16.vlgmr.msra.gmra.mxu0 %v664_v29 }
 0x212   :  { %2185 = vmatpush3.bf16.msra.mxu0 %v2757_v12  ;;  %2200 = vmatprep.mubr.msk.bf16.mxu0 %vm2687_vm0, %v2686_v14 }
 0x213   :  { %2186 = vmatprep.subr.bf16.mxu0 %v2686_v14 }
 0x216   :  { %2187 = vmatpush3.bf16.msra.mxu0 %v2762_v15 }
 0x217   :  { %2188 = vmatprep.subr.bf16.mxu0 %v2686_v14 }
 0x21a   :  { %2189 = vmatpush3.bf16.msra.mxu0 %v2768_v17 }
 0x21b   :  { %2190 = vmatprep.subr.bf16.mxu0 %v2686_v14 }
 0x21e   :  { %2191 = vmatpush3.bf16.msra.mxu0 %v2774_v19 }
 0x21f   :  { %2192 = vmatprep.subr.bf16.mxu0 %v2686_v14 }
 0x222   :  { %2193 = vmatpush3.bf16.msra.mxu0 %v2780_v21 }
 0x223   :  { %2194 = vmatprep.subr.bf16.mxu0 %v2686_v14 }
 0x226   :  { %2195 = vmatpush3.bf16.msra.mxu0 %v2786_v23 }
 0x227   :  { %2196 = vmatprep.subr.bf16.mxu0 %v2686_v14 }
 0x22a   :  { %2197 = vmatpush3.bf16.msra.mxu0 %v2792_v25 }
 0x22b   :  { %2198 = vmatprep.subr.bf16.mxu0 %v2686_v14 }
 0x22e   :  { %2199 = vmatpush3.bf16.msra.mxu0 %v2798_v26 }
 0x22f   :  { %2224 = vmatprep.subr.bf16.mxu0 %v2686_v14 }
 0x2d1   :  { %v699_v60 = vpop.f32.mrf.mxu0 }
 0x2d2   :  { %v706_v61 = vadd.f32 %v699_v60, %v339_v59 }
 0x2d3   :  { %v2162_v62 = vpop.f32.mrf.mxu0 }
 0x2d4   :  { %v708_v0 = vmax.f32 %v706_v61, 0.0 }
 0x2d5   :  { %v702_v1 = vpop.f32.mrf.mxu0 }
 0x2d6   :  { %v710_v2 = vsub.f32 %v708_v0, %v656_v22  ;;  %v707_v3 = vadd.f32 %v702_v1, %v342_v63 }
 0x2d7   :  { %v2163_v4 = vpop.f32.mrf.mxu0 }
 0x2d8   :  { %v712_v5 = vmul.f32 0.1, %v710_v2  ;;  %v709_v6 = vmax.f32 %v707_v3, 0.0  ;;  %v358_v4 = vadd.f32 %v2860_v50, %v2916_v54  ;;  %v363_v54 = vadd.f32 %v2910_v48, %v2860_v50 }
 0x2da   :  { %v714_v7 = vadd.f32 %v712_v5, %v656_v22  ;;  %v711_v8 = vsub.f32 %v709_v6, %v2888_v28  ;;  %v350_v22 = vadd.f32 %v2079_v43, %v2860_v50 }
 0x2dc   :  { %717 = vst [vmem:[#allocation13 + $0x20] sm:$0xff] %v714_v7  ;;  %v713_v9 = vmul.f32 0.1, %v711_v8 }
 0x2de   :  { %v715_v10 = vadd.f32 %v713_v9, %v2888_v28 }
 0x2e0   :  { %718 = vst [vmem:[#allocation13 + $0x28] sm:$0xff] %v715_v10  ;;  %v2930_v11 = vpack.c.bf16 %v715_v10, %v714_v7 }
 0x2e2   :  { %2181 = vmatmul.mubr.bf16.vlgmr.msra.gmra.mxu1 %v2930_v11 }
 0x2e3   :  { %2205 = vmatpush3.bf16.msra.mxu1 %v2757_v12  ;;  %2220 = vmatprep.mubr.msk.bf16.mxu1 %vm2687_vm0, %v2686_v14 }
 0x2e4   :  { %2206 = vmatprep.subr.bf16.mxu1 %v2686_v14 }
 0x2e7   :  { %2207 = vmatpush3.bf16.msra.mxu1 %v2762_v15 }
 0x2e8   :  { %2208 = vmatprep.subr.bf16.mxu1 %v2686_v14 }
 0x2eb   :  { %2209 = vmatpush3.bf16.msra.mxu1 %v2768_v17 }
 0x2ec   :  { %2210 = vmatprep.subr.bf16.mxu1 %v2686_v14 }
 0x2ef   :  { %2211 = vmatpush3.bf16.msra.mxu1 %v2774_v19 }
 0x2f0   :  { %2212 = vmatprep.subr.bf16.mxu1 %v2686_v14 }
 0x2f3   :  { %2213 = vmatpush3.bf16.msra.mxu1 %v2780_v21 }
 0x2f4   :  { %2214 = vmatprep.subr.bf16.mxu1 %v2686_v14 }
 0x2f7   :  { %2215 = vmatpush3.bf16.msra.mxu1 %v2786_v23 }
 0x2f8   :  { %2216 = vmatprep.subr.bf16.mxu1 %v2686_v14 }
 0x2fb   :  { %2217 = vmatpush3.bf16.msra.mxu1 %v2792_v25 }
 0x2fc   :  { %2218 = vmatprep.subr.bf16.mxu1 %v2686_v14 }
 0x2ff   :  { %2219 = vmatpush3.bf16.msra.mxu1 %v2798_v26 }
 0x300   :  { %2244 = vmatprep.subr.bf16.mxu1 %v2686_v14 }
 0x3a2   :  { %v757_v16 = vpop.f32.mrf.mxu1 }
 0x3a3   :  { %v764_v18 = vadd.f32 %v757_v16, %v347_v13 }
 0x3a4   :  { %v2182_v20 = vpop.f32.mrf.mxu1 }
 0x3a5   :  { %v766_v24 = vmax.f32 %v764_v18, 0.0 }
 0x3a6   :  { %v760_v27 = vpop.f32.mrf.mxu1 }
 0x3a7   :  { %v768_v29 = vsub.f32 %v766_v24, %v714_v7  ;;  %v765_v31 = vadd.f32 %v760_v27, %v350_v22 }
 0x3a8   :  { %v2183_v46 = vpop.f32.mrf.mxu1 }
 0x3a9   :  { %v770_v59 = vmul.f32 0.1, %v768_v29  ;;  %v767_v60 = vmax.f32 %v765_v31, 0.0  ;;  %v366_v31 = vadd.f32 %v2914_v53, %v2860_v50  ;;  %v371_v53 = vadd.f32 %v2860_v50, %v2920_v56 }
 0x3ab   :  { %v772_v61 = vadd.f32 %v770_v59, %v714_v7  ;;  %v769_v62 = vsub.f32 %v767_v60, %v715_v10 }
 0x3ad   :  { %775 = vst [vmem:[#allocation13 + $0x30] sm:$0xff] %v772_v61  ;;  %v771_v63 = vmul.f32 0.1, %v769_v62 }
 0x3af   :  { %v773_v0 = vadd.f32 %v771_v63, %v715_v10 }
 0x3b1   :  { %776 = vst [vmem:[#allocation13 + $0x38] sm:$0xff] %v773_v0  ;;  %v2953_v1 = vpack.c.bf16 %v773_v0, %v772_v61 }
 0x3b3   :  { %2201 = vmatmul.mubr.bf16.vlgmr.msra.gmra.mxu0 %v2953_v1 }
 0x3b4   :  { %2225 = vmatpush3.bf16.msra.mxu0 %v2757_v12  ;;  %2240 = vmatprep.mubr.msk.bf16.mxu0 %vm2687_vm0, %v2686_v14 }
 0x3b5   :  { %2226 = vmatprep.subr.bf16.mxu0 %v2686_v14 }
 0x3b8   :  { %2227 = vmatpush3.bf16.msra.mxu0 %v2762_v15 }
 0x3b9   :  { %2228 = vmatprep.subr.bf16.mxu0 %v2686_v14 }
 0x3bc   :  { %2229 = vmatpush3.bf16.msra.mxu0 %v2768_v17 }
 0x3bd   :  { %2230 = vmatprep.subr.bf16.mxu0 %v2686_v14 }
 0x3c0   :  { %2231 = vmatpush3.bf16.msra.mxu0 %v2774_v19 }
 0x3c1   :  { %2232 = vmatprep.subr.bf16.mxu0 %v2686_v14 }
 0x3c4   :  { %2233 = vmatpush3.bf16.msra.mxu0 %v2780_v21 }
 0x3c5   :  { %2234 = vmatprep.subr.bf16.mxu0 %v2686_v14 }
 0x3c8   :  { %2235 = vmatpush3.bf16.msra.mxu0 %v2786_v23 }
 0x3c9   :  { %2236 = vmatprep.subr.bf16.mxu0 %v2686_v14 }
 0x3cc   :  { %2237 = vmatpush3.bf16.msra.mxu0 %v2792_v25 }
 0x3cd   :  { %2238 = vmatprep.subr.bf16.mxu0 %v2686_v14 }
 0x3d0   :  { %2239 = vmatpush3.bf16.msra.mxu0 %v2798_v26 }
 0x3d1   :  { %2264 = vmatprep.subr.bf16.mxu0 %v2686_v14 }
 0x473   :  { %v815_v43 = vpop.f32.mrf.mxu0 }
 0x474   :  { %v822_v2 = vadd.f32 %v815_v43, %v355_v30 }
 0x475   :  { %v2202_v3 = vpop.f32.mrf.mxu0 }
 0x476   :  { %v824_v5 = vmax.f32 %v822_v2, 0.0 }
 0x477   :  { %v818_v6 = vpop.f32.mrf.mxu0 }
 0x478   :  { %v826_v7 = vsub.f32 %v824_v5, %v772_v61  ;;  %v823_v8 = vadd.f32 %v818_v6, %v358_v4 }
 0x479   :  { %v2203_v9 = vpop.f32.mrf.mxu0 }
 0x47a   :  { %v828_v10 = vmul.f32 0.1, %v826_v7  ;;  %v825_v13 = vmax.f32 %v823_v8, 0.0  ;;  %v374_v7 = vadd.f32 %v2860_v50, %v2924_v58  ;;  %v379_v58 = vadd.f32 %v2918_v55, %v2860_v50 }
 0x47c   :  { %v830_v16 = vadd.f32 %v828_v10, %v772_v61  ;;  %v827_v18 = vsub.f32 %v825_v13, %v773_v0 }
 0x47e   :  { %833 = vst [vmem:[#allocation13 + $0x40] sm:$0xff] %v830_v16  ;;  %v829_v20 = vmul.f32 0.1, %v827_v18 }
 0x480   :  { %v831_v22 = vadd.f32 %v829_v20, %v773_v0 }
 0x482   :  { %834 = vst [vmem:[#allocation13 + $0x48] sm:$0xff] %v831_v22  ;;  %v2978_v52 = vpack.c.bf16 %v831_v22, %v830_v16 }
 0x484   :  { %2221 = vmatmul.mubr.bf16.vlgmr.msra.gmra.mxu1 %v2978_v52 }
 0x485   :  { %2245 = vmatpush3.bf16.msra.mxu1 %v2757_v12  ;;  %2260 = vmatprep.mubr.msk.bf16.mxu1 %vm2687_vm0, %v2686_v14 }
 0x486   :  { %2246 = vmatprep.subr.bf16.mxu1 %v2686_v14 }
 0x489   :  { %2247 = vmatpush3.bf16.msra.mxu1 %v2762_v15 }
 0x48a   :  { %2248 = vmatprep.subr.bf16.mxu1 %v2686_v14 }
 0x48d   :  { %2249 = vmatpush3.bf16.msra.mxu1 %v2768_v17 }
 0x48e   :  { %2250 = vmatprep.subr.bf16.mxu1 %v2686_v14 }
 0x491   :  { %2251 = vmatpush3.bf16.msra.mxu1 %v2774_v19 }
 0x492   :  { %2252 = vmatprep.subr.bf16.mxu1 %v2686_v14 }
 0x495   :  { %2253 = vmatpush3.bf16.msra.mxu1 %v2780_v21 }
 0x496   :  { %2254 = vmatprep.subr.bf16.mxu1 %v2686_v14 }
 0x499   :  { %2255 = vmatpush3.bf16.msra.mxu1 %v2786_v23 }
 0x49a   :  { %2256 = vmatprep.subr.bf16.mxu1 %v2686_v14 }
 0x49d   :  { %2257 = vmatpush3.bf16.msra.mxu1 %v2792_v25 }
 0x49e   :  { %2258 = vmatprep.subr.bf16.mxu1 %v2686_v14 }
 0x4a1   :  { %2259 = vmatpush3.bf16.msra.mxu1 %v2798_v26 }
 0x4a2   :  { %2284 = vmatprep.subr.bf16.mxu1 %v2686_v14 }
 0x544   :  { %v873_v24 = vpop.f32.mrf.mxu1 }
 0x545   :  { %v880_v27 = vadd.f32 %v873_v24, %v363_v54 }
 0x546   :  { %v2222_v29 = vpop.f32.mrf.mxu1 }
 0x547   :  { %v882_v46 = vmax.f32 %v880_v27, 0.0 }
 0x548   :  { %v876_v59 = vpop.f32.mrf.mxu1 }
 0x549   :  { %v884_v60 = vsub.f32 %v882_v46, %v830_v16  ;;  %v881_v61 = vadd.f32 %v876_v59, %v366_v31  ;;  %v382_v59 = vadd.f32 %v2922_v57, %v2860_v50  ;;  %v387_v57 = vadd.f32 %v2860_v50, %v2829_v33 }
 0x54a   :  { %v2223_v62 = vpop.f32.mrf.mxu1 }
 0x54b   :  { %v886_v63 = vmul.f32 0.1, %v884_v60  ;;  %v883_v0 = vmax.f32 %v881_v61, 0.0 }
 0x54d   :  { %v888_v30 = vadd.f32 %v886_v63, %v830_v16  ;;  %v885_v43 = vsub.f32 %v883_v0, %v831_v22 }
 0x54f   :  { %891 = vst [vmem:[#allocation13 + $0x50] sm:$0xff] %v888_v30  ;;  %v887_v2 = vmul.f32 0.1, %v885_v43 }
 0x551   :  { %v889_v3 = vadd.f32 %v887_v2, %v831_v22 }
 0x553   :  { %892 = vst [vmem:[#allocation13 + $0x58] sm:$0xff] %v889_v3  ;;  %v3003_v48 = vpack.c.bf16 %v889_v3, %v888_v30 }
 0x555   :  { %2241 = vmatmul.mubr.bf16.vlgmr.msra.gmra.mxu0 %v3003_v48 }
 0x556   :  { %2265 = vmatpush3.bf16.msra.mxu0 %v2757_v12  ;;  %2280 = vmatprep.mubr.msk.bf16.mxu0 %vm2687_vm0, %v2686_v14 }
 0x557   :  { %2266 = vmatprep.subr.bf16.mxu0 %v2686_v14 }
 0x55a   :  { %2267 = vmatpush3.bf16.msra.mxu0 %v2762_v15 }
 0x55b   :  { %2268 = vmatprep.subr.bf16.mxu0 %v2686_v14 }
 0x55e   :  { %2269 = vmatpush3.bf16.msra.mxu0 %v2768_v17 }
 0x55f   :  { %2270 = vmatprep.subr.bf16.mxu0 %v2686_v14 }
 0x562   :  { %2271 = vmatpush3.bf16.msra.mxu0 %v2774_v19 }
 0x563   :  { %2272 = vmatprep.subr.bf16.mxu0 %v2686_v14 }
 0x566   :  { %2273 = vmatpush3.bf16.msra.mxu0 %v2780_v21 }
 0x567   :  { %2274 = vmatprep.subr.bf16.mxu0 %v2686_v14 }
 0x56a   :  { %2275 = vmatpush3.bf16.msra.mxu0 %v2786_v23 }
 0x56b   :  { %2276 = vmatprep.subr.bf16.mxu0 %v2686_v14 }
 0x56e   :  { %2277 = vmatpush3.bf16.msra.mxu0 %v2792_v25 }
 0x56f   :  { %2278 = vmatprep.subr.bf16.mxu0 %v2686_v14 }
 0x572   :  { %2279 = vmatpush3.bf16.msra.mxu0 %v2798_v26 }
 0x573   :  { %2304 = vmatprep.subr.bf16.mxu0 %v2686_v14 }
 0x615   :  { %v931_v4 = vpop.f32.mrf.mxu0 }
 0x616   :  { %v938_v5 = vadd.f32 %v931_v4, %v371_v53 }
 0x617   :  { %v2242_v6 = vpop.f32.mrf.mxu0 }
 0x618   :  { %v940_v8 = vmax.f32 %v938_v5, 0.0 }
 0x619   :  { %v934_v9 = vpop.f32.mrf.mxu0 }
 0x61a   :  { %v942_v10 = vsub.f32 %v940_v8, %v888_v30  ;;  %v939_v13 = vadd.f32 %v934_v9, %v374_v7  ;;  %v390_v8 = vadd.f32 %v2860_v50, %v2833_v35  ;;  %v395_v35 = vadd.f32 %v2827_v32, %v2860_v50 }
 0x61b   :  { %v2243_v16 = vpop.f32.mrf.mxu0 }
 0x61c   :  { %v944_v18 = vmul.f32 0.1, %v942_v10  ;;  %v941_v20 = vmax.f32 %v939_v13, 0.0 }
 0x61e   :  { %v946_v22 = vadd.f32 %v944_v18, %v888_v30  ;;  %v943_v54 = vsub.f32 %v941_v20, %v889_v3 }
 0x620   :  { %949 = vst [vmem:[#allocation13 + $0x60] sm:$0xff] %v946_v22  ;;  %v945_v24 = vmul.f32 0.1, %v943_v54 }
 0x622   :  { %v947_v27 = vadd.f32 %v945_v24, %v889_v3 }
 0x624   :  { %950 = vst [vmem:[#allocation13 + $0x68] sm:$0xff] %v947_v27  ;;  %v3028_v56 = vpack.c.bf16 %v947_v27, %v946_v22 }
 0x626   :  { %2261 = vmatmul.mubr.bf16.vlgmr.msra.gmra.mxu1 %v3028_v56 }
 0x627   :  { %2285 = vmatpush3.bf16.msra.mxu1 %v2757_v12  ;;  %2300 = vmatprep.mubr.msk.bf16.mxu1 %vm2687_vm0, %v2686_v14 }
 0x628   :  { %2286 = vmatprep.subr.bf16.mxu1 %v2686_v14 }
 0x62b   :  { %2287 = vmatpush3.bf16.msra.mxu1 %v2762_v15 }
 0x62c   :  { %2288 = vmatprep.subr.bf16.mxu1 %v2686_v14 }
 0x62f   :  { %2289 = vmatpush3.bf16.msra.mxu1 %v2768_v17 }
 0x630   :  { %2290 = vmatprep.subr.bf16.mxu1 %v2686_v14 }
 0x633   :  { %2291 = vmatpush3.bf16.msra.mxu1 %v2774_v19 }
 0x634   :  { %2292 = vmatprep.subr.bf16.mxu1 %v2686_v14 }
 0x637   :  { %2293 = vmatpush3.bf16.msra.mxu1 %v2780_v21 }
 0x638   :  { %2294 = vmatprep.subr.bf16.mxu1 %v2686_v14 }
 0x63b   :  { %2295 = vmatpush3.bf16.msra.mxu1 %v2786_v23 }
 0x63c   :  { %2296 = vmatprep.subr.bf16.mxu1 %v2686_v14 }
 0x63f   :  { %2297 = vmatpush3.bf16.msra.mxu1 %v2792_v25 }
 0x640   :  { %2298 = vmatprep.subr.bf16.mxu1 %v2686_v14 }
 0x643   :  { %2299 = vmatpush3.bf16.msra.mxu1 %v2798_v26 }
 0x644   :  { %2324 = vmatprep.subr.bf16.mxu1 %v2686_v14 }
 0x6e6   :  { %v989_v29 = vpop.f32.mrf.mxu1 }
 0x6e7   :  { %v996_v31 = vadd.f32 %v989_v29, %v379_v58 }
 0x6e8   :  { %v2262_v46 = vpop.f32.mrf.mxu1 }
 0x6e9   :  { %v998_v60 = vmax.f32 %v996_v31, 0.0 }
 0x6ea   :  { %v992_v61 = vpop.f32.mrf.mxu1 }
 0x6eb   :  { %v1000_v62 = vsub.f32 %v998_v60, %v946_v22  ;;  %v997_v63 = vadd.f32 %v992_v61, %v382_v59  ;;  %v398_v59 = vadd.f32 %v2831_v34, %v2860_v50 }
 0x6ec   :  { %v2263_v0 = vpop.f32.mrf.mxu1 }
 0x6ed   :  { %v1002_v30 = vmul.f32 0.1, %v1000_v62  ;;  %v999_v43 = vmax.f32 %v997_v63, 0.0 }
 0x6ef   :  { %v1004_v2 = vadd.f32 %v1002_v30, %v946_v22  ;;  %v1001_v3 = vsub.f32 %v999_v43, %v947_v27 }
 0x6f1   :  { %1007 = vst [vmem:[#allocation13 + $0x70] sm:$0xff] %v1004_v2  ;;  %v1003_v53 = vmul.f32 0.1, %v1001_v3 }
 0x6f3   :  { %v1005_v4 = vadd.f32 %v1003_v53, %v947_v27 }
 0x6f5   :  { %1008 = vst [vmem:[#allocation13 + $0x78] sm:$0xff] %v1005_v4  ;;  %v3053_v55 = vpack.c.bf16 %v1005_v4, %v1004_v2 }
 0x6f7   :  { %2281 = vmatmul.mubr.bf16.vlgmr.msra.gmra.mxu0 %v3053_v55 }
 0x6f8   :  { %2305 = vmatpush3.bf16.msra.mxu0 %v2757_v12  ;;  %2320 = vmatprep.mubr.msk.bf16.mxu0 %vm2687_vm0, %v2686_v14 }
 0x6f9   :  { %2306 = vmatprep.subr.bf16.mxu0 %v2686_v14 }
 0x6fc   :  { %2307 = vmatpush3.bf16.msra.mxu0 %v2762_v15 }
 0x6fd   :  { %2308 = vmatprep.subr.bf16.mxu0 %v2686_v14 }
 0x700   :  { %2309 = vmatpush3.bf16.msra.mxu0 %v2768_v17 }
 0x701   :  { %2310 = vmatprep.subr.bf16.mxu0 %v2686_v14 }
 0x704   :  { %2311 = vmatpush3.bf16.msra.mxu0 %v2774_v19 }
 0x705   :  { %2312 = vmatprep.subr.bf16.mxu0 %v2686_v14 }
 0x708   :  { %2313 = vmatpush3.bf16.msra.mxu0 %v2780_v21 }
 0x709   :  { %2314 = vmatprep.subr.bf16.mxu0 %v2686_v14 }
 0x70c   :  { %2315 = vmatpush3.bf16.msra.mxu0 %v2786_v23 }
 0x70d   :  { %2316 = vmatprep.subr.bf16.mxu0 %v2686_v14 }
 0x710   :  { %2317 = vmatpush3.bf16.msra.mxu0 %v2792_v25 }
 0x711   :  { %2318 = vmatprep.subr.bf16.mxu0 %v2686_v14 }
 0x714   :  { %2319 = vmatpush3.bf16.msra.mxu0 %v2798_v26 }
 0x715   :  { %2344 = vmatprep.subr.bf16.mxu0 %v2686_v14 }
 0x7b7   :  { %v1047_v5 = vpop.f32.mrf.mxu0 }
 0x7b8   :  { %v1054_v6 = vadd.f32 %v1047_v5, %v387_v57 }
 0x7b9   :  { %v2282_v7 = vpop.f32.mrf.mxu0 }
 0x7ba   :  { %v1056_v9 = vmax.f32 %v1054_v6, 0.0  ;;  %v406_v6 = vadd.f32 %v2860_v50, %v2841_v39  ;;  %v414_v39 = vadd.f32 %v2839_v38, %v2860_v50  ;;  %v2542_v38 = vld [vmem:[#allocation9 + $0x30] sm:$0xff]  }
 0x7bb   :  { %v1050_v10 = vpop.f32.mrf.mxu0 }
 0x7bc   :  { %v1058_v13 = vsub.f32 %v1056_v9, %v1004_v2  ;;  %v1055_v16 = vadd.f32 %v1050_v10, %v390_v8 }
 0x7bd   :  { %v2283_v18 = vpop.f32.mrf.mxu0 }
 0x7be   :  { %v1060_v20 = vmul.f32 0.1, %v1058_v13  ;;  %v1057_v22 = vmax.f32 %v1055_v16, 0.0 }
 0x7c0   :  { %v1062_v54 = vadd.f32 %v1060_v20, %v1004_v2  ;;  %v1059_v24 = vsub.f32 %v1057_v22, %v1005_v4 }
 0x7c2   :  { %1065 = vst [vmem:[#allocation13 + $0x80] sm:$0xff] %v1062_v54  ;;  %v1061_v27 = vmul.f32 0.1, %v1059_v24 }
 0x7c4   :  { %v1063_v58 = vadd.f32 %v1061_v27, %v1005_v4  ;;  %v3131_v27 = vld [vmem:[#allocation9 + $0x38] sm:$0xff]  }
 0x7c6   :  { %1066 = vst [vmem:[#allocation13 + $0x88] sm:$0xff] %v1063_v58  ;;  %v3078_v33 = vpack.c.bf16 %v1063_v58, %v1062_v54 }
 0x7c8   :  { %2301 = vmatmul.mubr.bf16.vlgmr.msra.gmra.mxu1 %v3078_v33 }
 0x7c9   :  { %2325 = vmatpush3.bf16.msra.mxu1 %v2757_v12  ;;  %2340 = vmatprep.mubr.msk.bf16.mxu1 %vm2687_vm0, %v2686_v14 }
 0x7ca   :  { %2326 = vmatprep.subr.bf16.mxu1 %v2686_v14 }
 0x7cd   :  { %2327 = vmatpush3.bf16.msra.mxu1 %v2762_v15 }
 0x7ce   :  { %2328 = vmatprep.subr.bf16.mxu1 %v2686_v14 }
 0x7d1   :  { %2329 = vmatpush3.bf16.msra.mxu1 %v2768_v17 }
 0x7d2   :  { %2330 = vmatprep.subr.bf16.mxu1 %v2686_v14 }
 0x7d5   :  { %2331 = vmatpush3.bf16.msra.mxu1 %v2774_v19 }
 0x7d6   :  { %2332 = vmatprep.subr.bf16.mxu1 %v2686_v14 }
 0x7d9   :  { %2333 = vmatpush3.bf16.msra.mxu1 %v2780_v21 }
 0x7da   :  { %2334 = vmatprep.subr.bf16.mxu1 %v2686_v14 }
 0x7dd   :  { %2335 = vmatpush3.bf16.msra.mxu1 %v2786_v23 }
 0x7de   :  { %2336 = vmatprep.subr.bf16.mxu1 %v2686_v14 }
 0x7e1   :  { %2337 = vmatpush3.bf16.msra.mxu1 %v2792_v25 }
 0x7e2   :  { %2338 = vmatprep.subr.bf16.mxu1 %v2686_v14 }
 0x7e5   :  { %2339 = vmatpush3.bf16.msra.mxu1 %v2798_v26 }
 0x7e6   :  { %2364 = vmatprep.subr.bf16.mxu1 %v2686_v14 }
 0x888   :  { %v1105_v29 = vpop.f32.mrf.mxu1 }
 0x889   :  { %v1112_v31 = vadd.f32 %v1105_v29, %v395_v35 }
 0x88a   :  { %v2302_v46 = vpop.f32.mrf.mxu1 }
 0x88b   :  { %v1114_v60 = vmax.f32 %v1112_v31, 0.0 }
 0x88c   :  { %v1108_v61 = vpop.f32.mrf.mxu1 }
 0x88d   :  { %v1116_v62 = vsub.f32 %v1114_v60, %v1062_v54  ;;  %v1113_v63 = vadd.f32 %v1108_v61, %v398_v59 }
 0x88e   :  { %v2303_v0 = vpop.f32.mrf.mxu1 }
 0x88f   :  { %v1118_v30 = vmul.f32 0.1, %v1116_v62  ;;  %v1115_v43 = vmax.f32 %v1113_v63, 0.0  ;;  %v2543_v62 = vld [vmem:[#allocation9 + $0x28] sm:$0xff]   ;;  %v2544_v63 = vld [vmem:[#allocation9 + $0x20] sm:$0xff]   ;;  %v2545_v0 = vld [vmem:[#allocation9 + $0x18] sm:$0xff]  }
 0x891   :  { %v1120_v2 = vadd.f32 %v1118_v30, %v1062_v54  ;;  %v1117_v3 = vsub.f32 %v1115_v43, %v1063_v58  ;;  %v2546_v30 = vld [vmem:[#allocation9 + $0x10] sm:$0xff]   ;;  %v2547_v43 = vld [vmem:[#allocation9 + $0x8] sm:$0xff]  }
 0x893   :  { %1123 = vst [vmem:[#allocation13 + $0x90] sm:$0xff] %v1120_v2  ;;  %v1119_v53 = vmul.f32 0.1, %v1117_v3  ;;  %v419_v3 = vadd.f32 %v2860_v50, %v2845_v41 }
 0x895   :  { %v1121_v4 = vadd.f32 %v1119_v53, %v1063_v58 }
 0x897   :  { %1124 = vst [vmem:[#allocation13 + $0x98] sm:$0xff] %v1121_v4  ;;  %v3103_v32 = vpack.c.bf16 %v1121_v4, %v1120_v2 }
 0x899   :  { %2321 = vmatmul.mubr.bf16.vlgmr.msra.gmra.mxu0 %v3103_v32 }
 0x89a   :  { %2345 = vmatpush3.bf16.msra.mxu0 %v2757_v12  ;;  %2360 = vmatprep.mubr.msk.bf16.mxu0 %vm2687_vm0, %v2686_v14  ;;  %v403_v12 = vadd.f32 %v2860_v50, %v2837_v37 }
 0x89b   :  { %2346 = vmatprep.subr.bf16.mxu0 %v2686_v14 }
 0x89e   :  { %2347 = vmatpush3.bf16.msra.mxu0 %v2762_v15 }
 0x89f   :  { %2348 = vmatprep.subr.bf16.mxu0 %v2686_v14 }
 0x8a2   :  { %2349 = vmatpush3.bf16.msra.mxu0 %v2768_v17 }
 0x8a3   :  { %2350 = vmatprep.subr.bf16.mxu0 %v2686_v14 }
 0x8a6   :  { %2351 = vmatpush3.bf16.msra.mxu0 %v2774_v19 }
 0x8a7   :  { %2352 = vmatprep.subr.bf16.mxu0 %v2686_v14 }
 0x8aa   :  { %2353 = vmatpush3.bf16.msra.mxu0 %v2780_v21 }
 0x8ab   :  { %2354 = vmatprep.subr.bf16.mxu0 %v2686_v14 }
 0x8ae   :  { %2355 = vmatpush3.bf16.msra.mxu0 %v2786_v23 }
 0x8af   :  { %2356 = vmatprep.subr.bf16.mxu0 %v2686_v14 }
 0x8b2   :  { %2357 = vmatpush3.bf16.msra.mxu0 %v2792_v25 }
 0x8b3   :  { %2358 = vmatprep.subr.bf16.mxu0 %v2686_v14 }
 0x8b6   :  { %2359 = vmatpush3.bf16.msra.mxu0 %v2798_v26 }
 0x8b7   :  { %2384 = vmatprep.subr.bf16.mxu0 %v2686_v14 }
 0x959   :  { %v1163_v34 = vpop.f32.mrf.mxu0 }
 0x95a   :  { %v1170_v57 = vadd.f32 %v1163_v34, %v403_v12  ;;  %v422_v34 = vadd.f32 %v2860_v50, %v2849_v44  ;;  %v2533_v44 = vld [vmem:[#allocation10 + $0x38] sm:$0xff]  }
 0x95b   :  { %v2322_v5 = vpop.f32.mrf.mxu0 }
 0x95c   :  { %v1172_v7 = vmax.f32 %v1170_v57, 0.0 }
 0x95d   :  { %v1166_v8 = vpop.f32.mrf.mxu0 }
 0x95e   :  { %v1174_v9 = vsub.f32 %v1172_v7, %v1120_v2  ;;  %v1171_v10 = vadd.f32 %v1166_v8, %v406_v6 }
 0x95f   :  { %v2323_v13 = vpop.f32.mrf.mxu0 }
 0x960   :  { %v1176_v16 = vmul.f32 0.1, %v1174_v9  ;;  %v1173_v18 = vmax.f32 %v1171_v10, 0.0 }
 0x962   :  { %v1178_v20 = vadd.f32 %v1176_v16, %v1120_v2  ;;  %v1175_v22 = vsub.f32 %v1173_v18, %v1121_v4  ;;  %v2548_v2 = vld [vmem:[#allocation9] sm:$0xff]  }
 0x964   :  { %1181 = vst [vmem:[#allocation13 + $0xa0] sm:$0xff] %v1178_v20  ;;  %v1177_v54 = vmul.f32 0.1, %v1175_v22  ;;  %v427_v22 = vadd.f32 %v2843_v40, %v2860_v50 }
 0x966   :  { %v1179_v24 = vadd.f32 %v1177_v54, %v1121_v4 }
 0x968   :  { %1182 = vst [vmem:[#allocation13 + $0xa8] sm:$0xff] %v1179_v24  ;;  %v3128_v37 = vpack.c.bf16 %v1179_v24, %v1178_v20 }
 0x96a   :  { %2341 = vmatmul.mubr.bf16.vlgmr.msra.gmra.mxu1 %v3128_v37 }
 0x96b   :  { %2365 = vmatpush3.bf16.msra.mxu1 %v3131_v27  ;;  %2380 = vmatprep.mubr.msk.bf16.mxu1 %vm2687_vm0, %v2686_v14 }
 0x96c   :  { %2366 = vmatprep.subr.bf16.mxu1 %v2686_v14 }
 0x96f   :  { %2367 = vmatpush3.bf16.msra.mxu1 %v2762_v15  ;;  %v411_v15 = vadd.f32 %v2835_v36, %v2860_v50 }
 0x970   :  { %2368 = vmatprep.subr.bf16.mxu1 %v2686_v14 }
 0x973   :  { %2369 = vmatpush3.bf16.msra.mxu1 %v2768_v17 }
 0x974   :  { %2370 = vmatprep.subr.bf16.mxu1 %v2686_v14 }
 0x977   :  { %2371 = vmatpush3.bf16.msra.mxu1 %v2774_v19 }
 0x978   :  { %2372 = vmatprep.subr.bf16.mxu1 %v2686_v14 }
 0x97b   :  { %2373 = vmatpush3.bf16.msra.mxu1 %v2780_v21 }
 0x97c   :  { %2374 = vmatprep.subr.bf16.mxu1 %v2686_v14 }
 0x97f   :  { %2375 = vmatpush3.bf16.msra.mxu1 %v2786_v23 }
 0x980   :  { %2376 = vmatprep.subr.bf16.mxu1 %v2686_v14 }
 0x983   :  { %2377 = vmatpush3.bf16.msra.mxu1 %v2792_v25 }
 0x984   :  { %2378 = vmatprep.subr.bf16.mxu1 %v2686_v14 }
 0x987   :  { %2379 = vmatpush3.bf16.msra.mxu1 %v2798_v26 }
 0x988   :  { %2404 = vmatprep.subr.bf16.mxu1 %v2686_v14 }
 0xa2a   :  { %v1221_v17 = vpop.f32.mrf.mxu1 }
 0xa2b   :  { %v1228_v19 = vadd.f32 %v1221_v17, %v411_v15  ;;  %v430_v15 = vadd.f32 %v2847_v42, %v2860_v50  ;;  %v2535_v42 = vld [vmem:[#allocation10 + $0x28] sm:$0xff]   ;;  %v2536_v50 = vld [vmem:[#allocation10 + $0x20] sm:$0xff]  }
 0xa2c   :  { %v2342_v21 = vpop.f32.mrf.mxu1 }
 0xa2d   :  { %v1230_v23 = vmax.f32 %v1228_v19, 0.0 }
 0xa2e   :  { %v1224_v58 = vpop.f32.mrf.mxu1 }
 0xa2f   :  { %v1232_v35 = vsub.f32 %v1230_v23, %v1178_v20  ;;  %v1229_v29 = vadd.f32 %v1224_v58, %v414_v39 }
 0xa30   :  { %v2343_v25 = vpop.f32.mrf.mxu1 }
 0xa31   :  { %v1234_v31 = vmul.f32 0.1, %v1232_v35  ;;  %v1231_v46 = vmax.f32 %v1229_v29, 0.0 }
 0xa33   :  { %v1236_v59 = vadd.f32 %v1234_v31, %v1178_v20  ;;  %v1233_v26 = vsub.f32 %v1231_v46, %v1179_v24  ;;  %v1476_v46 = vld [vmem:[#allocation13 + $0x8] sm:$0xff] }
 0xa35   :  { %1239 = vst [vmem:[#allocation13 + $0xb0] sm:$0xff] %v1236_v59  ;;  %v1235_v60 = vmul.f32 0.1, %v1233_v26  ;;  %v2534_v26 = vld [vmem:[#allocation10 + $0x30] sm:$0xff]  }
 0xa37   :  { %v1237_v61 = vadd.f32 %v1235_v60, %v1179_v24 }
 0xa39   :  { %1240 = vst [vmem:[#allocation13 + $0xb8] sm:$0xff] %v1237_v61  ;;  %v3155_v36 = vpack.c.bf16 %v1237_v61, %v1236_v59 }
 0xa3b   :  { %2361 = vmatmul.mubr.bf16.vlgmr.msra.gmra.mxu0 %v3155_v36 }
 0xa3c   :  { %2385 = vmatpush3.bf16.msra.mxu0 %v3131_v27  ;;  %2400 = vmatprep.mubr.msk.bf16.mxu0 %vm2687_vm0, %v2686_v14 }
 0xa3d   :  { %2386 = vmatprep.subr.bf16.mxu0 %v2686_v14 }
 0xa40   :  { %2387 = vmatpush3.bf16.msra.mxu0 %v2542_v38 }
 0xa41   :  { %2388 = vmatprep.subr.bf16.mxu0 %v2686_v14 }
 0xa44   :  { %2389 = vmatpush3.bf16.msra.mxu0 %v2543_v62 }
 0xa45   :  { %2390 = vmatprep.subr.bf16.mxu0 %v2686_v14 }
 0xa48   :  { %2391 = vmatpush3.bf16.msra.mxu0 %v2544_v63 }
 0xa49   :  { %2392 = vmatprep.subr.bf16.mxu0 %v2686_v14 }
 0xa4c   :  { %2393 = vmatpush3.bf16.msra.mxu0 %v2545_v0 }
 0xa4d   :  { %2394 = vmatprep.subr.bf16.mxu0 %v2686_v14 }
 0xa50   :  { %2395 = vmatpush3.bf16.msra.mxu0 %v2546_v30 }
 0xa51   :  { %2396 = vmatprep.subr.bf16.mxu0 %v2686_v14 }
 0xa54   :  { %2397 = vmatpush3.bf16.msra.mxu0 %v2547_v43 }
 0xa55   :  { %2398 = vmatprep.subr.bf16.mxu0 %v2686_v14 }
 0xa58   :  { %2399 = vmatpush3.bf16.msra.mxu0 %v2548_v2 }
 0xa59   :  { %2424 = vmatprep.subr.bf16.mxu0 %v2533_v44 }
 0xafb   :  { %v1279_v53 = vpop.f32.mrf.mxu0 }
 0xafc   :  { %v1286_v4 = vadd.f32 %v1279_v53, %v419_v3 }
 0xafd   :  { %v2362_v12 = vpop.f32.mrf.mxu0 }
 0xafe   :  { %v1288_v57 = vmax.f32 %v1286_v4, 0.0  ;;  %v3221_v12 = vld [vmem:[%s3274_s5] ss:$0 sm:$0xff]  ;;  %s2689_s5 = smov [#allocation13]  }
 0xaff   :  { %v1282_v5 = vpop.f32.mrf.mxu0  ;;  %s1804_s24 = sshll.u32 %s2689_s5, 4  ;;  %s1805_s24 = int_to_ptr.vmem [resolvable:$true] %s1804_s24 }
 0xb00   :  { %v1290_v6 = vsub.f32 %v1288_v57, %v1236_v59  ;;  %v1287_v7 = vadd.f32 %v1282_v5, %v422_v34  ;;  %s2630_s25 = scalar_lea.vmem %s1805_s24, 4096  ;;  %p2635_p7 = scmp.lt.s32.totalorder %s1805_s24, %s1805_s24 }
 0xb01   :  { %v2363_v8 = vpop.f32.mrf.mxu0  ;;  %p2631_p6 = scmp.ne.s32.totalorder %s1805_s24, %s2630_s25  ;;  %p2636_p8 = scmp.lt.s32.totalorder %s2630_s25, %s2630_s25 }
 0xb02   :  { %v1292_v9 = vmul.f32 0.1, %v1290_v6  ;;  %v1289_v10 = vmax.f32 %v1287_v7, 0.0 }
 0xb03   :  { %p2637_p9 = por %p2636_p8, %p2635_p7 }
 0xb04   :  { %v1294_v13 = vadd.f32 %v1292_v9, %v1236_v59  ;;  %v1291_v16 = vsub.f32 %v1289_v10, %v1237_v61  ;;  %v1475_v59 = vld [vmem:[#allocation13] sm:$0xff] }
 0xb05   :  { %v1507_v60 = vpack.c.bf16 %v1476_v46, %v1475_v59  ;;  %p2638_p10 = pnand %p2637_p9, %p2631_p6 }
 0xb06   :  { %1297 = vst [vmem:[#allocation13 + $0xc0] sm:$0xff] %v1294_v13  ;;  %v1293_v18 = vmul.f32 0.1, %v1291_v16 }
 0xb08   :  { %v1295_v20 = vadd.f32 %v1293_v18, %v1237_v61  ;;  %v2537_v61 = vld [vmem:[#allocation10 + $0x18] sm:$0xff]  }
 0xb0a   :  { %1298 = vst [vmem:[#allocation13 + $0xc8] sm:$0xff] %v1295_v20  ;;  %v3172_v41 = vpack.c.bf16 %v1295_v20, %v1294_v13 }
 0xb0c   :  { %2381 = vmatmul.mubr.bf16.vlgmr.msra.gmra.mxu1 %v3172_v41 }
 0xb0d   :  { %2405 = vmatpush3.bf16.msra.mxu1 %v3131_v27  ;;  %2420 = vmatprep.mubr.msk.bf16.mxu1 %vm2687_vm0, %v2686_v14 }
 0xb0e   :  { %2406 = vmatprep.subr.bf16.mxu1 %v2686_v14 }
 0xb11   :  { %2407 = vmatpush3.bf16.msra.mxu1 %v2542_v38  ;;  %v2538_v38 = vld [vmem:[#allocation10 + $0x10] sm:$0xff]  }
 0xb12   :  { %2408 = vmatprep.subr.bf16.mxu1 %v2686_v14 }
 0xb15   :  { %2409 = vmatpush3.bf16.msra.mxu1 %v2543_v62  ;;  %v2539_v62 = vld [vmem:[#allocation10 + $0x8] sm:$0xff]  }
 0xb16   :  { %2410 = vmatprep.subr.bf16.mxu1 %v2686_v14 }
 0xb19   :  { %2411 = vmatpush3.bf16.msra.mxu1 %v2544_v63  ;;  %v2540_v63 = vld [vmem:[#allocation10] sm:$0xff]  }
 0xb1a   :  { %2412 = vmatprep.subr.bf16.mxu1 %v2686_v14 }
 0xb1d   :  { %2413 = vmatpush3.bf16.msra.mxu1 %v2545_v0  ;;  %v1477_v0 = vld [vmem:[#allocation13 + $0x10] sm:$0xff] }
 0xb1e   :  { %2414 = vmatprep.subr.bf16.mxu1 %v2686_v14 }
 0xb21   :  { %2415 = vmatpush3.bf16.msra.mxu1 %v2546_v30  ;;  %v1508_v30 = vpack.c.bf16 %v2888_v28, %v1477_v0  ;;  %v3204_v28 = vld [vmem:[%s3271_s2] ss:$0 sm:$0xff] }
 0xb22   :  { %2416 = vmatprep.subr.bf16.mxu1 %v2686_v14 }
 0xb25   :  { %2417 = vmatpush3.bf16.msra.mxu1 %v2547_v43 }
 0xb26   :  { %2418 = vmatprep.subr.bf16.mxu1 %v2686_v14 }
 0xb29   :  { %2419 = vmatpush3.bf16.msra.mxu1 %v2548_v2 }
 0xbcc   :  { %v1337_v54 = vpop.f32.mrf.mxu1 }
 0xbcd   :  { %v1344_v24 = vadd.f32 %v1337_v54, %v427_v22 }
 0xbce   :  { %v2382_v27 = vpop.f32.mrf.mxu1 }
 0xbcf   :  { %v1346_v17 = vmax.f32 %v1344_v24, 0.0 }
 0xbd0   :  { %v1340_v19 = vpop.f32.mrf.mxu1 }
 0xbd1   :  { %v1348_v21 = vsub.f32 %v1346_v17, %v1294_v13  ;;  %v1345_v39 = vadd.f32 %v1340_v19, %v430_v15 }
 0xbd2   :  { %v2383_v23 = vpop.f32.mrf.mxu1 }
 0xbd3   :  { %v1350_v58 = vmul.f32 0.1, %v1348_v21  ;;  %v1347_v35 = vmax.f32 %v1345_v39, 0.0 }
 0xbd5   :  { %v1352_v14 = vadd.f32 %v1350_v58, %v1294_v13  ;;  %v1349_v29 = vsub.f32 %v1347_v35, %v1295_v20 }
 0xbd7   :  { %1355 = vst [vmem:[#allocation13 + $0xd0] sm:$0xff] %v1352_v14  ;;  %v1351_v25 = vmul.f32 0.1, %v1349_v29 }
 0xbd9   :  { %v1353_v31 = vadd.f32 %v1351_v25, %v1295_v20 }
 0xbdb   :  { %1356 = vst [vmem:[#allocation13 + $0xd8] sm:$0xff] %v1353_v31  ;;  %v1360_v40 = vpack.c.bf16 %v1353_v31, %v1352_v14 }
 0xbdd   :  { %2401 = vmatmul.mubr.bf16.vlgmr.msra.gmra.mxu0 %v1360_v40 }
 0xbde   :  { %2425 = vmatpush3.bf16.msra.mxu0 %v2533_v44  ;;  %2440 = vmatprep.mubr.bf16.mxu0 %v1507_v60 }
 0xbdf   :  { %2426 = vmatprep.subr.bf16.mxu0 %v2534_v26 }
 0xbe2   :  { %2427 = vmatpush3.bf16.msra.mxu0 %v2534_v26 }
 0xbe3   :  { %2428 = vmatprep.subr.bf16.mxu0 %v2535_v42 }
 0xbe6   :  { %2429 = vmatpush3.bf16.msra.mxu0 %v2535_v42 }
 0xbe7   :  { %2430 = vmatprep.subr.bf16.mxu0 %v2536_v50 }
 0xbea   :  { %2431 = vmatpush3.bf16.msra.mxu0 %v2536_v50 }
 0xbeb   :  { %2432 = vmatprep.subr.bf16.mxu0 %v2537_v61 }
 0xbee   :  { %2433 = vmatpush3.bf16.msra.mxu0 %v2537_v61 }
 0xbef   :  { %2434 = vmatprep.subr.bf16.mxu0 %v2538_v38 }
 0xbf2   :  { %2435 = vmatpush3.bf16.msra.mxu0 %v2538_v38 }
 0xbf3   :  { %2436 = vmatprep.subr.bf16.mxu0 %v2539_v62 }
 0xbf6   :  { %2437 = vmatpush3.bf16.msra.mxu0 %v2539_v62 }
 0xbf7   :  { %2438 = vmatprep.subr.bf16.mxu0 %v2540_v63 }
 0xbfa   :  { %2439 = vmatpush3.bf16.msra.mxu0 %v2540_v63 }
 0xbfd   :  { %2441 = vmatmul.mubr.bf16.vlgmr.msra.gmra.mxu0 %v1508_v30 }
 0xbfe   :  { %2444 = vmatprep.mubr.bf16.mxu0 %v2930_v11  ;;  %v435_v11 = vadd.f32 %v3204_v28, %v2853_v47 }
 0xc05   :  { %2445 = vmatmul.mubr.bf16.gmra.mxu0 %v2953_v1 }
 0xc06   :  { %2448 = vmatprep.mubr.bf16.mxu0 %v2978_v52 }
 0xc0d   :  { %2449 = vmatmul.mubr.bf16.gmra.mxu0 %v3003_v48 }
 0xc0e   :  { %2452 = vmatprep.mubr.bf16.mxu0 %v3028_v56  ;;  %v438_v56 = vadd.f32 %v3204_v28, %v2862_v51 }
 0xc15   :  { %2453 = vmatmul.mubr.bf16.gmra.mxu0 %v3053_v55 }
 0xc16   :  { %2456 = vmatprep.mubr.bf16.mxu0 %v3078_v33 }
 0xc1d   :  { %2457 = vmatmul.mubr.bf16.gmra.mxu0 %v3103_v32 }
 0xc1e   :  { %2460 = vmatprep.mubr.bf16.mxu0 %v3128_v37 }
 0xc25   :  { %2461 = vmatmul.mubr.bf16.gmra.mxu0 %v3155_v36 }
 0xc26   :  { %2464 = vmatprep.mubr.bf16.mxu0 %v3172_v41 }
 0xc2d   :  { %2465 = vmatmul.mubr.bf16.gmra.mxu0 %v1360_v40 }
 0xc9d   :  { %v1395_v1 = vpop.f32.mrf.mxu0 }
 0xc9e   :  { %v1402_v52 = vadd.f32 %v1395_v1, %v435_v11 }
 0xc9f   :  { %v2402_v48 = vpop.f32.mrf.mxu0 }
 0xca0   :  { %v1404_v55 = vmax.f32 %v1402_v52, 0.0 }
 0xca1   :  { %v1398_v33 = vpop.f32.mrf.mxu0 }
 0xca2   :  { %v1406_v32 = vsub.f32 %v1404_v55, %v1352_v14  ;;  %v1403_v37 = vadd.f32 %v1398_v33, %v438_v56 }
 0xca3   :  { %v2403_v36 = vpop.f32.mrf.mxu0 }
 0xca4   :  { %v1408_v43 = vmul.f32 0.1, %v1406_v32  ;;  %v1405_v2 = vmax.f32 %v1403_v37, 0.0 }
 0xca6   :  { %v3210_v3 = vadd.f32 %v1408_v43, %v1352_v14  ;;  %v1407_v53 = vsub.f32 %v1405_v2, %v1353_v31 }
 0xca8   :  { %1413 = vst [vmem:[#allocation13 + $0xe0] sm:$0xff] %v3210_v3  ;;  %v1409_v4 = vmul.f32 0.1, %v1407_v53 }
 0xcaa   :  { %v3213_v47 = vadd.f32 %v1409_v4, %v1353_v31  ;;  %v443_v4 = vadd.f32 %v3204_v28, %v2851_v45 }
 0xcac   :  { %1414 = vst [vmem:[#allocation13 + $0xe8] sm:$0xff] %v3213_v47  ;;  %v1418_v51 = vpack.c.bf16 %v3213_v47, %v3210_v3 }
 0xcae   :  { %2421 = vmatmul.mubr.bf16.vlgmr.msra.gmra.mxu1 %v1418_v51  ;;  %2468 = vmatprep.mubr.bf16.mxu0 %v1418_v51 }
 0xcbd   :  { %v2442_v34 = vpop.f32.mrf.mxu0 }
 0xcbe   :  { %v1637_v57 = vadd.f32 %v2442_v34, %v3221_v12 }
 0xcbf   :  { %v1628_v5 = vpop.f32.mrf.mxu0 }
 0xcc0   :  { %1757 = vst [vmem:[#allocation12 + $0x10] sm:$0xff] %v1637_v57  ;;  %v1629_v6 = vadd.f32 %v3221_v12, %v1628_v5  ;;  %v446_v5 = vadd.f32 %v3204_v28, %v2855_v49 }
 0xcc1   :  { %v2443_v7 = vpop.f32.mrf.mxu0 }
 0xcc2   :  { %1755 = vst [vmem:[#allocation12] sm:$0xff] %v1629_v6  ;;  %v1640_v8 = vadd.f32 %v2443_v7, %v3221_v12 }
 0xcc3   :  { %v1631_v9 = vpop.f32.mrf.mxu0 }
 0xcc4   :  { %1758 = vst [vmem:[#allocation12 + $0x18] sm:$0xff] %v1640_v8  ;;  %v1632_v10 = vadd.f32 %v3221_v12, %v1631_v9 }
 0xcc5   :  { %v2446_v13 = vpop.f32.mrf.mxu0 }
 0xcc6   :  { %1756 = vst [vmem:[#allocation12 + $0x8] sm:$0xff] %v1632_v10  ;;  %v1653_v16 = vadd.f32 %v2446_v13, %v3221_v12 }
 0xcc7   :  { %v1644_v18 = vpop.f32.mrf.mxu0 }
 0xcc8   :  { %1761 = vst [vmem:[#allocation12 + $0x30] sm:$0xff] %v1653_v16  ;;  %v1645_v20 = vadd.f32 %v3221_v12, %v1644_v18 }
 0xcc9   :  { %v2447_v41 = vpop.f32.mrf.mxu0 }
 0xcca   :  { %1759 = vst [vmem:[#allocation12 + $0x20] sm:$0xff] %v1645_v20  ;;  %v1656_v44 = vadd.f32 %v2447_v41, %v3221_v12 }
 0xccb   :  { %v1647_v22 = vpop.f32.mrf.mxu0 }
 0xccc   :  { %1762 = vst [vmem:[#allocation12 + $0x38] sm:$0xff] %v1656_v44  ;;  %v1648_v54 = vadd.f32 %v3221_v12, %v1647_v22 }
 0xccd   :  { %v2450_v24 = vpop.f32.mrf.mxu0 }
 0xcce   :  { %1760 = vst [vmem:[#allocation12 + $0x28] sm:$0xff] %v1648_v54  ;;  %v1669_v27 = vadd.f32 %v2450_v24, %v3221_v12 }
 0xccf   :  { %v1660_v15 = vpop.f32.mrf.mxu0 }
 0xcd0   :  { %1765 = vst [vmem:[#allocation12 + $0x50] sm:$0xff] %v1669_v27  ;;  %v1661_v17 = vadd.f32 %v3221_v12, %v1660_v15 }
 0xcd1   :  { %v2451_v19 = vpop.f32.mrf.mxu0 }
 0xcd2   :  { %1763 = vst [vmem:[#allocation12 + $0x40] sm:$0xff] %v1661_v17  ;;  %v1672_v21 = vadd.f32 %v2451_v19, %v3221_v12 }
 0xcd3   :  { %v1663_v39 = vpop.f32.mrf.mxu0 }
 0xcd4   :  { %1766 = vst [vmem:[#allocation12 + $0x58] sm:$0xff] %v1672_v21  ;;  %v1664_v23 = vadd.f32 %v3221_v12, %v1663_v39 }
 0xcd5   :  { %v2454_v58 = vpop.f32.mrf.mxu0 }
 0xcd6   :  { %1764 = vst [vmem:[#allocation12 + $0x48] sm:$0xff] %v1664_v23  ;;  %v1685_v35 = vadd.f32 %v2454_v58, %v3221_v12 }
 0xcd7   :  { %v1676_v14 = vpop.f32.mrf.mxu0 }
 0xcd8   :  { %1769 = vst [vmem:[#allocation12 + $0x70] sm:$0xff] %v1685_v35  ;;  %v1677_v29 = vadd.f32 %v3221_v12, %v1676_v14 }
 0xcd9   :  { %v2455_v25 = vpop.f32.mrf.mxu0 }
 0xcda   :  { %1767 = vst [vmem:[#allocation12 + $0x60] sm:$0xff] %v1677_v29  ;;  %v1688_v31 = vadd.f32 %v2455_v25, %v3221_v12 }
 0xcdb   :  { %v1679_v46 = vpop.f32.mrf.mxu0 }
 0xcdc   :  { %1770 = vst [vmem:[#allocation12 + $0x78] sm:$0xff] %v1688_v31  ;;  %v1680_v40 = vadd.f32 %v3221_v12, %v1679_v46 }
 0xcdd   :  { %v2458_v59 = vpop.f32.mrf.mxu0 }
 0xcde   :  { %1768 = vst [vmem:[#allocation12 + $0x68] sm:$0xff] %v1680_v40  ;;  %v1701_v26 = vadd.f32 %v2458_v59, %v3221_v12 }
 0xcdf   :  { %v1692_v60 = vpop.f32.mrf.mxu0 }
 0xce0   :  { %1773 = vst [vmem:[#allocation12 + $0x90] sm:$0xff] %v1701_v26  ;;  %v1693_v42 = vadd.f32 %v3221_v12, %v1692_v60 }
 0xce1   :  { %v2459_v50 = vpop.f32.mrf.mxu0 }
 0xce2   :  { %1771 = vst [vmem:[#allocation12 + $0x80] sm:$0xff] %v1693_v42  ;;  %v1704_v61 = vadd.f32 %v2459_v50, %v3221_v12 }
 0xce3   :  { %v1695_v38 = vpop.f32.mrf.mxu0 }
 0xce4   :  { %1774 = vst [vmem:[#allocation12 + $0x98] sm:$0xff] %v1704_v61  ;;  %v1696_v62 = vadd.f32 %v3221_v12, %v1695_v38 }
 0xce5   :  { %v2462_v63 = vpop.f32.mrf.mxu0 }
 0xce6   :  { %1772 = vst [vmem:[#allocation12 + $0x88] sm:$0xff] %v1696_v62  ;;  %v1717_v0 = vadd.f32 %v2462_v63, %v3221_v12 }
 0xce7   :  { %v1708_v30 = vpop.f32.mrf.mxu0 }
 0xce8   :  { %1777 = vst [vmem:[#allocation12 + $0xb0] sm:$0xff] %v1717_v0  ;;  %v1709_v11 = vadd.f32 %v3221_v12, %v1708_v30 }
 0xce9   :  { %v2463_v1 = vpop.f32.mrf.mxu0 }
 0xcea   :  { %1775 = vst [vmem:[#allocation12 + $0xa0] sm:$0xff] %v1709_v11  ;;  %v1720_v52 = vadd.f32 %v2463_v1, %v3221_v12 }
 0xceb   :  { %v1711_v48 = vpop.f32.mrf.mxu0 }
 0xcec   :  { %1778 = vst [vmem:[#allocation12 + $0xb8] sm:$0xff] %v1720_v52  ;;  %v1712_v56 = vadd.f32 %v3221_v12, %v1711_v48 }
 0xced   :  { %v2466_v55 = vpop.f32.mrf.mxu0 }
 0xcee   :  { %1776 = vst [vmem:[#allocation12 + $0xa8] sm:$0xff] %v1712_v56  ;;  %v1733_v33 = vadd.f32 %v2466_v55, %v3221_v12 }
 0xcef   :  { %v1724_v32 = vpop.f32.mrf.mxu0 }
 0xcf0   :  { %1781 = vst [vmem:[#allocation12 + $0xd0] sm:$0xff] %v1733_v33  ;;  %v1725_v37 = vadd.f32 %v3221_v12, %v1724_v32 }
 0xcf1   :  { %v2467_v36 = vpop.f32.mrf.mxu0 }
 0xcf2   :  { %1779 = vst [vmem:[#allocation12 + $0xc0] sm:$0xff] %v1725_v37  ;;  %v1736_v43 = vadd.f32 %v2467_v36, %v3221_v12 }
 0xcf3   :  { %v1727_v2 = vpop.f32.mrf.mxu0 }
 0xcf4   :  { %1782 = vst [vmem:[#allocation12 + $0xd8] sm:$0xff] %v1736_v43  ;;  %v1728_v53 = vadd.f32 %v3221_v12, %v1727_v2 }
 0xcf6   :  { %1780 = vst [vmem:[#allocation12 + $0xc8] sm:$0xff] %v1728_v53 }
 0xd6e   :  { %v1453_v51 = vpop.f32.mrf.mxu1 }
 0xd6f   :  { %v1460_v34 = vadd.f32 %v1453_v51, %v443_v4 }
 0xd70   :  { %v2422_v57 = vpop.f32.mrf.mxu1 }
 0xd71   :  { %v1462_v6 = vmax.f32 %v1460_v34, 0.0 }
 0xd72   :  { %v1456_v7 = vpop.f32.mrf.mxu1 }
 0xd73   :  { %v1464_v8 = vsub.f32 %v1462_v6, %v3210_v3  ;;  %v1461_v9 = vadd.f32 %v1456_v7, %v446_v5 }
 0xd74   :  { %v2423_v10 = vpop.f32.mrf.mxu1 }
 0xd75   :  { %v1466_v13 = vmul.f32 0.1, %v1464_v8  ;;  %v1463_v16 = vmax.f32 %v1461_v9, 0.0 }
 0xd77   :  { %v1468_v18 = vadd.f32 %v1466_v13, %v3210_v3  ;;  %v1465_v20 = vsub.f32 %v1463_v16, %v3213_v47 }
 0xd79   :  { %1471 = vst [vmem:[#allocation13 + $0xf0] sm:$0xff] %v1468_v18  ;;  %v1467_v45 = vmul.f32 0.1, %v1465_v20 }
 0xd7b   :  { %v1469_v41 = vadd.f32 %v1467_v45, %v3213_v47 }
 0xd7d   :  { %1472 = vst [vmem:[#allocation13 + $0xf8] sm:$0xff] %v1469_v41  ;;  %v1522_v44 = vpack.c.bf16 %v1469_v41, %v1468_v18 }
 0xd7f   :  { %2469 = vmatmul.mubr.bf16.gmra.mxu0 %v1522_v44 }
 0xd80   :  { %2641 = shalt.err (!%p2638_p10)
}
 0xd81   :  { %s2690_s26 = smov 128   ;;  %s2691_s27 = smov 8  }
 0xd82   :  { %1810 = dma.vmem_to_hbm [thread:$0]  %s1805_s24, 4096, %s3276_s7, [#allocation14], %s2690_s26, %s2690_s26, %s2691_s27  }
 0xd83   :  { %s2692_s30 = smov [#allocation12]  }
 0xd84   :  { %s1792_s8 = sshll.u32 %s2692_s30, 4  ;;  %s1793_s8 = int_to_ptr.vmem [resolvable:$true] %s1792_s8 }
 0xd85   :  { %s2650_s7 = scalar_lea.vmem %s1793_s8, 4096  ;;  %p2655_p12 = scmp.lt.s32.totalorder %s1793_s8, %s1793_s8 }
 0xd86   :  { %p2651_p11 = scmp.ne.s32.totalorder %s1793_s8, %s2650_s7  ;;  %p2656_p13 = scmp.lt.s32.totalorder %s2650_s7, %s2650_s7 }
 0xd88   :  { %p2657_p0 = por %p2656_p13, %p2655_p12 }
 0xd8a   :  { %p2658_p1 = pnand %p2657_p0, %p2651_p11 }
 0xe3f   :  { %v2470_v49 = vpop.f32.mrf.mxu0 }
 0xe40   :  { %v1749_v28 = vadd.f32 %v2470_v49, %v3221_v12 }
 0xe41   :  { %v1740_v3 = vpop.f32.mrf.mxu0 }
 0xe42   :  { %1785 = vst [vmem:[#allocation12 + $0xf0] sm:$0xff] %v1749_v28  ;;  %v1741_v47 = vadd.f32 %v3221_v12, %v1740_v3 }
 0xe43   :  { %v2471_v22 = vpop.f32.mrf.mxu0 }
 0xe44   :  { %1783 = vst [vmem:[#allocation12 + $0xe0] sm:$0xff] %v1741_v47  ;;  %v1752_v54 = vadd.f32 %v2471_v22, %v3221_v12 }
 0xe45   :  { %v1743_v24 = vpop.f32.mrf.mxu0 }
 0xe46   :  { %1786 = vst [vmem:[#allocation12 + $0xf8] sm:$0xff] %v1752_v54  ;;  %v1744_v27 = vadd.f32 %v3221_v12, %v1743_v24 }
 0xe48   :  { %1784 = vst [vmem:[#allocation12 + $0xe8] sm:$0xff] %v1744_v27 }
 0xe49   :  { %2661 = shalt.err (!%p2658_p1)
}
 0xe4a   :  { %1798 = dma.vmem_to_hbm [thread:$0]  %s1793_s8, 4096, %s3275_s6, [#allocation6], %s2690_s26, %s2690_s26, %s2691_s27  }
 0xe4b   :  { %2676 = dma.done.wait [#allocation6], 4096  }
 0xe4c   :  { %2677 = vsyncadd [#allocation6], 4294963200 }
 0xe4d   :  { %2678 = dma.done.wait [#allocation14], 4096  }
 0xe4e   :  { %2679 = vsyncadd [#allocation14], 4294963200 }
 0xe4f   :  { %1817 = vsyncpa [#allocation5], 1 }
 0xe50   :  { %1818 = vsyncpa [#allocation8], 1 }
 0xe51   :  { %1819 = vsyncpa [#allocation11], 1 }
 0xe52   :  { %1820 = vsyncpa [#allocation6], 1 }
 0xe53   :  { %1821 = vsyncpa [#allocation14], 1 }

</bundles_post_ra>
